<compile_context>
chip_gen: v7x
topology: tpu7x:2x2x1
jax: 0.10.0
libtpu: 0.0.40
codegen_flags: <defaults>
</compile_context>

<pallas_src>
import numpy as np
import jax
import jax.numpy as jnp
from jax import lax
from jax.experimental import pallas as pl
from jax.experimental.pallas import tpu as pltpu


def _interp_matrix(n_in, n_out):
    """Row-interpolation matrix for bilinear upsampling with align_corners=True."""
    A = np.zeros((n_out, n_in), dtype=np.float32)
    for o in range(n_out):
        src = 0.0 if n_out == 1 else o * (n_in - 1) / (n_out - 1)
        i0 = int(np.floor(src))
        i1 = min(i0 + 1, n_in - 1)
        f = src - i0
        A[o, i0] += 1.0 - f
        A[o, i1] += f
    return A


def expanding_block_forward(x_nchw, skip_nchw, params):
    """Pallas forward of ExpandingBlock.  x: (B,C,H,W), skip: (B,C//2,Hs,Ws), NCHW."""
    w1, b1, w2, b2, w3, b3 = params
    B, C, H, W = x_nchw.shape
    C2 = C // 2
    H2, W2 = 2 * H, 2 * W                 # after bilinear upsample (scale 2)
    Ho1, Wo1 = H2 - 1, W2 - 1             # after conv1 (k=2, valid)
    Ho2, Wo2 = Ho1 - 2, Wo1 - 2           # after conv2 (k=3, valid)
    Ho3, Wo3 = Ho2 - 2, Wo2 - 2           # after conv3 (k=3, valid)
    Bs, Cs, Hs, Ws = skip_nchw.shape
    assert Bs == B and Cs == C2
    S3 = Ho3 * Wo3

    # Separable bilinear interpolation matrices, pre-broadcast over channels so the
    # in-kernel upsample is two batched MXU matmuls (no in-kernel broadcasts).
    Ah = _interp_matrix(H, H2)                              # (H2, H)
    Aw = _interp_matrix(W, W2)                              # (W2, W)
    Ah_b = jnp.asarray(np.tile(Ah[None], (C, 1, 1)))        # (C, H2, H)
    AwT_b = jnp.asarray(np.tile(Aw.T[None], (C, 1, 1)))     # (C, W, W2)

    # HWIO -> (Cout, KH*KW*Cin) matrices (row order ((dy,dx), ci)); bf16 MXU operands.
    W1m = jnp.transpose(w1, (3, 0, 1, 2)).reshape(C2, 2 * 2 * C).astype(jnp.bfloat16)
    W2m = jnp.transpose(w2, (3, 0, 1, 2)).reshape(C2, 3 * 3 * C).astype(jnp.bfloat16)
    W3m = jnp.transpose(w3, (3, 0, 1, 2)).reshape(C2, 3 * 3 * C2).astype(jnp.bfloat16)
    b1r = b1.reshape(C2, 1).astype(jnp.float32)
    b2r = b2.reshape(C2, 1).astype(jnp.float32)
    b3r = b3.reshape(C2, 1).astype(jnp.float32)

    # Static center-crop offsets (same formula as crop()).
    h0 = Hs // 2 - Ho1 // 2
    w0 = Ws // 2 - Wo1 // 2

    def kernel(x_ref, skip_ref, ah_ref, aw_ref,
               w1_ref, b1_ref, w2_ref, b2_ref, w3_ref, b3_ref, o_ref):
        x = x_ref[0]                                        # (C, H, W) f32, NCHW slab

        # ---- separable bilinear upsample: up[c] = Ah @ x[c] @ Aw^T ----
        up_h = lax.dot_general(ah_ref[...], x,
                               dimension_numbers=(((2,), (1,)), ((0,), (0,))),
                               preferred_element_type=jnp.float32)   # (C, H2, W)
        up = lax.dot_general(up_h, aw_ref[...],
                             dimension_numbers=(((2,), (1,)), ((0,), (0,))),
                             preferred_element_type=jnp.float32)     # (C, H2, W2)

        def im2col(z, kh, kw):
            # (Ci, Hi, Wi) -> (kh*kw*Ci, Ho*Wo), rows ordered ((dy,dx), ci),
            # matching the HWIO weight flattening done in the wrapper.
            Ci, Hi, Wi = z.shape
            Ho, Wo = Hi - kh + 1, Wi - kw + 1
            taps = []
            for dy in range(kh):
                for dx in range(kw):
                    taps.append(z[:, dy:dy + Ho, dx:dx + Wo].reshape(Ci, Ho * Wo))
            return jnp.concatenate(taps, axis=0)

        # ---- conv1 (k=2, C -> C2), no activation: one MXU dot ----
        p1 = im2col(up, 2, 2).astype(jnp.bfloat16)                    # (4*C, Ho1*Wo1)
        x1 = (jnp.dot(w1_ref[...], p1, preferred_element_type=jnp.float32)
              + b1_ref[...]).reshape(C2, Ho1, Wo1)

        # ---- center-crop skip and concat on the channel axis ----
        skip_c = skip_ref[0][:, h0:h0 + Ho1, w0:w0 + Wo1]             # (C2, Ho1, Wo1)
        xc = jnp.concatenate([x1, skip_c], axis=0)                    # (2*C2, Ho1, Wo1)

        # ---- conv2 (k=3, 2*C2 -> C2) + ReLU: one MXU dot ----
        p2 = im2col(xc, 3, 3).astype(jnp.bfloat16)                    # (9*C, Ho2*Wo2)
        x2 = jnp.maximum(
            jnp.dot(w2_ref[...], p2, preferred_element_type=jnp.float32) + b2_ref[...],
            0.0).reshape(C2, Ho2, Wo2)

        # ---- conv3 (k=3, C2 -> C2) + ReLU: one MXU dot, lane-dense NC(HW) output ----
        p3 = im2col(x2, 3, 3).astype(jnp.bfloat16)                    # (9*C2, Ho3*Wo3)
        y3 = jnp.maximum(
            jnp.dot(w3_ref[...], p3, preferred_element_type=jnp.float32) + b3_ref[...],
            0.0)                                                      # (C2, Ho3*Wo3)
        o_ref[0] = y3

    out = pl.pallas_call(
        kernel,
        out_shape=jax.ShapeDtypeStruct((B, C2, S3), jnp.float32),
        grid=(B,),
        in_specs=[
            pl.BlockSpec((1, C, H, W), lambda b: (b, 0, 0, 0)),
            pl.BlockSpec((1, C2, Hs, Ws), lambda b: (b, 0, 0, 0)),
            pl.BlockSpec((C, H2, H), lambda b: (0, 0, 0)),
            pl.BlockSpec((C, W, W2), lambda b: (0, 0, 0)),
            pl.BlockSpec((C2, 2 * 2 * C), lambda b: (0, 0)),
            pl.BlockSpec((C2, 1), lambda b: (0, 0)),
            pl.BlockSpec((C2, 3 * 3 * C), lambda b: (0, 0)),
            pl.BlockSpec((C2, 1), lambda b: (0, 0)),
            pl.BlockSpec((C2, 3 * 3 * C2), lambda b: (0, 0)),
            pl.BlockSpec((C2, 1), lambda b: (0, 0)),
        ],
        out_specs=pl.BlockSpec((1, C2, S3), lambda b: (b, 0, 0)),
        compiler_params=pltpu.CompilerParams(dimension_semantics=("parallel",)),
    )(x_nchw, skip_nchw, Ah_b, AwT_b, W1m, b1r, W2m, b2r, W3m, b3r)

    # Pure reshape (no transpose): kernel already produced NCHW with flattened spatial.
    return out.reshape(B, C2, Ho3, Wo3)


def reference_forward(x_nchw, skip_nchw, params):
    """Pure-JAX reference (independent code path) for validation."""
    w1, b1, w2, b2, w3, b3 = params
    B, C, H, W = x_nchw.shape
    Ah = jnp.asarray(_interp_matrix(H, 2 * H))
    Aw = jnp.asarray(_interp_matrix(W, 2 * W))
    up = jnp.einsum('oh,bchw->bcow', Ah, x_nchw)
    up = jnp.einsum('pw,bcow->bcop', Aw, up)

    def conv(z, w, b):
        y = lax.conv_general_dilated(
            z, w, window_strides=(1, 1), padding='VALID',
            dimension_numbers=('NCHW', 'HWIO', 'NCHW'))
        return y + b.reshape(1, -1, 1, 1)

    x1 = conv(up, w1, b1)
    Hs, Ws = skip_nchw.shape[2], skip_nchw.shape[3]
    Ho, Wo = x1.shape[2], x1.shape[3]
    h0 = Hs // 2 - Ho // 2
    w0 = Ws // 2 - Wo // 2
    sc = skip_nchw[:, :, h0:h0 + Ho, w0:w0 + Wo]
    xc = jnp.concatenate([x1, sc], axis=1)
    x2 = jax.nn.relu(conv(xc, w2, b2))
    x3 = jax.nn.relu(conv(x2, w3, b3))
    return x3


if __name__ == "__main__":
    B, C, H, W = 2, 8, 8, 8          # input_channels = 8
    C2 = C // 2
    Hs = Ws = 2 * H + 2              # skip spatial, large enough for the center crop

    key = jax.random.PRNGKey(0)
    kx, ks, k1, k2, k3, kb1, kb2, kb3 = jax.random.split(key, 8)
    x = jax.random.normal(kx, (B, C, H, W), jnp.float32)
    skip = jax.random.normal(ks, (B, C2, Hs, Ws), jnp.float32)

    # Deterministic synthetic parameters (HWIO layout).
    w1 = 0.1 * jax.random.normal(k1, (2, 2, C, C2), jnp.float32)
    b1 = 0.1 * jax.random.normal(kb1, (C2,), jnp.float32)
    w2 = 0.1 * jax.random.normal(k2, (3, 3, C, C2), jnp.float32)
    b2 = 0.1 * jax.random.normal(kb2, (C2,), jnp.float32)
    w3 = 0.1 * jax.random.normal(k3, (3, 3, C2, C2), jnp.float32)
    b3 = 0.1 * jax.random.normal(kb3, (C2,), jnp.float32)
    params = (w1, b1, w2, b2, w3, b3)

    out = jax.block_until_ready(expanding_block_forward(x, skip, params))
    ref = jax.block_until_ready(reference_forward(x, skip, params))

    assert out.shape == (B, C2, 11, 11), out.shape
    err = float(jnp.max(jnp.abs(out - ref)))
    assert err < 5e-2, f"max abs err too large: {err}"
    print("KERNEL_OK")
</pallas_src>

<mosaic_0001>
module attributes {stable_mosaic.version = 11 : i64} {
  func.func @kernel(%arg0: i32, %arg1: memref<1x8x8x8xf32, #tpu.memory_space<vmem>>, %arg2: memref<1x4x18x18xf32, #tpu.memory_space<vmem>>, %arg3: memref<8x16x8xf32, #tpu.memory_space<vmem>>, %arg4: memref<8x8x16xf32, #tpu.memory_space<vmem>>, %arg5: memref<4x32xbf16, #tpu.memory_space<vmem>>, %arg6: memref<4x1xf32, #tpu.memory_space<vmem>>, %arg7: memref<4x72xbf16, #tpu.memory_space<vmem>>, %arg8: memref<4x1xf32, #tpu.memory_space<vmem>>, %arg9: memref<4x36xbf16, #tpu.memory_space<vmem>>, %arg10: memref<4x1xf32, #tpu.memory_space<vmem>>, %arg11: memref<1x4x121xf32, #tpu.memory_space<vmem>>) attributes {dimension_semantics = [#tpu.dimension_semantics<parallel>], iteration_bounds = array<i64: 2>, scalar_prefetch = 0 : i64, scratch_operands = 0 : i64, tpu.core_type = #tpu.core_type<tc>, window_params = [{transform_indices = @transform_0, window_bounds = array<i64: 1, 8, 8, 8>}, {transform_indices = @transform_1, window_bounds = array<i64: 1, 4, 18, 18>}, {pipeline_mode = #tpu.pipeline_mode<synchronous>, transform_indices = @transform_2, window_bounds = array<i64: 8, 16, 8>}, {pipeline_mode = #tpu.pipeline_mode<synchronous>, transform_indices = @transform_3, window_bounds = array<i64: 8, 8, 16>}, {pipeline_mode = #tpu.pipeline_mode<synchronous>, transform_indices = @transform_4, window_bounds = array<i64: 4, 32>}, {pipeline_mode = #tpu.pipeline_mode<synchronous>, transform_indices = @transform_5, window_bounds = array<i64: 4, 1>}, {pipeline_mode = #tpu.pipeline_mode<synchronous>, transform_indices = @transform_6, window_bounds = array<i64: 4, 72>}, {pipeline_mode = #tpu.pipeline_mode<synchronous>, transform_indices = @transform_7, window_bounds = array<i64: 4, 1>}, {pipeline_mode = #tpu.pipeline_mode<synchronous>, transform_indices = @transform_8, window_bounds = array<i64: 4, 36>}, {pipeline_mode = #tpu.pipeline_mode<synchronous>, transform_indices = @transform_9, window_bounds = array<i64: 4, 1>}, {transform_indices = @transform_10, window_bounds = array<i64: 1, 4, 121>}]} {
    %c0 = arith.constant 0 : index
    %c0_0 = arith.constant 0 : index
    %c0_1 = arith.constant 0 : index
    %c0_2 = arith.constant 0 : index
    %0 = vector.load %arg1[%c0, %c0_0, %c0_1, %c0_2] : memref<1x8x8x8xf32, #tpu.memory_space<vmem>>, vector<1x8x8x8xf32>
    %1 = vector.shape_cast %0 : vector<1x8x8x8xf32> to vector<8x8x8xf32>
    %c0_3 = arith.constant 0 : index
    %c0_4 = arith.constant 0 : index
    %c0_5 = arith.constant 0 : index
    %2 = vector.load %arg3[%c0_3, %c0_4, %c0_5] : memref<8x16x8xf32, #tpu.memory_space<vmem>>, vector<8x16x8xf32>
    %cst = arith.constant dense<0.000000e+00> : vector<8x16x8xf32>
    %3 = tpu.matmul %2, %1, %cst {dimension_numbers = #tpu.dot_dimension_numbers<[2], [1], [1], [2], [0, 0, 0, 1, 1, 2], [0], [0]>} : vector<8x16x8xf32>, vector<8x8x8xf32>, vector<8x16x8xf32> -> vector<8x16x8xf32>
    %c0_6 = arith.constant 0 : index
    %c0_7 = arith.constant 0 : index
    %c0_8 = arith.constant 0 : index
    %4 = vector.load %arg4[%c0_6, %c0_7, %c0_8] : memref<8x8x16xf32, #tpu.memory_space<vmem>>, vector<8x8x16xf32>
    %cst_9 = arith.constant dense<0.000000e+00> : vector<8x16x16xf32>
    %5 = tpu.matmul %3, %4, %cst_9 {dimension_numbers = #tpu.dot_dimension_numbers<[2], [1], [1], [2], [0, 0, 0, 1, 1, 2], [0], [0]>} : vector<8x16x8xf32>, vector<8x8x16xf32>, vector<8x16x16xf32> -> vector<8x16x16xf32>
    %6 = vector.extract_strided_slice %5 {offsets = [0, 0, 0], sizes = [8, 15, 15], strides = [1, 1, 1]} : vector<8x16x16xf32> to vector<8x15x15xf32>
    %7 = vector.shape_cast %6 : vector<8x15x15xf32> to vector<8x225xf32>
    %8 = vector.extract_strided_slice %5 {offsets = [0, 0, 1], sizes = [8, 15, 15], strides = [1, 1, 1]} : vector<8x16x16xf32> to vector<8x15x15xf32>
    %9 = vector.shape_cast %8 : vector<8x15x15xf32> to vector<8x225xf32>
    %10 = vector.extract_strided_slice %5 {offsets = [0, 1, 0], sizes = [8, 15, 15], strides = [1, 1, 1]} : vector<8x16x16xf32> to vector<8x15x15xf32>
    %11 = vector.shape_cast %10 : vector<8x15x15xf32> to vector<8x225xf32>
    %12 = vector.extract_strided_slice %5 {offsets = [0, 1, 1], sizes = [8, 15, 15], strides = [1, 1, 1]} : vector<8x16x16xf32> to vector<8x15x15xf32>
    %13 = vector.shape_cast %12 : vector<8x15x15xf32> to vector<8x225xf32>
    %14 = tpu.concatenate %7, %9, %11, %13 in 0 : vector<8x225xf32>, vector<8x225xf32>, vector<8x225xf32>, vector<8x225xf32> -> vector<32x225xf32>
    %15 = arith.truncf %14 : vector<32x225xf32> to vector<32x225xbf16>
    %c0_10 = arith.constant 0 : index
    %c0_11 = arith.constant 0 : index
    %16 = vector.load %arg5[%c0_10, %c0_11] : memref<4x32xbf16, #tpu.memory_space<vmem>>, vector<4x32xbf16>
    %cst_12 = arith.constant dense<0.000000e+00> : vector<4x225xf32>
    %17 = tpu.matmul %16, %15, %cst_12 {dimension_numbers = #tpu.dot_dimension_numbers<[1], [0], [0], [1], [0, 0, 1, 1], [], []>} : vector<4x32xbf16>, vector<32x225xbf16>, vector<4x225xf32> -> vector<4x225xf32>
    %c0_13 = arith.constant 0 : index
    %c0_14 = arith.constant 0 : index
    %18 = vector.load %arg6[%c0_13, %c0_14] : memref<4x1xf32, #tpu.memory_space<vmem>>, vector<4x1xf32>
    %19 = vector.broadcast %18 : vector<4x1xf32> to vector<4x225xf32>
    %20 = arith.addf %17, %19 : vector<4x225xf32>
    %21 = vector.shape_cast %20 : vector<4x225xf32> to vector<4x15x15xf32>
    %c0_15 = arith.constant 0 : index
    %c0_16 = arith.constant 0 : index
    %c0_17 = arith.constant 0 : index
    %c0_18 = arith.constant 0 : index
    %22 = vector.load %arg2[%c0_15, %c0_16, %c0_17, %c0_18] : memref<1x4x18x18xf32, #tpu.memory_space<vmem>>, vector<1x4x18x18xf32>
    %23 = vector.shape_cast %22 : vector<1x4x18x18xf32> to vector<4x18x18xf32>
    %24 = vector.extract_strided_slice %23 {offsets = [0, 2, 2], sizes = [4, 15, 15], strides = [1, 1, 1]} : vector<4x18x18xf32> to vector<4x15x15xf32>
    %25 = tpu.concatenate %21, %24 in 0 : vector<4x15x15xf32>, vector<4x15x15xf32> -> vector<8x15x15xf32>
    %26 = vector.extract_strided_slice %25 {offsets = [0, 0, 0], sizes = [8, 13, 13], strides = [1, 1, 1]} : vector<8x15x15xf32> to vector<8x13x13xf32>
    %27 = vector.shape_cast %26 : vector<8x13x13xf32> to vector<8x169xf32>
    %28 = vector.extract_strided_slice %25 {offsets = [0, 0, 1], sizes = [8, 13, 13], strides = [1, 1, 1]} : vector<8x15x15xf32> to vector<8x13x13xf32>
    %29 = vector.shape_cast %28 : vector<8x13x13xf32> to vector<8x169xf32>
    %30 = vector.extract_strided_slice %25 {offsets = [0, 0, 2], sizes = [8, 13, 13], strides = [1, 1, 1]} : vector<8x15x15xf32> to vector<8x13x13xf32>
    %31 = vector.shape_cast %30 : vector<8x13x13xf32> to vector<8x169xf32>
    %32 = vector.extract_strided_slice %25 {offsets = [0, 1, 0], sizes = [8, 13, 13], strides = [1, 1, 1]} : vector<8x15x15xf32> to vector<8x13x13xf32>
    %33 = vector.shape_cast %32 : vector<8x13x13xf32> to vector<8x169xf32>
    %34 = vector.extract_strided_slice %25 {offsets = [0, 1, 1], sizes = [8, 13, 13], strides = [1, 1, 1]} : vector<8x15x15xf32> to vector<8x13x13xf32>
    %35 = vector.shape_cast %34 : vector<8x13x13xf32> to vector<8x169xf32>
    %36 = vector.extract_strided_slice %25 {offsets = [0, 1, 2], sizes = [8, 13, 13], strides = [1, 1, 1]} : vector<8x15x15xf32> to vector<8x13x13xf32>
    %37 = vector.shape_cast %36 : vector<8x13x13xf32> to vector<8x169xf32>
    %38 = vector.extract_strided_slice %25 {offsets = [0, 2, 0], sizes = [8, 13, 13], strides = [1, 1, 1]} : vector<8x15x15xf32> to vector<8x13x13xf32>
    %39 = vector.shape_cast %38 : vector<8x13x13xf32> to vector<8x169xf32>
    %40 = vector.extract_strided_slice %25 {offsets = [0, 2, 1], sizes = [8, 13, 13], strides = [1, 1, 1]} : vector<8x15x15xf32> to vector<8x13x13xf32>
    %41 = vector.shape_cast %40 : vector<8x13x13xf32> to vector<8x169xf32>
    %42 = vector.extract_strided_slice %25 {offsets = [0, 2, 2], sizes = [8, 13, 13], strides = [1, 1, 1]} : vector<8x15x15xf32> to vector<8x13x13xf32>
    %43 = vector.shape_cast %42 : vector<8x13x13xf32> to vector<8x169xf32>
    %44 = tpu.concatenate %27, %29, %31, %33, %35, %37, %39, %41, %43 in 0 : vector<8x169xf32>, vector<8x169xf32>, vector<8x169xf32>, vector<8x169xf32>, vector<8x169xf32>, vector<8x169xf32>, vector<8x169xf32>, vector<8x169xf32>, vector<8x169xf32> -> vector<72x169xf32>
    %45 = arith.truncf %44 : vector<72x169xf32> to vector<72x169xbf16>
    %c0_19 = arith.constant 0 : index
    %c0_20 = arith.constant 0 : index
    %46 = vector.load %arg7[%c0_19, %c0_20] : memref<4x72xbf16, #tpu.memory_space<vmem>>, vector<4x72xbf16>
    %cst_21 = arith.constant dense<0.000000e+00> : vector<4x169xf32>
    %47 = tpu.matmul %46, %45, %cst_21 {dimension_numbers = #tpu.dot_dimension_numbers<[1], [0], [0], [1], [0, 0, 1, 1], [], []>} : vector<4x72xbf16>, vector<72x169xbf16>, vector<4x169xf32> -> vector<4x169xf32>
    %c0_22 = arith.constant 0 : index
    %c0_23 = arith.constant 0 : index
    %48 = vector.load %arg8[%c0_22, %c0_23] : memref<4x1xf32, #tpu.memory_space<vmem>>, vector<4x1xf32>
    %49 = vector.broadcast %48 : vector<4x1xf32> to vector<4x169xf32>
    %50 = arith.addf %47, %49 : vector<4x169xf32>
    %cst_24 = arith.constant 0.000000e+00 : f32
    %51 = vector.broadcast %cst_24 : f32 to vector<4x169xf32>
    %52 = arith.maximumf %50, %51 : vector<4x169xf32>
    %53 = vector.shape_cast %52 : vector<4x169xf32> to vector<4x13x13xf32>
    %54 = vector.extract_strided_slice %53 {offsets = [0, 0, 0], sizes = [4, 11, 11], strides = [1, 1, 1]} : vector<4x13x13xf32> to vector<4x11x11xf32>
    %55 = vector.shape_cast %54 : vector<4x11x11xf32> to vector<4x121xf32>
    %56 = vector.extract_strided_slice %53 {offsets = [0, 0, 1], sizes = [4, 11, 11], strides = [1, 1, 1]} : vector<4x13x13xf32> to vector<4x11x11xf32>
    %57 = vector.shape_cast %56 : vector<4x11x11xf32> to vector<4x121xf32>
    %58 = vector.extract_strided_slice %53 {offsets = [0, 0, 2], sizes = [4, 11, 11], strides = [1, 1, 1]} : vector<4x13x13xf32> to vector<4x11x11xf32>
    %59 = vector.shape_cast %58 : vector<4x11x11xf32> to vector<4x121xf32>
    %60 = vector.extract_strided_slice %53 {offsets = [0, 1, 0], sizes = [4, 11, 11], strides = [1, 1, 1]} : vector<4x13x13xf32> to vector<4x11x11xf32>
    %61 = vector.shape_cast %60 : vector<4x11x11xf32> to vector<4x121xf32>
    %62 = vector.extract_strided_slice %53 {offsets = [0, 1, 1], sizes = [4, 11, 11], strides = [1, 1, 1]} : vector<4x13x13xf32> to vector<4x11x11xf32>
    %63 = vector.shape_cast %62 : vector<4x11x11xf32> to vector<4x121xf32>
    %64 = vector.extract_strided_slice %53 {offsets = [0, 1, 2], sizes = [4, 11, 11], strides = [1, 1, 1]} : vector<4x13x13xf32> to vector<4x11x11xf32>
    %65 = vector.shape_cast %64 : vector<4x11x11xf32> to vector<4x121xf32>
    %66 = vector.extract_strided_slice %53 {offsets = [0, 2, 0], sizes = [4, 11, 11], strides = [1, 1, 1]} : vector<4x13x13xf32> to vector<4x11x11xf32>
    %67 = vector.shape_cast %66 : vector<4x11x11xf32> to vector<4x121xf32>
    %68 = vector.extract_strided_slice %53 {offsets = [0, 2, 1], sizes = [4, 11, 11], strides = [1, 1, 1]} : vector<4x13x13xf32> to vector<4x11x11xf32>
    %69 = vector.shape_cast %68 : vector<4x11x11xf32> to vector<4x121xf32>
    %70 = vector.extract_strided_slice %53 {offsets = [0, 2, 2], sizes = [4, 11, 11], strides = [1, 1, 1]} : vector<4x13x13xf32> to vector<4x11x11xf32>
    %71 = vector.shape_cast %70 : vector<4x11x11xf32> to vector<4x121xf32>
    %72 = tpu.concatenate %55, %57, %59, %61, %63, %65, %67, %69, %71 in 0 : vector<4x121xf32>, vector<4x121xf32>, vector<4x121xf32>, vector<4x121xf32>, vector<4x121xf32>, vector<4x121xf32>, vector<4x121xf32>, vector<4x121xf32>, vector<4x121xf32> -> vector<36x121xf32>
    %73 = arith.truncf %72 : vector<36x121xf32> to vector<36x121xbf16>
    %c0_25 = arith.constant 0 : index
    %c0_26 = arith.constant 0 : index
    %74 = vector.load %arg9[%c0_25, %c0_26] : memref<4x36xbf16, #tpu.memory_space<vmem>>, vector<4x36xbf16>
    %cst_27 = arith.constant dense<0.000000e+00> : vector<4x121xf32>
    %75 = tpu.matmul %74, %73, %cst_27 {dimension_numbers = #tpu.dot_dimension_numbers<[1], [0], [0], [1], [0, 0, 1, 1], [], []>} : vector<4x36xbf16>, vector<36x121xbf16>, vector<4x121xf32> -> vector<4x121xf32>
    %c0_28 = arith.constant 0 : index
    %c0_29 = arith.constant 0 : index
    %76 = vector.load %arg10[%c0_28, %c0_29] : memref<4x1xf32, #tpu.memory_space<vmem>>, vector<4x1xf32>
    %77 = vector.broadcast %76 : vector<4x1xf32> to vector<4x121xf32>
    %78 = arith.addf %75, %77 : vector<4x121xf32>
    %cst_30 = arith.constant 0.000000e+00 : f32
    %79 = vector.broadcast %cst_30 : f32 to vector<4x121xf32>
    %80 = arith.maximumf %78, %79 : vector<4x121xf32>
    %c0_31 = arith.constant 0 : index
    %c0_32 = arith.constant 0 : index
    %c0_33 = arith.constant 0 : index
    %81 = vector.load %arg11[%c0_31, %c0_32, %c0_33] : memref<1x4x121xf32, #tpu.memory_space<vmem>>, vector<1x4x121xf32>
    %82 = vector.shape_cast %81 : vector<1x4x121xf32> to vector<4x121xf32>
    %83 = vector.shape_cast %80 : vector<4x121xf32> to vector<1x4x121xf32>
    tpu.vector_store %arg11[%c0_31, %c0_32, %c0_33], %83 {strides = array<i32>} : memref<1x4x121xf32, #tpu.memory_space<vmem>>, vector<1x4x121xf32>,
    return
  }
  func.func @transform_0(%arg0: i32) -> (i32, i32, i32, i32) {
    %c0_i32 = arith.constant 0 : i32
    %c0_i32_0 = arith.constant 0 : i32
    %c0_i32_1 = arith.constant 0 : i32
    %c0_i32_2 = arith.constant 0 : i32
    return %arg0, %c0_i32, %c0_i32_0, %c0_i32_1 : i32, i32, i32, i32
  }
  func.func @transform_1(%arg0: i32) -> (i32, i32, i32, i32) {
    %c0_i32 = arith.constant 0 : i32
    %c0_i32_0 = arith.constant 0 : i32
    %c0_i32_1 = arith.constant 0 : i32
    %c0_i32_2 = arith.constant 0 : i32
    return %arg0, %c0_i32, %c0_i32_0, %c0_i32_1 : i32, i32, i32, i32
  }
  func.func @transform_2(%arg0: i32) -> (i32, i32, i32) {
    %c0_i32 = arith.constant 0 : i32
    %c0_i32_0 = arith.constant 0 : i32
    %c0_i32_1 = arith.constant 0 : i32
    %c0_i32_2 = arith.constant 0 : i32
    return %c0_i32, %c0_i32_0, %c0_i32_1 : i32, i32, i32
  }
  func.func @transform_3(%arg0: i32) -> (i32, i32, i32) {
    %c0_i32 = arith.constant 0 : i32
    %c0_i32_0 = arith.constant 0 : i32
    %c0_i32_1 = arith.constant 0 : i32
    %c0_i32_2 = arith.constant 0 : i32
    return %c0_i32, %c0_i32_0, %c0_i32_1 : i32, i32, i32
  }
  func.func @transform_4(%arg0: i32) -> (i32, i32) {
    %c0_i32 = arith.constant 0 : i32
    %c0_i32_0 = arith.constant 0 : i32
    %c0_i32_1 = arith.constant 0 : i32
    return %c0_i32, %c0_i32_0 : i32, i32
  }
  func.func @transform_5(%arg0: i32) -> (i32, i32) {
    %c0_i32 = arith.constant 0 : i32
    %c0_i32_0 = arith.constant 0 : i32
    %c0_i32_1 = arith.constant 0 : i32
    return %c0_i32, %c0_i32_0 : i32, i32
  }
  func.func @transform_6(%arg0: i32) -> (i32, i32) {
    %c0_i32 = arith.constant 0 : i32
    %c0_i32_0 = arith.constant 0 : i32
    %c0_i32_1 = arith.constant 0 : i32
    return %c0_i32, %c0_i32_0 : i32, i32
  }
  func.func @transform_7(%arg0: i32) -> (i32, i32) {
    %c0_i32 = arith.constant 0 : i32
    %c0_i32_0 = arith.constant 0 : i32
    %c0_i32_1 = arith.constant 0 : i32
    return %c0_i32, %c0_i32_0 : i32, i32
  }
  func.func @transform_8(%arg0: i32) -> (i32, i32) {
    %c0_i32 = arith.constant 0 : i32
    %c0_i32_0 = arith.constant 0 : i32
    %c0_i32_1 = arith.constant 0 : i32
    return %c0_i32, %c0_i32_0 : i32, i32
  }
  func.func @transform_9(%arg0: i32) -> (i32, i32) {
    %c0_i32 = arith.constant 0 : i32
    %c0_i32_0 = arith.constant 0 : i32
    %c0_i32_1 = arith.constant 0 : i32
    return %c0_i32, %c0_i32_0 : i32, i32
  }
  func.func @transform_10(%arg0: i32) -> (i32, i32, i32) {
    %c0_i32 = arith.constant 0 : i32
    %c0_i32_0 = arith.constant 0 : i32
    %c0_i32_1 = arith.constant 0 : i32
    return %arg0, %c0_i32, %c0_i32_0 : i32, i32, i32
  }
}

</mosaic_0001>

<bundles_post_ra>
// kernel: tpu_custom_call.1
= control target key start
LH: loop header
LB: loop body
LE: loop exit
PB: predicated region body
PF: predicated region fallthrough
CT: control target
= control target key end

     0   :  { %15 = vsyncpa [#allocation3], 0  ;;  %s13619_s0 = inlined_call_operand.vmem [shape: f32[2,8,8,8], index: 0, kind: input, shape index: {}]   ;;  %s13620_s1 = inlined_call_operand.vmem [shape: f32[2,4,18,18], index: 1, kind: input, shape index: {}]   ;;  %s13621_s2 = inlined_call_operand.vmem [shape: f32[8,16,8], index: 2, kind: input, shape index: {}]   ;;  %s13622_s3 = inlined_call_operand.vmem [shape: f32[8,8,16], index: 3, kind: input, shape index: {}]   ;;  %s13623_s4 = inlined_call_operand.vmem [shape: bf16[4,32], index: 4, kind: input, shape index: {}]   ;;  %s13624_s5 = inlined_call_operand.vmem [shape: f32[4,1], index: 5, kind: input, shape index: {}]   ;;  %s13625_s6 = inlined_call_operand.vmem [shape: bf16[4,72], index: 6, kind: input, shape index: {}]   ;;  %s13626_s7 = inlined_call_operand.vmem [shape: f32[4,1], index: 7, kind: input, shape index: {}]   ;;  %s13627_s8 = inlined_call_operand.vmem [shape: bf16[4,36], index: 8, kind: input, shape index: {}]   ;;  %s13628_s9 = inlined_call_operand.vmem [shape: f32[4,1], index: 9, kind: input, shape index: {}]   ;;  %s13629_s10 = inlined_call_operand.hbm [shape: f32[2,4,121], index: 10, kind: output, shape index: {}]  }
   0x1   :  { %17 = vsyncpa [#allocation3 + $0x1], 0  ;;  %s9776_s13 = smov 0   ;;  %s9778_s14 = smov 0  }
   0x2   :  { %s9780_s15 = smov 0   ;;  %s9782_s16 = smov 0  }
   0x3 LB: > { %s9797_s17 = sadd.s32 4294967295, %s9658_s16   ;;  %s8709_s18 = sadd.s32 4294967294, %s9658_s16   ;;  %s9658_s16 = sphi %s9782_s16, %s14123_s16   ;;  %s9654_s15 = sphi %s9780_s15, %s14122_s15   ;;  %s9650_s14 = sphi %s9778_s14, %s14121_s14   ;;  %s9646_s13 = sphi %s9776_s13, %s14120_s13  }
   0x4   : > { %s9801_s19 = sadd.s32 1, %s9658_s16   ;;  %s250_s20 = sadd.s32 1, %s9654_s15 }
   0x5   : > { %s247_s21 = ssub.s32 %s9658_s16, %s9801_s19  ;;  %p260_p0 = scmp.ne.s32.totalorder %s9654_s15, %s9650_s14 }
   0x6   : > { %p248_p1 = scmp.eq.s32.totalorder %s247_s21, 0  ;;  %p261_p2 = scmp.eq.s32.totalorder %s9797_s17, 1 }
   0x7   : > { %p266_p3 = scmp.ne.s32.totalorder %s9650_s14, %s9646_s13  ;;  %p267_p4 = scmp.eq.s32.totalorder %s8709_s18, 1 }
   0x8   : > { %s9812_s22 = scalar_select %p248_p1, %s9654_s15, %s250_s20  }
   0x9   : > { %p9814_p5 = por %p261_p2, %p260_p0  ;;  %p9818_p6 = por %p267_p4, %p266_p3 }
   0xa   : > { %p8712_p7 = scmp.ge.s32.totalorder %s9658_s16, 1  ;;  %p325_p8 = scmp.lt.s32.totalorder %s9658_s16, 3 }
   0xc   : > { %p326_p9 = pnand %p8712_p7, %p325_p8 }
   0xe   : > { %329 = sbr.rel (%p326_p9) target bundleno = 2497 (0x9c1), region = 60 }
  0x15   : > { %p368_p10 = scmp.lt.s32.totalorder %s9797_s17, 1  ;;  %v387_v0 = vld [vmem:[%s13621_s2] sm:$0xff]  ;;  %vm13666_vm0 = vcmask 64512   ;;  %v389_v1 = vld [vmem:[%s13621_s2 + $0x10] sm:$0xff]  ;;  %v388_v2 = vld [vmem:[%s13621_s2 + $0x8] sm:$0xff]  ;;  %v1713_v50 = vlaneseq  ;;  %vm2468_vm1 = vcmask 1046528  }
  0x16   : > { %8826 = vmatprep.mubr.msk.f32.mxu0 %vm13666_vm0, %v387_v0  ;;  %8831 = vmatprep.mubr.msk.f32.mxu1 %vm13666_vm0, %v389_v1  ;;  %v390_v5 = vld [vmem:[%s13621_s2 + $0x18] sm:$0xff]  ;;  %v391_v8 = vld [vmem:[%s13621_s2 + $0x20] sm:$0xff]  ;;  %v393_v9 = vld [vmem:[%s13621_s2 + $0x30] sm:$0xff]  ;;  %v9660_v48 = vmov 1983009808   ;;  %s9664_s11 = smov 7  }
  0x17   : > { %s9834_s29 = scalar_select %p368_p10, %s9797_s17, 1  ;;  %v392_v10 = vld [vmem:[%s13621_s2 + $0x28] sm:$0xff]  ;;  %v394_v11 = vld [vmem:[%s13621_s2 + $0x38] sm:$0xff]  ;;  %v395_v14 = vld [vmem:[%s13621_s2 + $0x40] sm:$0xff]  ;;  %v1711_v49 = vunpack.c.l.s4 %v9660_v48  ;;  %v9661_v51 = vmov 1934713408  }
  0x18   : > { %v397_v15 = vld [vmem:[%s13621_s2 + $0x50] sm:$0xff]  ;;  %v396_v16 = vld [vmem:[%s13621_s2 + $0x48] sm:$0xff]  ;;  %v398_v17 = vld [vmem:[%s13621_s2 + $0x58] sm:$0xff]  ;;  %v1775_v52 = vunpack.c.l.s4 %v9661_v51  ;;  %v1714_v54 = vshrl.u32 %v1713_v50, 7  ;;  %s13664_s12 = smov 22   ;;  %s13661_s20 = smov 67  }
  0x19   : > { %s8771_s30 = sshll.u32 %s9834_s29, 6  ;;  %v399_v20 = vld [vmem:[%s13621_s2 + $0x60] sm:$0xff]  ;;  %v401_v21 = vld [vmem:[%s13621_s2 + $0x70] sm:$0xff]  ;;  %v400_v22 = vld [vmem:[%s13621_s2 + $0x68] sm:$0xff]  ;;  %v1712_v53 = vunpack.c.0.s8 %v1711_v49  ;;  %s13782_s21 = smov 37   ;;  %vm3501_vm2 = vcmask 1045504  }
  0x1a   : > { %s9840_s18 = scalar_lea.vmem %s13619_s0, %s8771_s30  ;;  %v402_v23 = vld [vmem:[%s13621_s2 + $0x78] sm:$0xff]  ;;  %v1052_v24 = vld [vmem:[%s13622_s3] sm:$0xff]  ;;  %v1053_v25 = vld [vmem:[%s13622_s3 + $0x8] sm:$0xff]  ;;  %v1776_v57 = vunpack.c.0.s8 %v1775_v52  ;;  %s13658_s30 = smov 127   ;;  %vm2051_vm3 = vcmask 56320   ;;  %vm2053_vm4 = vcmask 179200  }
  0x1b   : > { %v379_v3 = vld [vmem:[%s9840_s18] sm:$0xff]  ;;  %v380_v4 = vld [vmem:[%s9840_s18 + $0x8] sm:$0xff]  ;;  %v381_v6 = vld [vmem:[%s9840_s18 + $0x10] sm:$0xff]  ;;  %v9952_v0 = vsub.s32 %v1712_v53, %v1714_v54  ;;  %s9669_s25 = smov 15   ;;  %s9670_s26 = smov 52   ;;  %vm2055_vm5 = vcmask 302080  }
  0x1c   : > { %8824 = vmatprep.subr.mxu0 %v379_v3  ;;  %8829 = vmatprep.subr.mxu1 %v380_v4  ;;  %v382_v7 = vld [vmem:[%s9840_s18 + $0x18] sm:$0xff]  ;;  %v383_v12 = vld [vmem:[%s9840_s18 + $0x20] sm:$0xff]  ;;  %v384_v13 = vld [vmem:[%s9840_s18 + $0x28] sm:$0xff]  ;;  %s9671_s27 = smov 45   ;;  %s13660_s28 = smov 82   ;;  %vm2057_vm6 = vcmask 424960  }
  0x1d   : > { %8825 = vmatpush3.msra.mxu0 %v379_v3  ;;  %8830 = vmatpush3.msra.mxu1 %v380_v4  ;;  %v385_v18 = vld [vmem:[%s9840_s18 + $0x30] sm:$0xff]  ;;  %v386_v19 = vld [vmem:[%s9840_s18 + $0x38] sm:$0xff]  ;;  %v1056_v32 = vld [vmem:[%s13622_s3 + $0x20] sm:$0xff]  ;;  %s9665_s18 = smov 120   ;;  %vm2059_vm7 = vcmask 547840   ;;  %vm2061_vm8 = vcmask 670720  }
  0x1e   : > { %8827 = vmatmul.mubr.msk.f32.vlgmr.msra.gmra.mrb[0].mxu0 %vm13666_vm0, %v388_v2  ;;  %8832 = vmatmul.mubr.msk.f32.vlgmr.msra.gmra.mrb[0].mxu1 %vm13666_vm0, %v390_v5  ;;  %v1054_v26 = vld [vmem:[%s13622_s3 + $0x10] sm:$0xff]  ;;  %v1055_v27 = vld [vmem:[%s13622_s3 + $0x18] sm:$0xff]  ;;  %v1057_v33 = vld [vmem:[%s13622_s3 + $0x28] sm:$0xff]  ;;  %v9964_v5 = vsub.s32 %v1776_v57, %v1714_v54  ;;  %vm2035_vm9 = vcmask 121856   ;;  %vm2037_vm10 = vcmask 244736   ;;  %vm2039_vm11 = vcmask 367616  }
  0x1f   : > { %8834 = vmatprep.subr.mxu0 %v381_v6  ;;  %8839 = vmatprep.subr.mxu1 %v382_v7  ;;  %v1058_v38 = vld [vmem:[%s13622_s3 + $0x30] sm:$0xff]  ;;  %v1059_v39 = vld [vmem:[%s13622_s3 + $0x38] sm:$0xff]  ;;  %vm2041_vm12 = vcmask 490496   ;;  %vm2043_vm13 = vcmask 613376   ;;  %vm2045_vm14 = vcmask 736256   ;;  %vm2047_vm15 = vcmask 859136  }
  0x20   : > { %8835 = vmatpush3.msra.mxu0 %v381_v6  ;;  %8836 = vmatprep.mubr.msk.f32.mxu0 %vm13666_vm0, %v391_v8 }
  0x21   : > { %8840 = vmatpush3.msra.mxu1 %v382_v7  ;;  %8841 = vmatprep.mubr.msk.f32.mxu1 %vm13666_vm0, %v393_v9 }
  0x22   : > { %8837 = vmatmul.mubr.msk.f32.vlgmr.msra.gmra.mrb[2].mxu0 %vm13666_vm0, %v392_v10  ;;  %8842 = vmatmul.mubr.msk.f32.vlgmr.msra.gmra.mrb[2].mxu1 %vm13666_vm0, %v394_v11 }
  0x23   : > { %8844 = vmatprep.subr.mxu0 %v383_v12  ;;  %8849 = vmatprep.subr.mxu1 %v384_v13 }
  0x24   : > { %8845 = vmatpush3.msra.mxu0 %v383_v12  ;;  %8846 = vmatprep.mubr.msk.f32.mxu0 %vm13666_vm0, %v395_v14 }
  0x25   : > { %8850 = vmatpush3.msra.mxu1 %v384_v13  ;;  %8851 = vmatprep.mubr.msk.f32.mxu1 %vm13666_vm0, %v397_v15 }
  0x26   : > { %8847 = vmatmul.mubr.msk.f32.vlgmr.msra.gmra.mrb[4].mxu0 %vm13666_vm0, %v396_v16  ;;  %8852 = vmatmul.mubr.msk.f32.vlgmr.msra.gmra.mrb[4].mxu1 %vm13666_vm0, %v398_v17 }
  0x27   : > { %8854 = vmatprep.subr.mxu0 %v385_v18  ;;  %8859 = vmatprep.subr.mxu1 %v386_v19 }
  0x28   : > { %8855 = vmatpush3.msra.mxu0 %v385_v18  ;;  %8856 = vmatprep.mubr.msk.f32.mxu0 %vm13666_vm0, %v399_v20 }
  0x29   : > { %8860 = vmatpush3.msra.mxu1 %v386_v19  ;;  %8861 = vmatprep.mubr.msk.f32.mxu1 %vm13666_vm0, %v401_v21 }
  0x2a   : > { %8857 = vmatmul.mubr.msk.f32.vlgmr.msra.gmra.mrb[6].mxu0 %vm13666_vm0, %v400_v22  ;;  %8862 = vmatmul.mubr.msk.f32.vlgmr.msra.gmra.mrb[6].mxu1 %vm13666_vm0, %v402_v23 }
  0x2b   : > { %8864 = vmatprep.subr.mxu0 %v1052_v24  ;;  %8869 = vmatprep.subr.mxu1 %v1053_v25 }
  0x2c   : > { %8865 = vmatpush3.msra.mxu0 %v1052_v24  ;;  %8870 = vmatpush3.msra.mxu1 %v1053_v25 }
  0x2d   : > { %8874 = vmatprep.subr.mxu0 %v1054_v26  ;;  %8879 = vmatprep.subr.mxu1 %v1055_v27 }
  0xf1   : > { %v8828_v28 = vpop.f32.mrb[0].mxu0  ;;  %v8833_v29 = vpop.f32.mrb[0].mxu1 }
  0xf2   : > { %v476_v30 = vpop.f32.mrb[1].mxu0  ;;  %v557_v31 = vpop.f32.mrb[1].mxu1 }
  0xf3   : > { %8866 = vmatprep.mubr.msk.f32.mxu0 %vm13666_vm0, %v476_v30  ;;  %8871 = vmatprep.mubr.msk.f32.mxu1 %vm13666_vm0, %v557_v31 }
  0xf4   : > { %8867 = vmatmul.mubr.msk.f32.vlgmr.msra.gmra.mrb[8].mxu0 %vm13666_vm0, %v8828_v28  ;;  %8872 = vmatmul.mubr.msk.f32.vlgmr.msra.gmra.mrb[8].mxu1 %vm13666_vm0, %v8833_v29 }
  0xf5   : > { %v8838_v34 = vpop.f32.mrb[2].mxu0  ;;  %v8843_v35 = vpop.f32.mrb[2].mxu1  ;;  %8875 = vmatpush3.msra.mxu0 %v1054_v26  ;;  %8880 = vmatpush3.msra.mxu1 %v1055_v27 }
  0xf6   : > { %v638_v36 = vpop.f32.mrb[3].mxu0  ;;  %v719_v37 = vpop.f32.mrb[3].mxu1  ;;  %8884 = vmatprep.subr.mxu0 %v1056_v32  ;;  %8889 = vmatprep.subr.mxu1 %v1057_v33 }
  0xf7   : > { %8876 = vmatprep.mubr.msk.f32.mxu0 %vm13666_vm0, %v638_v36  ;;  %8881 = vmatprep.mubr.msk.f32.mxu1 %vm13666_vm0, %v719_v37 }
  0xf8   : > { %8877 = vmatmul.mubr.msk.f32.vlgmr.msra.gmra.mrb[10].mxu0 %vm13666_vm0, %v8838_v34  ;;  %8882 = vmatmul.mubr.msk.f32.vlgmr.msra.gmra.mrb[10].mxu1 %vm13666_vm0, %v8843_v35 }
  0xf9   : > { %v8848_v40 = vpop.f32.mrb[4].mxu0  ;;  %v8853_v41 = vpop.f32.mrb[4].mxu1  ;;  %8885 = vmatpush3.msra.mxu0 %v1056_v32  ;;  %8890 = vmatpush3.msra.mxu1 %v1057_v33 }
  0xfa   : > { %v800_v42 = vpop.f32.mrb[5].mxu0  ;;  %v881_v43 = vpop.f32.mrb[5].mxu1  ;;  %8894 = vmatprep.subr.mxu0 %v1058_v38  ;;  %8899 = vmatprep.subr.mxu1 %v1059_v39 }
  0xfb   : > { %8886 = vmatprep.mubr.msk.f32.mxu0 %vm13666_vm0, %v800_v42  ;;  %8891 = vmatprep.mubr.msk.f32.mxu1 %vm13666_vm0, %v881_v43 }
  0xfc   : > { %8887 = vmatmul.mubr.msk.f32.vlgmr.msra.gmra.mrb[12].mxu0 %vm13666_vm0, %v8848_v40  ;;  %8892 = vmatmul.mubr.msk.f32.vlgmr.msra.gmra.mrb[12].mxu1 %vm13666_vm0, %v8853_v41 }
  0xfd   : > { %v8858_v44 = vpop.f32.mrb[6].mxu0  ;;  %v8863_v45 = vpop.f32.mrb[6].mxu1  ;;  %8895 = vmatpush3.msra.mxu0 %v1058_v38  ;;  %8900 = vmatpush3.msra.mxu1 %v1059_v39 }
  0xfe   : > { %v962_v46 = vpop.f32.mrb[7].mxu0  ;;  %v1043_v47 = vpop.f32.mrb[7].mxu1 }
  0xff   : > { %8896 = vmatprep.mubr.msk.f32.mxu0 %vm13666_vm0, %v962_v46  ;;  %8901 = vmatprep.mubr.msk.f32.mxu1 %vm13666_vm0, %v1043_v47 }
 0x100   : > { %8897 = vmatmul.mubr.msk.f32.vlgmr.msra.gmra.mrb[14].mxu0 %vm13666_vm0, %v8858_v44  ;;  %8902 = vmatmul.mubr.msk.f32.vlgmr.msra.gmra.mrb[14].mxu1 %vm13666_vm0, %v8863_v45  ;;  %vm2049_vm0 = vcmask 982016  }
 0x1c7   : > { %v8868_v55 = vpop.f32.mrb[8].mxu0  ;;  %v8873_v56 = vpop.f32.mrb[8].mxu1 }
 0x1c8   : > { %v9946_v58 = vrot.slane %v8868_v55, 1  ;;  %v9948_v59 = vrot.slane %v8873_v56, 1  ;;  %2085 = vrot.lane.b32.xlu1 %v8873_v56, %s13658_s30  ;;  %v1213_v60 = vpop.f32.mrb[9].mxu1  ;;  %2081 = vrot.lane.b32.xlu0 %v8868_v55, %s13658_s30  ;;  %v1132_v61 = vpop.f32.mrb[9].mxu0 }
 0x1c9   : > { %v2472_v62 = vrot.slane %v1213_v60, 1  ;;  %v2469_v63 = vrot.slane %v1132_v61, 1 }
 0x1cb   : > { %v9954_v1 = vpop.f32.mrb[10].mxu0  ;;  %v8883_v2 = vpop.f32.mrb[10].mxu1  ;;  %v9958_v3 = vsel %vm2468_vm1, %v2472_v62, %v9948_v59  ;;  %v9962_v4 = vsel %vm2468_vm1, %v2469_v63, %v9946_v58 }
 0x1cc   : > { %v1844_v6 = vcombine.low %v8868_v55, %v9954_v1  ;;  %v1845_v7 = vcombine.high %v8868_v55, %v9954_v1  ;;  %v9969_v8 = vrot.slane %v9954_v1, 1  ;;  %v1860_v9 = vcombine.low %v8873_v56, %v8883_v2  ;;  %2856 = vrot.lane.b32.xlu1 %v9948_v59, %s13658_s30  ;;  %v9973_v10 = vpop.f32.mrb[11].mxu1  ;;  %2079 = vrot.lane.b32.xlu0 %v1132_v61, %s13658_s30  ;;  %v9976_v11 = vpop.f32.mrb[11].mxu0 }
 0x1cd   : > { %v1861_v12 = vcombine.high %v8873_v56, %v8883_v2  ;;  %v9978_v13 = vrot.slane %v8883_v2, 1  ;;  %v1724_v14 = vcombine.low %v1213_v60, %v9973_v10  ;;  %v1725_v15 = vcombine.high %v1213_v60, %v9973_v10 }
 0x1ce   : > { %v9983_v16 = vrot.slane %v1844_v6, %v9952_v0  ;;  %v9986_v17 = vrot.slane %v1845_v7, %v9952_v0  ;;  %v9993_v20 = vrot.slane %v1860_v9, %v9952_v0  ;;  %v2478_v28 = vrot.slane %v9973_v10, 1 }
 0x1cf   : > { %v9996_v21 = vrot.slane %v1861_v12, %v9952_v0  ;;  %v10002_v24 = vpop.f32.mrb[12].mxu0  ;;  %v10004_v25 = vpop.f32.mrb[12].mxu1  ;;  %v10007_v26 = vrot.slane %v1724_v14, %v9952_v0  ;;  %v10010_v27 = vrot.slane %v1725_v15, %v9952_v0  ;;  %v1708_v29 = vcombine.low %v1132_v61, %v9976_v11 }
 0x1d0   : > { %2093 = vrot.lane.b32.xlu1 %v8883_v2, %s13658_s30  ;;  %2083 = vrot.lane.b32.xlu0 %v1213_v60, %s13658_s30  ;;  %v10016_v30 = vpop.f32.mrb[13].mxu0  ;;  %v10018_v31 = vpop.f32.mrb[13].mxu1  ;;  %v1908_v32 = vcombine.low %v9983_v16, %v9993_v20  ;;  %v1909_v33 = vcombine.high %v9983_v16, %v9993_v20  ;;  %v1709_v36 = vcombine.high %v1132_v61, %v9976_v11  ;;  %v2475_v38 = vrot.slane %v9976_v11, 1 }
 0x1d1   : > { %v1924_v34 = vcombine.low %v9986_v17, %v9996_v21  ;;  %v1925_v35 = vcombine.high %v9986_v17, %v9996_v21  ;;  %v10030_v37 = vrot.slane %v1708_v29, %v9952_v0  ;;  %v10034_v39 = vrot.slane %v10002_v24, 1 }
 0x1d2   : > { %v10037_v40 = vrot.slane %v10004_v25, 1  ;;  %v2481_v41 = vrot.slane %v10016_v30, 1  ;;  %v2484_v42 = vrot.slane %v10018_v31, 1  ;;  %v10047_v45 = vsel %vm2468_vm1, %v2478_v28, %v9978_v13 }
 0x1d3   : > { %v10041_v43 = vpop.f32.mrb[14].mxu0  ;;  %v10043_v44 = vpop.f32.mrb[14].mxu1  ;;  %v10050_v46 = vrot.slane %v1709_v36, %v9952_v0  ;;  %v1772_v47 = vcombine.low %v10030_v37, %v10007_v26  ;;  %v1773_v48 = vcombine.high %v10030_v37, %v10007_v26  ;;  %v10232_v20 = vrot.slane %v1924_v34, %v9964_v5 }
 0x1d4   : > { %v1876_v49 = vcombine.low %v10002_v24, %v10041_v43  ;;  %2854 = vrot.lane.b32.xlu1 %v9958_v3, %s13658_s30  ;;  %v10060_v50 = vpop.f32.mrb[15].mxu1  ;;  %v10062_v51 = vpop.f32.mrb[15].mxu0  ;;  %v1877_v52 = vcombine.high %v10002_v24, %v10041_v43  ;;  %v10067_v53 = vrot.slane %v10041_v43, 1  ;;  %v1892_v54 = vcombine.low %v10004_v25, %v10043_v44  ;;  %2852 = vrot.lane.b32.xlu0 %v9946_v58, %s13658_s30 }
 0x1d5   : > { %v1893_v55 = vcombine.high %v10004_v25, %v10043_v44  ;;  %v1788_v56 = vcombine.low %v10050_v46, %v10010_v27  ;;  %v1789_v57 = vcombine.high %v10050_v46, %v10010_v27  ;;  %v10081_v61 = vrot.slane %v10043_v44, 1 }
 0x1d6   : > { %v1884_v60 = vrot.slane %v1876_v49, %v9952_v0  ;;  %v10084_v62 = vrot.slane %v1877_v52, %v9952_v0  ;;  %v1900_v6 = vrot.slane %v1892_v54, %v9952_v0  ;;  %v1756_v14 = vcombine.low %v10018_v31, %v10060_v50 }
 0x1d7   : > { %v10092_v7 = vrot.slane %v1893_v55, %v9952_v0  ;;  %v1757_v29 = vcombine.high %v10018_v31, %v10060_v50  ;;  %v2490_v36 = vrot.slane %v10060_v50, 1  ;;  %v10133_v2 = vsel %vm2468_vm1, %v2484_v42, %v10037_v40 }
 0x1d8   : > { %2087 = vrot.lane.b32.xlu1 %v9976_v11, %s13658_s30  ;;  %v1940_v15 = vcombine.low %v1884_v60, %v1900_v6  ;;  %v1941_v28 = vcombine.high %v1884_v60, %v1900_v6  ;;  %2089 = vrot.lane.b32.xlu0 %v9954_v1, %s13658_s30  ;;  %v10112_v54 = vrot.slane %v1756_v14, %v9952_v0  ;;  %v2487_v1 = vrot.slane %v10062_v51, 1 }
 0x1d9   : > { %v1956_v49 = vcombine.low %v10084_v62, %v10092_v7  ;;  %v1957_v52 = vcombine.high %v10084_v62, %v10092_v7  ;;  %v1740_v11 = vcombine.low %v10016_v30, %v10062_v51  ;;  %v10117_v55 = vrot.slane %v1757_v29, %v9952_v0 }
 0x1da   : > { %v1741_v60 = vcombine.high %v10016_v30, %v10062_v51  ;;  %v2525_v6 = vcombine.low %v9958_v3, %v10047_v45  ;;  %v2526_v14 = vcombine.high %v9958_v3, %v10047_v45  ;;  %v2477_v29 = vsel %vm2468_vm1, %v2475_v38, %v9969_v8 }
 0x1db   : > { %v1748_v12 = vrot.slane %v1740_v11, %v9952_v0  ;;  %v2510_v3 = vcombine.high %v9962_v4, %v2477_v29  ;;  %v10249_v34 = vrot.slane %v1772_v47, %v9964_v5  ;;  %v10288_v17 = vrot.slane %v1788_v56, %v9964_v5 }
 0x1dc   : > { %2091 = vrot.lane.b32.xlu1 %v9973_v10, %s13658_s30  ;;  %v10136_v23 = vrot.slane %v1741_v60, %v9952_v0  ;;  %2850 = vrot.lane.b32.xlu0 %v9962_v4, %s13658_s30  ;;  %v10141_v11 = vrot.slane %v2525_v6, %v9952_v0  ;;  %v2509_v10 = vcombine.low %v9962_v4, %v2477_v29 }
 0x1dd   : > { %v1804_v19 = vcombine.low %v1748_v12, %v10112_v54  ;;  %v1805_v38 = vcombine.high %v1748_v12, %v10112_v54  ;;  %v10148_v42 = vrot.slane %v2526_v14, %v9952_v0  ;;  %v10152_v60 = vsel %vm2468_vm1, %v2481_v41, %v10034_v39 }
 0x1de   : > { %v1820_v9 = vcombine.low %v10136_v23, %v10117_v55  ;;  %v1821_v6 = vcombine.high %v10136_v23, %v10117_v55  ;;  %v10159_v63 = vrot.slane %v2509_v10, %v9952_v0  ;;  %v10162_v4 = vrot.slane %v2510_v3, %v9952_v0 }
 0x1df   : > { %v10168_v12 = vsel %vm2468_vm1, %v2490_v36, %v10081_v61  ;;  %v10172_v41 = vsel %vm2468_vm1, %v2487_v1, %v10067_v53  ;;  %v10178_v23 = vrot.slane %v1908_v32, %v9964_v5  ;;  %v10181_v54 = vrot.slane %v1940_v15, %v9964_v5 }
 0x1e0   : > { %2864 = vrot.lane.b32.xlu1 %v9978_v13, %s13658_s30  ;;  %2860 = vrot.lane.b32.xlu0 %v9969_v8, %s13658_s30  ;;  %v2573_v36 = vcombine.low %v10159_v63, %v10141_v11  ;;  %v2574_v55 = vcombine.high %v10159_v63, %v10141_v11  ;;  %v2557_v32 = vcombine.low %v10133_v2, %v10168_v12 }
 0x1e1   : > { %v2558_v15 = vcombine.high %v10133_v2, %v10168_v12  ;;  %v2541_v10 = vcombine.low %v10152_v60, %v10172_v41  ;;  %v2542_v3 = vcombine.high %v10152_v60, %v10172_v41  ;;  %v10209_v14 = vrot.slane %v1909_v33, %v9964_v5 }
 0x1e2   : > { %v10212_v1 = vrot.slane %v1941_v28, %v9964_v5  ;;  %v2565_v22 = vrot.slane %v2557_v32, %v9952_v0  ;;  %v10291_v21 = vrot.slane %v1820_v9, %v9964_v5  ;;  %v10303_v62 = vrot.slane %v1789_v57, %v9964_v5 }
 0x1e3   : > { %v10218_v18 = vrot.slane %v2558_v15, %v9952_v0  ;;  %v2549_v63 = vrot.slane %v2541_v10, %v9952_v0  ;;  %v10222_v11 = vrot.slane %v2542_v3, %v9952_v0  ;;  %v10265_v3 = vrot.slane %v1805_v38, %v9964_v5 }
 0x1e4   : > { %2101 = vrot.lane.b32.xlu1 %v10004_v25, %s13658_s30  ;;  %2097 = vrot.lane.b32.xlu0 %v10002_v24, %s13658_s30  ;;  %v10235_v25 = vrot.slane %v1956_v49, %v9964_v5  ;;  %v10252_v49 = vrot.slane %v1804_v19, %v9964_v5  ;;  %v10271_v19 = vrot.slane %v1925_v35, %v9964_v5 }
 0x1e5   : > { %v2605_v28 = vcombine.low %v2549_v63, %v2565_v22  ;;  %v2606_v32 = vcombine.high %v2549_v63, %v2565_v22  ;;  %v2621_v24 = vcombine.low %v10222_v11, %v10218_v18  ;;  %v2622_v15 = vcombine.high %v10222_v11, %v10218_v18 }
 0x1e6   : > { %v10262_v18 = vrot.slane %v1773_v48, %v9964_v5  ;;  %v10310_v9 = vrot.slane %v1821_v6, %v9964_v5  ;;  %v13791_v27 = vcombine.low %v9948_v59, %v9978_v13  ;;  %v13792_v57 = vcombine.low %v10034_v39, %v10067_v53 }
 0x1e7   : > { %v13793_v6 = vcombine.low %v10037_v40, %v10081_v61  ;;  %v10331_v11 = vrot.slane %v2573_v36, %v9964_v5  ;;  %v10414_v48 = vrot.slane %v2622_v15, %v9964_v5 }
 0x1e8   : > { %2862 = vrot.lane.b32.xlu1 %v10047_v45, %s13658_s30  ;;  %v10277_v45 = vrot.slane %v1957_v52, %v9964_v5  ;;  %2858 = vrot.lane.b32.xlu0 %v2477_v29, %s13658_s30  ;;  %v13790_v52 = vcombine.low %v9946_v58, %v9969_v8  ;;  %v2669_v46 = vrot.slane %v13791_v27, %v9952_v0 }
 0x1e9   : > { %v2685_v38 = vrot.slane %v13792_v57, %v9952_v0  ;;  %v2701_v63 = vrot.slane %v13793_v6, %v9952_v0  ;;  %13794 = vst [vmem:[#allocation5_spill] sm:$0xff] %v10331_v11  ;;  %v10340_v27 = vrot.slane %v2605_v28, %v9964_v5  ;;  %v10343_v57 = vrot.slane %v2574_v55, %v9964_v5 }
 0x1ea   : > { %v2653_v29 = vrot.slane %v13790_v52, %v9952_v0  ;;  %v13798_v28 = vcombine.high %v9946_v58, %v9969_v8  ;;  %v13801_v8 = vcombine.high %v9948_v59, %v9978_v13  ;;  %v13807_v58 = vcombine.high %v10162_v4, %v10148_v42  ;;  %13809 = vst [vmem:[#allocation14_spill] sm:$0xff] %v10414_v48 }
 0x1eb   : > { %13795 = vst [vmem:[#allocation6_spill] sm:$0xff] %v10340_v27  ;;  %13796 = vst [vmem:[#allocation7_spill] sm:$0xff] %v10343_v57  ;;  %v2741_v6 = vcombine.low %v2685_v38, %v2701_v63  ;;  %v2742_v36 = vcombine.high %v2685_v38, %v2701_v63  ;;  %v13802_v38 = vcombine.high %v10034_v39, %v10067_v53 }
 0x1ec   : > { %2099 = vrot.lane.b32.xlu1 %v10018_v31, %s13658_s30  ;;  %2095 = vrot.lane.b32.xlu0 %v10016_v30, %s13658_s30  ;;  %v2709_v37 = vcombine.low %v2653_v29, %v2669_v46  ;;  %v2710_v7 = vcombine.high %v2653_v29, %v2669_v46  ;;  %v10350_v31 = vrot.slane %v2606_v32, %v9964_v5 }
 0x1ed   : > { %v2660_v52 = vrot.slane %v13798_v28, %v9952_v0  ;;  %v10362_v29 = vrot.slane %v2741_v6, %v9964_v5  ;;  %v10368_v32 = vrot.slane %v2742_v36, %v9964_v5  ;;  %v13803_v63 = vcombine.high %v10037_v40, %v10081_v61 }
 0x1ee   : > { %13797 = vst [vmem:[#allocation8_spill] sm:$0xff] %v10350_v31  ;;  %v10359_v55 = vrot.slane %v2709_v37, %v9964_v5  ;;  %v10365_v46 = vrot.slane %v2710_v7, %v9964_v5  ;;  %v2676_v37 = vrot.slane %v13801_v8, %v9952_v0  ;;  %v2692_v7 = vrot.slane %v13802_v38, %v9952_v0 }
 0x1ef   : > { %13800 = vst [vmem:[#allocation10_spill] sm:$0xff] %v10368_v32  ;;  %v2708_v6 = vrot.slane %v13803_v63, %v9952_v0  ;;  %v13804_v38 = vcombine.low %v10162_v4, %v10148_v42  ;;  %v10401_v63 = vrot.slane %v2621_v24, %v9964_v5  ;;  %v10411_v13 = vrot.slane %v13807_v58, %v9964_v5 }
 0x1f0   : > { %2872 = vrot.lane.b32.xlu1 %v10037_v40, %s13658_s30  ;;  %13799 = vst [vmem:[#allocation9_spill] sm:$0xff] %v10365_v46  ;;  %2868 = vrot.lane.b32.xlu0 %v10034_v39, %s13658_s30  ;;  %v2725_v8 = vcombine.low %v2660_v52, %v2676_v37  ;;  %v13814_v11 = vcombine.high %v10178_v23, %v10181_v54 }
 0x1f1   : > { %v2757_v39 = vcombine.low %v2692_v7, %v2708_v6  ;;  %v10398_v40 = vrot.slane %v13804_v38, %v9964_v5  ;;  %13806 = vst [vmem:[#allocation12_spill] sm:$0xff] %v10401_v63  ;;  %13808 = vst [vmem:[#allocation13_spill] sm:$0xff] %v10411_v13  ;;  %v2726_v38 = vcombine.high %v2660_v52, %v2676_v37 }
 0x1f2   : > { %v10419_v24 = vrot.slane %v2725_v8, %v9964_v5  ;;  %v2758_v15 = vcombine.high %v2692_v7, %v2708_v6 }
 0x1f3   : > { %13805 = vst [vmem:[#allocation11_spill] sm:$0xff] %v10398_v40  ;;  %v10439_v37 = vrot.slane %v2726_v38, %v9964_v5 }
 0x1f4   : > { %2109 = vrot.lane.b32.xlu1 %v10043_v44, %s13658_s30  ;;  %2105 = vrot.lane.b32.xlu0 %v10041_v43, %s13658_s30  ;;  %13810 = vst [vmem:[#allocation15_spill] sm:$0xff] %v10419_v24  ;;  %v10422_v44 = vrot.slane %v2757_v39, %v9964_v5  ;;  %v10442_v8 = vrot.slane %v2758_v15, %v9964_v5 }
 0x1f5   : > { %13812 = vst [vmem:[#allocation17_spill] sm:$0xff] %v10439_v37 }
 0x1f6   : > { %13811 = vst [vmem:[#allocation16_spill] sm:$0xff] %v10422_v44  ;;  %13813 = vst [vmem:[#allocation18_spill] sm:$0xff] %v10442_v8 }
 0x1f8   : > { %2870 = vrot.lane.b32.xlu1 %v10133_v2, %s13658_s30  ;;  %2866 = vrot.lane.b32.xlu0 %v10152_v60, %s13658_s30  ;;  %v9663_v2 = vmov 0  }
 0x1f9   : > { %9154 = vset.pattern.permute.xlu0 %v9663_v2  ;;  %3286 = vmatprep.mubr.bf16.mxu0 %v9663_v2 }
 0x1fa   : > { %6809 = vmatprep.mubr.bf16.mxu1 %v9663_v2  ;;  %9395 = vset.pattern.permute.xlu1 %v9663_v2 }
 0x1fc   : > { %2107 = vrot.lane.b32.xlu1 %v10060_v50, %s13658_s30  ;;  %2103 = vrot.lane.b32.xlu0 %v10062_v51, %s13658_s30 }
 0x200   : > { %2878 = vrot.lane.b32.xlu1 %v10168_v12, %s13658_s30  ;;  %2874 = vrot.lane.b32.xlu0 %v10172_v41, %s13658_s30 }
 0x204   : > { %2880 = vrot.lane.b32.xlu1 %v10081_v61, %s13658_s30  ;;  %2876 = vrot.lane.b32.xlu0 %v10067_v53, %s13658_s30  ;;  %s9673_s30 = smov 60  }
 0x23a   : > { %v2086_v50 = vpop.permute.xlu1 %2085  ;;  %v2082_v60 = vpop.permute.xlu0 %2081 }
 0x23e   : > { %v10460_v51 = vpop.permute.xlu1 %2856  ;;  %v10462_v6 = vpop.permute.xlu0 %2079 }
 0x242   : > { %v2094_v12 = vpop.permute.xlu1 %2093  ;;  %v10464_v39 = vpop.permute.xlu0 %2083 }
 0x243   : > { %v2279_v47 = vcombine.low %v2086_v50, %v2094_v12  ;;  %v2280_v33 = vcombine.high %v2086_v50, %v2094_v12 }
 0x245   : > { %v2287_v37 = vrot.slane %v2279_v47, %v9952_v0 }
 0x246   : > { %v10466_v41 = vpop.permute.xlu1 %2854  ;;  %v10468_v61 = vpop.permute.xlu0 %2852 }
 0x24a   : > { %v10470_v38 = vpop.permute.xlu1 %2087  ;;  %v2090_v53 = vpop.permute.xlu0 %2089 }
 0x24b   : > { %v2263_v28 = vcombine.low %v2082_v60, %v2090_v53  ;;  %v2264_v35 = vcombine.high %v2082_v60, %v2090_v53 }
 0x24d   : > { %v2271_v22 = vrot.slane %v2263_v28, %v9952_v0  ;;  %v10497_v40 = vrot.slane %v2264_v35, %v9952_v0 }
 0x24e   : > { %v10472_v15 = vpop.permute.xlu1 %2091  ;;  %v10474_v52 = vpop.permute.xlu0 %2850 }
 0x24f   : > { %v2143_v48 = vcombine.low %v10464_v39, %v10472_v15  ;;  %v2327_v28 = vcombine.low %v2271_v22, %v2287_v37  ;;  %v2328_v35 = vcombine.high %v2271_v22, %v2287_v37 }
 0x251   : > { %v2335_v37 = vrot.slane %v2327_v28, %v9964_v5  ;;  %v2342_v57 = vrot.slane %v2328_v35, %v9964_v5 }
 0x252   : > { %v10476_v2 = vpop.permute.xlu1 %2864  ;;  %v10478_v7 = vpop.permute.xlu0 %2860 }
 0x256   : > { %v2102_v4 = vpop.permute.xlu1 %2101  ;;  %v2098_v58 = vpop.permute.xlu0 %2097 }
 0x25a   : > { %v10480_v42 = vpop.permute.xlu1 %2862  ;;  %v10482_v30 = vpop.permute.xlu0 %2858 }
 0x25e   : > { %v10484_v43 = vpop.permute.xlu1 %2099  ;;  %v10486_v59 = vpop.permute.xlu0 %2095 }
 0x262   : > { %v10488_v36 = vpop.permute.xlu1 %2872  ;;  %v10490_v56 = vpop.permute.xlu0 %2868 }
 0x266   : > { %v2110_v26 = vpop.permute.xlu1 %2109  ;;  %v2106_v8 = vpop.permute.xlu0 %2105 }
 0x267   : > { %v2311_v10 = vcombine.low %v2102_v4, %v2110_v26  ;;  %v2312_v16 = vcombine.high %v2102_v4, %v2110_v26  ;;  %v2295_v13 = vcombine.low %v2098_v58, %v2106_v8  ;;  %v2296_v63 = vcombine.high %v2098_v58, %v2106_v8 }
 0x268   : > { %v2127_v26 = vcombine.low %v10462_v6, %v10470_v38  ;;  %v10512_v58 = vrot.slane %v2280_v33, %v9952_v0 }
 0x269   : > { %v2319_v44 = vrot.slane %v2311_v10, %v9952_v0  ;;  %v10501_v60 = vrot.slane %v2312_v16, %v9952_v0  ;;  %v2303_v4 = vrot.slane %v2295_v13, %v9952_v0  ;;  %v10507_v47 = vrot.slane %v2296_v63, %v9952_v0 }
 0x26a   : > { %v10509_v50 = vpop.permute.xlu1 %2870  ;;  %v10514_v8 = vpop.permute.xlu0 %2866  ;;  %v10517_v16 = vrot.slane %v2143_v48, %v9952_v0  ;;  %v2343_v13 = vcombine.low %v10497_v40, %v10512_v58  ;;  %v2128_v63 = vcombine.high %v10462_v6, %v10470_v38  ;;  %v10526_v33 = vrot.slane %v2127_v26, %v9952_v0 }
 0x26b   : > { %v2359_v10 = vcombine.low %v2303_v4, %v2319_v44  ;;  %v2360_v12 = vcombine.high %v2303_v4, %v2319_v44  ;;  %v2375_v53 = vcombine.low %v10507_v47, %v10501_v60  ;;  %v2144_v44 = vcombine.high %v10464_v39, %v10472_v15 }
 0x26c   : > { %v2191_v38 = vcombine.low %v10526_v33, %v10517_v16  ;;  %v10545_v15 = vrot.slane %v2343_v13, %v9964_v5 }
 0x26d   : > { %v2367_v48 = vrot.slane %v2359_v10, %v9964_v5  ;;  %v2374_v24 = vrot.slane %v2360_v12, %v9964_v5  ;;  %v10536_v6 = vrot.slane %v2375_v53, %v9964_v5 }
 0x26e   : > { %v2108_v22 = vpop.permute.xlu1 %2107  ;;  %v2104_v31 = vpop.permute.xlu0 %2103 }
 0x26f   : > { %v2175_v4 = vcombine.low %v10484_v43, %v2108_v22  ;;  %v2159_v28 = vcombine.low %v10486_v59, %v2104_v31  ;;  %v2392_v26 = vcombine.high %v2335_v37, %v2367_v48  ;;  %v2391_v10 = vcombine.low %v2335_v37, %v2367_v48 }
 0x270   : > { %v2176_v12 = vcombine.high %v10484_v43, %v2108_v22  ;;  %v2160_v39 = vcombine.high %v10486_v59, %v2104_v31  ;;  %v13815_v37 = vcombine.low %v10178_v23, %v10181_v54  ;;  %v2393_v43 = vcombine.low %v2342_v57, %v2374_v24 }
 0x271   : > { %v2183_v27 = vrot.slane %v2175_v4, %v9952_v0  ;;  %v2167_v35 = vrot.slane %v2159_v28, %v9952_v0  ;;  %v9019_v32 = vpack.i.bf16 %v2392_v26, %v13814_v11  ;;  %v2344_v22 = vcombine.high %v10497_v40, %v10512_v58 }
 0x272   : > { %v10548_v53 = vpop.permute.xlu1 %2878  ;;  %v9014_v48 = vpack.i.bf16 %v2391_v10, %v13815_v37  ;;  %v10559_v31 = vrot.slane %v2144_v44, %v9952_v0  ;;  %v10563_v13 = vpop.permute.xlu0 %2874  ;;  %v2396_v4 = vcombine.high %v10545_v15, %v10536_v6  ;;  %v2914_v11 = vcombine.low %v10466_v41, %v10480_v42 }
 0x273   : > { %v2946_v59 = vcombine.low %v10509_v50, %v10548_v53  ;;  %v2898_v23 = vcombine.low %v10474_v52, %v10482_v30  ;;  %v2223_v54 = vcombine.low %v2167_v35, %v2183_v27  ;;  %9020 = vrot.lane.b32.xlu1 %v9019_v32, %s9664_s11  ;;  %v10573_v40 = vrot.slane %v2191_v38, %v9964_v5 }
 0x274   : > { %v10576_v58 = vrot.slane %v2176_v12, %v9952_v0  ;;  %v10579_v44 = vrot.slane %v2160_v39, %v9952_v0  ;;  %v2224_v28 = vcombine.high %v2167_v35, %v2183_v27  ;;  %v2930_v26 = vcombine.low %v10514_v8, %v10563_v13  ;;  %9015 = vrot.lane.b32.xlu0 %v9014_v48, %s9665_s18 }
 0x275   : > { %13816 = vst [vmem:[#allocation19_spill] sm:$0xff] %v10573_v40  ;;  %v2376_v10 = vcombine.high %v10507_v47, %v10501_v60  ;;  %v13817_v38 = vcombine.low %v10209_v14, %v10212_v1  ;;  %v2394_v37 = vcombine.high %v2342_v57, %v2374_v24  ;;  %v10592_v39 = vrot.slane %v2223_v54, %v9964_v5 }
 0x276   : > { %v10586_v32 = vpop.permute.xlu1 %2880  ;;  %v2192_v27 = vcombine.high %v10526_v33, %v10517_v16  ;;  %v10597_v35 = vrot.slane %v2946_v59, %v9952_v0  ;;  %v10600_v48 = vrot.slane %v2930_v26, %v9952_v0  ;;  %v10602_v60 = vpop.permute.xlu0 %2876  ;;  %v13819_v47 = vcombine.high %v10232_v20, %v10235_v25 }
 0x277   : > { %v9024_v12 = vpack.i.bf16 %v2393_v43, %v13817_v38  ;;  %13818 = vst [vmem:[#allocation20_spill] sm:$0xff] %v10592_v39  ;;  %v10608_v57 = vrot.slane %v2914_v11, %v9952_v0  ;;  %v10611_v24 = vrot.slane %v2898_v23, %v9952_v0  ;;  %v3082_v16 = vcombine.low %v10488_v36, %v10586_v32 }
 0x278   : > { %v9039_v46 = vpack.i.bf16 %v2396_v4, %v13819_v47  ;;  %v2142_v43 = vrot.slane %v2128_v63, %v9952_v0  ;;  %v2239_v59 = vcombine.low %v10579_v44, %v10576_v58  ;;  %v3066_v4 = vcombine.low %v10490_v56, %v10602_v60 }
 0x279   : > { %9025 = vrot.lane.b32.xlu1 %v9024_v12, %s13664_s12  ;;  %v2238_v11 = vrot.slane %v2224_v28, %v9964_v5  ;;  %v13820_v23 = vcombine.high %v10209_v14, %v10212_v1  ;;  %v2395_v26 = vcombine.low %v10545_v15, %v10536_v6  ;;  %v2358_v63 = vrot.slane %v2344_v22, %v9964_v5 }
 0x27a   : > { %9040 = vrot.lane.b32.xlu0 %v9039_v46, %s13661_s20  ;;  %v2390_v38 = vrot.slane %v2376_v10, %v9964_v5  ;;  %v2207_v12 = vcombine.low %v2142_v43, %v10559_v31  ;;  %v2994_v47 = vcombine.low %v10600_v48, %v10597_v35  ;;  %v2256_v46 = vcombine.high %v10573_v40, %v10592_v39  ;;  %s9675_s20 = smov 75  }
 0x27b   : > { %v9029_v54 = vpack.i.bf16 %v2394_v37, %v13820_v23  ;;  %v2206_v28 = vrot.slane %v2192_v27, %v9964_v5  ;;  %v3034_v1 = vcombine.low %v10468_v61, %v10478_v7  ;;  %v3050_v14 = vcombine.low %v10460_v51, %v10476_v2 }
 0x27c   : > { %v2962_v6 = vcombine.low %v10611_v24, %v10608_v57  ;;  %v3090_v15 = vrot.slane %v3082_v16, %v9952_v0  ;;  %v3074_v22 = vrot.slane %v3066_v4, %v9952_v0  ;;  %v13821_v10 = vcombine.high %v10249_v34, %v10252_v49 }
 0x27d   : > { %9030 = vrot.lane.b32.xlu1 %v9029_v54, %s13782_s21  ;;  %v2258_v27 = vcombine.high %v2206_v28, %v2238_v11  ;;  %v2247_v23 = vrot.slane %v2239_v59, %v9964_v5  ;;  %v2240_v33 = vcombine.high %v10579_v44, %v10576_v58  ;;  %v13822_v39 = vcombine.low %v10232_v20, %v10235_v25 }
 0x27e   : > { %v9049_v37 = vpack.i.bf16 %v2256_v46, %v13821_v10  ;;  %v2397_v16 = vcombine.low %v2358_v63, %v2390_v38  ;;  %v2215_v4 = vrot.slane %v2207_v12, %v9964_v5  ;;  %v10659_v54 = vrot.slane %v2994_v47, %v9964_v5 }
 0x27f   : > { %v9034_v40 = vpack.i.bf16 %v2395_v26, %v13822_v39  ;;  %v2208_v46 = vcombine.high %v2142_v43, %v10559_v31  ;;  %v3042_v59 = vrot.slane %v3034_v1, %v9952_v0  ;;  %v3058_v10 = vrot.slane %v3050_v14, %v9952_v0 }
 0x280   : > { %9050 = vrot.lane.b32.xlu0 %v9049_v37, %s9669_s25  ;;  %v10666_v20 = vrot.slane %v2962_v6, %v9964_v5  ;;  %v3130_v25 = vcombine.low %v3074_v22, %v3090_v15  ;;  %v13823_v58 = vcombine.high %v10262_v18, %v10265_v3  ;;  %v2259_v39 = vcombine.low %v2215_v4, %v2247_v23 }
 0x281   : > { %9035 = vrot.lane.b32.xlu1 %v9034_v40, %s9670_s26  ;;  %v13824_v26 = vcombine.low %v10271_v19, %v10277_v45  ;;  %v2257_v43 = vcombine.low %v2206_v28, %v2238_v11  ;;  %v2254_v63 = vrot.slane %v2240_v33, %v9964_v5  ;;  %v3098_v40 = vcombine.low %v3042_v59, %v3058_v10 }
 0x282   : > { %v9059_v44 = vpack.i.bf16 %v2258_v27, %v13823_v58  ;;  %v3026_v38 = vcombine.low %v10666_v20, %v10659_v54  ;;  %v2222_v12 = vrot.slane %v2208_v46, %v9964_v5  ;;  %v3083_v47 = vcombine.high %v10488_v36, %v10586_v32 }
 0x283   : > { %v9044_v31 = vpack.i.bf16 %v2397_v16, %v13824_v26  ;;  %v3067_v19 = vcombine.high %v10490_v56, %v10602_v60  ;;  %v13825_v45 = vcombine.low %v10288_v17, %v10291_v21  ;;  %v2260_v11 = vcombine.high %v2215_v4, %v2247_v23 }
 0x284   : > { %9060 = vrot.lane.b32.xlu0 %v9059_v44, %s9671_s27  ;;  %v3131_v28 = vcombine.high %v3074_v22, %v3090_v15  ;;  %v13826_v1 = vcombine.low %v10262_v18, %v10265_v3  ;;  %v2261_v6 = vcombine.low %v2222_v12, %v2254_v63  ;;  %v3138_v37 = vrot.slane %v3130_v25, %v9964_v5 }
 0x285   : > { %9045 = vrot.lane.b32.xlu1 %v9044_v31, %s13660_s28  ;;  %v9064_v33 = vpack.i.bf16 %v2259_v39, %v13825_v45  ;;  %v3035_v27 = vcombine.high %v10468_v61, %v10478_v7  ;;  %v3051_v56 = vcombine.high %v10460_v51, %v10476_v2  ;;  %v3099_v36 = vcombine.high %v3042_v59, %v3058_v10  ;;  %s13662_s28 = smov 30   ;;  %v13836_v45 = vld [vmem:[#allocation6_spill] sm:$0xff] }
 0x286   : > { %v9054_v14 = vpack.i.bf16 %v2257_v43, %v13826_v1  ;;  %v2947_v32 = vcombine.high %v10509_v50, %v10548_v53  ;;  %v3106_v18 = vrot.slane %v3098_v40, %v9964_v5  ;;  %v2931_v3 = vcombine.high %v10514_v8, %v10563_v13  ;;  %v13832_v43 = vld [vmem:[#allocation9_spill] sm:$0xff] }
 0x287   : > { %v10703_v7 = vrot.slane %v3083_v47, %v9952_v0  ;;  %v13827_v61 = vcombine.high %v10288_v17, %v10291_v21  ;;  %v2262_v51 = vcombine.high %v2222_v12, %v2254_v63  ;;  %v10709_v2 = vrot.slane %v3067_v19, %v9952_v0  ;;  %v13833_v63 = vld [vmem:[#allocation10_spill] sm:$0xff] }
 0x288   : > { %9065 = vrot.lane.b32.xlu0 %v9064_v33, %s9673_s30  ;;  %v13828_v50 = vcombine.low %v10303_v62, %v10310_v9  ;;  %v3163_v15 = vcombine.high %v3106_v18, %v3138_v37  ;;  %v3145_v22 = vrot.slane %v3131_v28, %v9964_v5  ;;  %v2915_v8 = vcombine.high %v10466_v41, %v10480_v42 }
 0x289   : > { %9055 = vrot.lane.b32.xlu1 %v9054_v14, %s13662_s28  ;;  %v9069_v60 = vpack.i.bf16 %v2260_v11, %v13827_v61  ;;  %v2899_v13 = vcombine.high %v10474_v52, %v10482_v30  ;;  %v3049_v17 = vrot.slane %v3035_v27, %v9952_v0  ;;  %v3065_v21 = vrot.slane %v3051_v56, %v9952_v0  ;;  %s13663_s28 = smov 90  }
 0x28a   : > { %v9074_v53 = vpack.i.bf16 %v2261_v6, %v13828_v50  ;;  %v2961_v23 = vrot.slane %v2947_v32, %v9952_v0  ;;  %v3113_v16 = vrot.slane %v3099_v36, %v9964_v5  ;;  %v2945_v4 = vrot.slane %v2931_v3, %v9952_v0  ;;  %v13839_v36 = vld [vmem:[#allocation7_spill] sm:$0xff]  ;;  %v13840_v32 = vld [vmem:[#allocation8_spill] sm:$0xff] }
 0x28b   : > { %v2995_v42 = vcombine.high %v10600_v48, %v10597_v35  ;;  %v13829_v30 = vcombine.high %v10303_v62, %v10310_v9  ;;  %v3162_v41 = vcombine.low %v3106_v18, %v3138_v37  ;;  %v3146_v46 = vcombine.low %v10709_v2, %v10703_v7  ;;  %v13843_v50 = vld [vmem:[#allocation16_spill] sm:$0xff] }
 0x28c   : > { %9070 = vrot.lane.b32.xlu0 %v9069_v60, %s9675_s20  ;;  %v13830_v59 = vcombine.high %v10359_v55, %v10362_v29  ;;  %v3164_v25 = vcombine.low %v3113_v16, %v3145_v22  ;;  %v2929_v58 = vrot.slane %v2915_v8, %v9952_v0  ;;  %v2913_v44 = vrot.slane %v2899_v13, %v9952_v0 }
 0x28d   : > { %9075 = vrot.lane.b32.xlu1 %v9074_v53, %s13663_s28  ;;  %v9079_v52 = vpack.i.bf16 %v2262_v51, %v13829_v30  ;;  %v2963_v35 = vcombine.high %v10611_v24, %v10608_v57  ;;  %s9677_s28 = smov 105   ;;  %v3114_v62 = vcombine.low %v3049_v17, %v3065_v21  ;;  %v3010_v9 = vcombine.low %v2945_v4, %v2961_v23  ;;  %v13842_v51 = vld [vmem:[#allocation15_spill] sm:$0xff] }
 0x28e   : > { %v9089_v10 = vpack.i.bf16 %v3163_v15, %v13830_v59  ;;  %v13831_v48 = vcombine.low %v10359_v55, %v10362_v29  ;;  %v3027_v26 = vcombine.high %v10666_v20, %v10659_v54  ;;  %v3009_v31 = vrot.slane %v2995_v42, %v9964_v5  ;;  %v13835_v29 = vld [vmem:[#allocation5_spill] sm:$0xff] }
 0x28f   : > { %v13834_v40 = vcombine.low %v13832_v43, %v13833_v63  ;;  %v3165_v24 = vcombine.high %v3113_v16, %v3145_v22  ;;  %v3154_v12 = vrot.slane %v3146_v46, %v9964_v5  ;;  %v2978_v47 = vcombine.low %v2913_v44, %v2929_v58  ;;  %v13846_v16 = vld [vmem:[#allocation12_spill] sm:$0xff] }
 0x290   : > { %9080 = vrot.lane.b32.xlu0 %v9079_v52, %s9677_s28  ;;  %v9084_v39 = vpack.i.bf16 %v3162_v41, %v13831_v48  ;;  %v2977_v19 = vrot.slane %v2963_v35, %v9964_v5  ;;  %v3122_v55 = vrot.slane %v3114_v62, %v9964_v5  ;;  %v13837_v33 = vcombine.high %v13835_v29, %v13836_v45  ;;  %v13853_v48 = vld [vmem:[#allocation13_spill] sm:$0xff] }
 0x291   : > { %9090 = vrot.lane.b32.xlu1 %v9089_v10, %s9664_s11  ;;  %v9094_v57 = vpack.i.bf16 %v3164_v25, %v13834_v40  ;;  %v3018_v1 = vrot.slane %v3010_v9, %v9964_v5  ;;  %v13838_v14 = vcombine.high %v13832_v43, %v13833_v63  ;;  %v2986_v27 = vrot.slane %v2978_v47, %v9964_v5  ;;  %s8914_s11 = smul.u32 96, %s9834_s29  ;;  %s9682_s29 = smov 98  }
 0x292   : > { %v9109_v11 = vpack.i.bf16 %v3027_v26, %v13837_v33  ;;  %v3029_v28 = vcombine.high %v2977_v19, %v3009_v31  ;;  %v3166_v37 = vcombine.low %v3122_v55, %v3154_v12  ;;  %v3011_v56 = vcombine.high %v2945_v4, %v2961_v23  ;;  %v13845_v23 = vld [vmem:[#allocation11_spill] sm:$0xff] }
 0x293   : > { %v9099_v6 = vpack.i.bf16 %v3165_v24, %v13838_v14  ;;  %v13841_v18 = vcombine.high %v13839_v36, %v13840_v32  ;;  %v3030_v61 = vcombine.low %v2986_v27, %v3018_v1  ;;  %v3147_v60 = vcombine.high %v10709_v2, %v10703_v7  ;;  %v13857_v24 = vld [vmem:[#allocation18_spill] sm:$0xff] }
 0x294   : > { %9085 = vrot.lane.b32.xlu0 %v9084_v39, %s9665_s18  ;;  %v13844_v53 = vcombine.low %v13842_v51, %v13843_v50  ;;  %v3028_v22 = vcombine.low %v2977_v19, %v3009_v31  ;;  %v2979_v8 = vcombine.high %v2913_v44, %v2929_v58  ;;  %v3115_v13 = vcombine.high %v3049_v17, %v3065_v21  ;;  %v13854_v39 = vld [vmem:[#allocation14_spill] sm:$0xff]  ;;  %s13778_s18 = smov 126  }
 0x295   : > { %9095 = vrot.lane.b32.xlu1 %v9094_v57, %s13664_s12  ;;  %v9124_v3 = vpack.i.bf16 %v3029_v28, %v13841_v18  ;;  %v13847_v4 = vcombine.low %v13845_v23, %v13846_v16  ;;  %v3031_v30 = vcombine.high %v2986_v27, %v3018_v1  ;;  %v3025_v52 = vrot.slane %v3011_v56, %v9964_v5  ;;  %s13849_s12 = smov 30   ;;  %v13856_v57 = vld [vmem:[#allocation17_spill] sm:$0xff]  ;;  %v3244_v56 = vld [vmem:[%s13624_s5] sm:$0xf] }
 0x296   : > { %v9104_v15 = vpack.i.bf16 %v3166_v37, %v13844_v53  ;;  %v13848_v7 = vcombine.low %v13839_v36, %v13840_v32  ;;  %v3167_v41 = vcombine.high %v3122_v55, %v3154_v12  ;;  %v3161_v46 = vrot.slane %v3147_v60, %v9964_v5 }
 0x297   : > { %v9129_v42 = vpack.i.bf16 %v3030_v61, %v13847_v4  ;;  %v2993_v17 = vrot.slane %v2979_v8, %v9964_v5  ;;  %v3129_v21 = vrot.slane %v3115_v13, %v9964_v5  ;;  %v13850_v59 = vcombine.high %v13845_v23, %v13846_v16 }
 0x298   : > { %9110 = vrot.lane.b32.xlu0 %v9109_v11, %s9669_s25  ;;  %v9114_v2 = vpack.i.bf16 %v3028_v22, %v13848_v7  ;;  %v13851_v58 = vcombine.high %v13842_v51, %v13843_v50  ;;  %v13855_v26 = vcombine.low %v13853_v48, %v13854_v39  ;;  %v13858_v12 = vcombine.low %v13856_v57, %v13857_v24 }
 0x299   : > { %9100 = vrot.lane.b32.xlu1 %v9099_v6, %s13782_s21  ;;  %v9134_v10 = vpack.i.bf16 %v3031_v30, %v13850_v59  ;;  %v3032_v25 = vcombine.low %v2993_v17, %v3025_v52  ;;  %v3168_v35 = vcombine.low %v3129_v21, %v3161_v46  ;;  %v3033_v43 = vcombine.high %v2993_v17, %v3025_v52  ;;  %s9698_s21 = smov 117  }
 0x29a   : > { %v9119_v44 = vpack.i.bf16 %v3167_v41, %v13851_v58  ;;  %v13861_v33 = vcombine.high %v13853_v48, %v13854_v39 }
 0x29b   : > { %v9139_v31 = vpack.i.bf16 %v3032_v25, %v13855_v26  ;;  %v9149_v47 = vpack.i.bf16 %v3168_v35, %v13858_v12 }
 0x29c   : > { %9125 = vrot.lane.b32.xlu0 %v9124_v3, %s9671_s27  ;;  %s10788_s27 = scalar_lea.vmem %s13620_s1, %s8914_s11  ;;  %v9144_v11 = vpack.i.bf16 %v3033_v43, %v13861_v33  ;;  %s9681_s11 = smov 53  }
 0x29d   : > { %9105 = vrot.lane.b32.xlu1 %v9104_v15, %s9670_s26  ;;  %v3477_v62 = vld [vmem:[%s10788_s27] sm:$0xff]  ;;  %v3478_v9 = vld [vmem:[%s10788_s27 + $0x8] sm:$0xff]  ;;  %v3483_v19 = vld [vmem:[%s10788_s27 + $0x30] sm:$0xff] }
 0x29e   : > { %v3502_v63 = vrot.slane %v3477_v62, 2  ;;  %v3503_v40 = vrot.slane %v3478_v9, 2  ;;  %v3484_v55 = vld [vmem:[%s10788_s27 + $0x38] sm:$0xff]  ;;  %v3481_v14 = vld [vmem:[%s10788_s27 + $0x20] sm:$0xff]  ;;  %v3512_v6 = vrot.slane %v3483_v19, 2  ;;  %v3486_v3 = vld [vmem:[%s10788_s27 + $0x48] sm:$0xff] }
 0x29f   : > { %v3480_v1 = vld [vmem:[%s10788_s27 + $0x18] sm:$0xff]  ;;  %v3513_v37 = vrot.slane %v3484_v55, 2  ;;  %v3479_v27 = vld [vmem:[%s10788_s27 + $0x10] sm:$0x3]  ;;  %v3508_v32 = vrot.slane %v3481_v14, 2  ;;  %v3517_v53 = vrot.slane %v3486_v3, 2 }
 0x2a0   : > { %9130 = vrot.lane.b32.xlu0 %v9129_v42, %s9673_s30  ;;  %s13852_s30 = smov 67   ;;  %v3504_v28 = vsel %vm3501_vm2, %v3502_v63, %v3503_v40  ;;  %v3507_v36 = vrot.slane %v3480_v1, 2  ;;  %v3487_v61 = vld [vmem:[%s10788_s27 + $0x50] sm:$0xff]  ;;  %v3505_v60 = vrot.slane %v3479_v27, 2  ;;  %v3485_v51 = vld [vmem:[%s10788_s27 + $0x40] sm:$0x3] }
 0x2a1   : > { %9115 = vrot.lane.b32.xlu1 %v9114_v2, %s13849_s12  ;;  %s13859_s12 = smov 90   ;;  %v3514_v18 = vsel %vm3501_vm2, %v3512_v6, %v3513_v37  ;;  %v3518_v15 = vrot.slane %v3487_v61, 2  ;;  %v3482_v8 = vld [vmem:[%s10788_s27 + $0x28] sm:$0x3]  ;;  %v3515_v13 = vrot.slane %v3485_v51, 2 }
 0x2a2   : > { %v3509_v50 = vsel %vm3501_vm2, %v3507_v36, %v3508_v32  ;;  %v3506_v22 = vsel %vm3501_vm2, %v3503_v40, %v3505_v60  ;;  %v3510_v16 = vrot.slane %v3482_v8, 2  ;;  %v3488_v42 = vld [vmem:[%s10788_s27 + $0x58] sm:$0x3]  ;;  %v13865_v8 = vcombine.low %v10249_v34, %v10252_v49  ;;  %s9683_s27 = smov 23  }
 0x2a3   : > { %v3519_v23 = vsel %vm3501_vm2, %v3517_v53, %v3518_v15  ;;  %v3516_v4 = vsel %vm3501_vm2, %v3513_v37, %v3515_v13  ;;  %v3520_v52 = vrot.slane %v3488_v42, 2  ;;  %v13863_v53 = vld [vmem:[#allocation20_spill] sm:$0xff] }
 0x2a4   : > { %9135 = vrot.lane.b32.xlu0 %v9134_v10, %s9675_s20  ;;  %s13860_s20 = smov 82   ;;  %v3511_v30 = vsel %vm3501_vm2, %v3508_v32, %v3510_v16 }
 0x2a5   : > { %9120 = vrot.lane.b32.xlu1 %v9119_v44, %s13852_s30  ;;  %v3521_v7 = vsel %vm3501_vm2, %v3518_v15, %v3520_v52  ;;  %s9684_s30 = smov 68  }
 0x2a8   : > { %9140 = vrot.lane.b32.xlu0 %v9139_v31, %s13859_s12  ;;  %s9679_s12 = smov 83  }
 0x2a9   : > { %9150 = vrot.lane.b32.xlu1 %v9149_v47, %s13860_s20  ;;  %s13667_s20 = smov 113  }
 0x2ac   : > { %9145 = vrot.lane.b32.xlu0 %v9144_v11, %s9677_s28  ;;  %s13867_s28 = smov 127  }
 0x2ad   : > { %3522 = vrot.lane.b32.xlu1 %v3504_v28, %s13778_s18 }
 0x2b0   : > { %3247 = vperm.xlu0 %9154, %v3244_v56  }
 0x2b1   : > { %3530 = vrot.lane.b32.xlu1 %v3514_v18, %s13778_s18 }
 0x2b4   : > { %3526 = vrot.lane.b32.xlu0 %v3509_v50, %s13778_s18  ;;  %v13862_v50 = vld [vmem:[#allocation19_spill] sm:$0xff] }
 0x2b5   : > { %3524 = vrot.lane.b32.xlu1 %v3506_v22, %s13778_s18  ;;  %v13864_v15 = vcombine.low %v13862_v50, %v13863_v53 }
 0x2b8   : > { %3534 = vrot.lane.b32.xlu0 %v3519_v23, %s13778_s18 }
 0x2b9   : > { %3532 = vrot.lane.b32.xlu1 %v3516_v4, %s13778_s18 }
 0x2bc   : > { %3528 = vrot.lane.b32.xlu0 %v3511_v30, %s13778_s18 }
 0x2c0   : > { %3536 = vrot.lane.b32.xlu0 %v3521_v7, %s13778_s18 }
 0x2e5   : > { %v9021_v2 = vpop.permute.xlu1 %9020 }
 0x2e6   : > { %v10845_v41 = vpop.permute.xlu0 %9015  ;;  %v9023_v21 = vunpack.i.h.bf16 %v9021_v2  ;;  %v9022_v59 = vunpack.i.l.bf16 %v9021_v2 }
 0x2e7   : > { %v9018_v10 = vunpack.i.h.bf16 %v10845_v41  ;;  %v9017_v25 = vunpack.i.l.bf16 %v10845_v41 }
 0x2e9   : > { %v2462_v39 = vsel %vm2051_vm3, %v9018_v10, %v9023_v21  ;;  %v2052_v26 = vsel %vm2051_vm3, %v9017_v25, %v9022_v59 }
 0x2eb   : > { %v9026_v46 = vpop.permute.xlu1 %9025 }
 0x2ec   : > { %v9041_v17 = vpop.permute.xlu0 %9040  ;;  %v9028_v44 = vunpack.i.h.bf16 %v9026_v46  ;;  %v9027_v35 = vunpack.i.l.bf16 %v9026_v46 }
 0x2ed   : > { %v9043_v33 = vunpack.i.h.bf16 %v9041_v17  ;;  %v9042_v11 = vunpack.i.l.bf16 %v9041_v17 }
 0x2ee   : > { %v2054_v43 = vsel %vm2053_vm4, %v2052_v26, %v9027_v35  ;;  %v2463_v63 = vsel %vm2053_vm4, %v2462_v39, %v9028_v44 }
 0x2ef   : > { %v9031_v58 = vpop.permute.xlu1 %9030 }
 0x2f0   : > { %v9033_v62 = vunpack.i.h.bf16 %v9031_v58  ;;  %v9032_v9 = vunpack.i.l.bf16 %v9031_v58 }
 0x2f2   : > { %v9051_v48 = vpop.permute.xlu0 %9050  ;;  %v2056_v24 = vsel %vm2055_vm5, %v2054_v43, %v9032_v9  ;;  %v2464_v12 = vsel %vm2055_vm5, %v2463_v63, %v9033_v62 }
 0x2f3   : > { %v9036_v31 = vpop.permute.xlu1 %9035  ;;  %v9053_v6 = vunpack.i.h.bf16 %v9051_v48  ;;  %v9052_v37 = vunpack.i.l.bf16 %v9051_v48 }
 0x2f4   : > { %v9038_v40 = vunpack.i.h.bf16 %v9036_v31  ;;  %v9037_v57 = vunpack.i.l.bf16 %v9036_v31 }
 0x2f5   : > { %v2454_v22 = vsel %vm2035_vm9, %v13864_v15, %v9053_v6  ;;  %v2036_v13 = vsel %vm2035_vm9, %v13865_v8, %v9052_v37 }
 0x2f6   : > { %v2058_v47 = vsel %vm2057_vm6, %v2056_v24, %v9037_v57  ;;  %v2465_v19 = vsel %vm2057_vm6, %v2464_v12, %v9038_v40  ;;  %v9061_v55 = vpop.permute.xlu0 %9060 }
 0x2f7   : > { %v9046_v28 = vpop.permute.xlu1 %9045  ;;  %v2060_v27 = vsel %vm2059_vm7, %v2058_v47, %v9042_v11  ;;  %v2466_v56 = vsel %vm2059_vm7, %v2465_v19, %v9043_v33  ;;  %v9063_v23 = vunpack.i.h.bf16 %v9061_v55  ;;  %v9062_v16 = vunpack.i.l.bf16 %v9061_v55 }
 0x2f8   : > { %v9048_v1 = vunpack.i.h.bf16 %v9046_v28  ;;  %v9047_v14 = vunpack.i.l.bf16 %v9046_v28 }
 0x2fa   : > { %v9066_v36 = vpop.permute.xlu0 %9065  ;;  %v2062_v32 = vsel %vm2061_vm8, %v2060_v27, %v9047_v14  ;;  %v2467_v18 = vsel %vm2061_vm8, %v2466_v56, %v9048_v1 }
 0x2fb   : > { %v9056_v3 = vpop.permute.xlu1 %9055  ;;  %v3240_v61 = vpack.c.bf16 %v2467_v18, %v2062_v32  ;;  %v9068_v4 = vunpack.i.h.bf16 %v9066_v36  ;;  %v9067_v42 = vunpack.i.l.bf16 %v9066_v36 }
 0x2fc   : > { %v9058_v60 = vunpack.i.h.bf16 %v9056_v3  ;;  %v9057_v51 = vunpack.i.l.bf16 %v9056_v3 }
 0x2fd   : > { %3254 = vmatprep.subr.bf16.mxu0 %v3240_v61  ;;  %v13866_v61 = vcombine.low %v13835_v29, %v13836_v45 }
 0x2fe   : > { %v2038_v30 = vsel %vm2037_vm10, %v2036_v13, %v9057_v51  ;;  %v2455_v52 = vsel %vm2037_vm10, %v2454_v22, %v9058_v60  ;;  %v9071_v7 = vpop.permute.xlu0 %9070 }
 0x2ff   : > { %v2040_v2 = vsel %vm2039_vm11, %v2038_v30, %v9062_v16  ;;  %v2456_v46 = vsel %vm2039_vm11, %v2455_v52, %v9063_v23  ;;  %v9073_v17 = vunpack.i.h.bf16 %v9071_v7  ;;  %v9072_v21 = vunpack.i.l.bf16 %v9071_v7  ;;  %v9076_v59 = vpop.permute.xlu1 %9075 }
 0x300   : > { %v2042_v34 = vsel %vm2041_vm12, %v2040_v2, %v9067_v42  ;;  %v2457_v49 = vsel %vm2041_vm12, %v2456_v46, %v9068_v4  ;;  %v9078_v58 = vunpack.i.h.bf16 %v9076_v59  ;;  %v9077_v44 = vunpack.i.l.bf16 %v9076_v59 }
 0x301   : > { %v2044_v35 = vsel %vm2043_vm13, %v2042_v34, %v9072_v21  ;;  %v2458_v62 = vsel %vm2043_vm13, %v2457_v49, %v9073_v17 }
 0x302   : > { %v2046_v9 = vsel %vm2045_vm14, %v2044_v35, %v9077_v44  ;;  %v2459_v48 = vsel %vm2045_vm14, %v2458_v62, %v9078_v58  ;;  %v9081_v39 = vpop.permute.xlu0 %9080 }
 0x303   : > { %v9083_v26 = vunpack.i.h.bf16 %v9081_v39  ;;  %v9082_v31 = vunpack.i.l.bf16 %v9081_v39  ;;  %v9091_v43 = vpop.permute.xlu1 %9090 }
 0x304   : > { %v9093_v37 = vunpack.i.h.bf16 %v9091_v43  ;;  %v9092_v27 = vunpack.i.l.bf16 %v9091_v43 }
 0x305   : > { %v2048_v63 = vsel %vm2047_vm15, %v2046_v9, %v9082_v31  ;;  %v2460_v40 = vsel %vm2047_vm15, %v2459_v48, %v9083_v26 }
 0x306   : > { %v10885_v57 = vpop.permute.xlu0 %9085  ;;  %v2050_v24 = vsel %vm2049_vm0, %v2048_v63, %v9017_v25  ;;  %v2461_v12 = vsel %vm2049_vm0, %v2460_v40, %v9018_v10 }
 0x307   : > { %v9096_v47 = vpop.permute.xlu1 %9095  ;;  %v3239_v19 = vpack.c.bf16 %v2461_v12, %v2050_v24  ;;  %v9088_v56 = vunpack.i.h.bf16 %v10885_v57  ;;  %v9087_v25 = vunpack.i.l.bf16 %v10885_v57 }
 0x308   : > { %v9098_v41 = vunpack.i.h.bf16 %v9096_v47  ;;  %v9097_v32 = vunpack.i.l.bf16 %v9096_v47 }
 0x309   : > { %3255 = vmatpush1.bf16.msra.mxu0 %v3239_v19  ;;  %v3233_v29 = vsel %vm2051_vm3, %v9088_v56, %v9093_v37  ;;  %v2844_v45 = vsel %vm2051_vm3, %v9087_v25, %v9092_v27  ;;  %vm3250_vm3 = vcmask 261120  }
 0x30a   : > { %v9111_v55 = vpop.permute.xlu0 %9110  ;;  %v2845_v30 = vsel %vm2053_vm4, %v2844_v45, %v9097_v32  ;;  %v3234_v52 = vsel %vm2053_vm4, %v3233_v29, %v9098_v41  ;;  %v3243_v41 = vld [vmem:[%s13623_s4] sm:$0x3] }
 0x30b   : > { %v9101_v33 = vpop.permute.xlu1 %9100  ;;  %v9113_v1 = vunpack.i.h.bf16 %v9111_v55  ;;  %v9112_v14 = vunpack.i.l.bf16 %v9111_v55 }
 0x30c   : > { %v9103_v53 = vunpack.i.h.bf16 %v9101_v33  ;;  %v9102_v15 = vunpack.i.l.bf16 %v9101_v33 }
 0x30d   : > { %v3225_v3 = vsel %vm2035_vm9, %v3026_v38, %v9113_v1  ;;  %v2836_v60 = vsel %vm2035_vm9, %v13866_v61, %v9112_v14 }
 0x30e   : > { %v9126_v11 = vpop.permute.xlu0 %9125  ;;  %v2846_v46 = vsel %vm2055_vm5, %v2845_v30, %v9102_v15  ;;  %v3235_v17 = vsel %vm2055_vm5, %v3234_v52, %v9103_v53  ;;  %vm3847_vm5 = vcmask 105472  }
 0x30f   : > { %v9106_v28 = vpop.permute.xlu1 %9105  ;;  %v9128_v51 = vunpack.i.h.bf16 %v9126_v11  ;;  %v9127_v50 = vunpack.i.l.bf16 %v9126_v11 }
 0x310   : > { %v9108_v23 = vunpack.i.h.bf16 %v9106_v28  ;;  %v9107_v16 = vunpack.i.l.bf16 %v9106_v28 }
 0x312   : > { %v9131_v6 = vpop.permute.xlu0 %9130  ;;  %v2847_v49 = vsel %vm2057_vm6, %v2846_v46, %v9107_v16  ;;  %v3236_v58 = vsel %vm2057_vm6, %v3235_v17, %v9108_v23 }
 0x313   : > { %v9116_v36 = vpop.permute.xlu1 %9115  ;;  %v9133_v4 = vunpack.i.h.bf16 %v9131_v6  ;;  %v9132_v42 = vunpack.i.l.bf16 %v9131_v6 }
 0x314   : > { %v9118_v10 = vunpack.i.h.bf16 %v9116_v36  ;;  %v9117_v18 = vunpack.i.l.bf16 %v9116_v36 }
 0x316   : > { %v2837_v22 = vsel %vm2037_vm10, %v2836_v60, %v9117_v18  ;;  %v3226_v8 = vsel %vm2037_vm10, %v3225_v3, %v9118_v10  ;;  %v9136_v13 = vpop.permute.xlu0 %9135  ;;  %vm3854_vm10 = vcmask 531456  }
 0x317   : > { %v2838_v54 = vsel %vm2039_vm11, %v2837_v22, %v9127_v50  ;;  %v3227_v20 = vsel %vm2039_vm11, %v3226_v8, %v9128_v51  ;;  %v9121_v38 = vpop.permute.xlu1 %9120  ;;  %v9138_v44 = vunpack.i.h.bf16 %v9136_v13  ;;  %v9137_v35 = vunpack.i.l.bf16 %v9136_v13 }
 0x318   : > { %v9123_v7 = vunpack.i.h.bf16 %v9121_v38  ;;  %v9122_v2 = vunpack.i.l.bf16 %v9121_v38  ;;  %v2839_v21 = vsel %vm2041_vm12, %v2838_v54, %v9132_v42  ;;  %v3228_v59 = vsel %vm2041_vm12, %v3227_v20, %v9133_v4 }
 0x319   : > { %v2840_v31 = vsel %vm2043_vm13, %v2839_v21, %v9137_v35  ;;  %v3229_v43 = vsel %vm2043_vm13, %v3228_v59, %v9138_v44  ;;  %vm3856_vm11 = vcmask 637952   ;;  %vm3858_vm12 = vcmask 744448  }
 0x31a   : > { %v9141_v34 = vpop.permute.xlu0 %9140  ;;  %v2848_v63 = vsel %vm2059_vm7, %v2847_v49, %v9122_v2  ;;  %v3237_v40 = vsel %vm2059_vm7, %v3236_v58, %v9123_v7  ;;  %vm3849_vm7 = vcmask 211968   ;;  %vm3860_vm13 = vcmask 850944  }
 0x31b   : > { %v9151_v62 = vpop.permute.xlu1 %9150  ;;  %v9143_v9 = vunpack.i.h.bf16 %v9141_v34  ;;  %v9142_v48 = vunpack.i.l.bf16 %v9141_v34 }
 0x31c   : > { %v9153_v39 = vunpack.i.h.bf16 %v9151_v62  ;;  %v9152_v26 = vunpack.i.l.bf16 %v9151_v62 }
 0x31d   : > { %v2841_v11 = vsel %vm2045_vm14, %v2840_v31, %v9142_v48  ;;  %v3230_v28 = vsel %vm2045_vm14, %v3229_v43, %v9143_v9  ;;  %vm3862_vm14 = vcmask 957440  }
 0x31e   : > { %v9146_v57 = vpop.permute.xlu0 %9145  ;;  %v2849_v24 = vsel %vm2061_vm8, %v2848_v63, %v9152_v26  ;;  %v3238_v12 = vsel %vm2061_vm8, %v3237_v40, %v9153_v39  ;;  %vm3851_vm8 = vcmask 318464  }
 0x31f   : > { %v9148_v47 = vunpack.i.h.bf16 %v9146_v57  ;;  %v9147_v19 = vunpack.i.l.bf16 %v9146_v57  ;;  %v3242_v55 = vpack.c.bf16 %v3238_v12, %v2849_v24  ;;  %v10923_v33 = vpop.permute.xlu1 %3522 }
 0x320   : > { %3893 = vrot.lane.b32.xlu1 %v10923_v33, %s13867_s28 }
 0x321   : > { %v2842_v1 = vsel %vm2047_vm15, %v2841_v11, %v9147_v19  ;;  %v3231_v14 = vsel %vm2047_vm15, %v3230_v28, %v9148_v47  ;;  %3256 = vmatprep.subr.bf16.mxu0 %v3242_v55  ;;  %vm3864_vm15 = vcmask 15360  }
 0x322   : > { %v2843_v6 = vsel %vm2049_vm0, %v2842_v1, %v9087_v25  ;;  %v3232_v37 = vsel %vm2049_vm0, %v3231_v14, %v9088_v56  ;;  %v4611_v56 = vrot.slane %v10923_v33, 1  ;;  %v5686_v25 = vrot.slane %v10923_v33, 2 }
 0x323   : > { %v3241_v27 = vpack.c.bf16 %v3232_v37, %v2843_v6  ;;  %v10933_v36 = vpop.permute.xlu1 %3530  ;;  %vm13919_vm0 = vcmask 64512  }
 0x324   : > { %3901 = vrot.lane.b32.xlu1 %v10933_v36, %s13867_s28  ;;  %v4617_v3 = vrot.slane %v10933_v36, 1  ;;  %v5692_v61 = vrot.slane %v10933_v36, 2 }
 0x325   : > { %3257 = vmatpush1.bf16.msra.mxu0 %v3241_v27 }
 0x327   : > { %v10940_v32 = vpop.permute.xlu1 %3524 }
 0x328   : > { %8749 = vmatmul.mubr.msk.bf16.vlgmr.msra.gmra.mrb[16].mxu0 %vm3250_vm3, %v3243_v41  ;;  %4254 = vrot.lane.b32.xlu1 %v10923_v33, %s13778_s18  ;;  %v10947_v10 = vrot.slane %v10940_v32, 1  ;;  %v10950_v18 = vrot.slane %v10940_v32, 2  ;;  %vm3867_vm3 = vcmask 228352  }
 0x32a   : > { %v4613_v53 = vsel %vm2468_vm1, %v4611_v56, %v10947_v10  ;;  %v10970_v22 = vsel %vm3501_vm2, %v5686_v25, %v10950_v18 }
 0x32b   : > { %v10954_v60 = vpop.permute.xlu1 %3532 }
 0x32c   : > { %4262 = vrot.lane.b32.xlu1 %v10933_v36, %s13778_s18  ;;  %v10959_v51 = vrot.slane %v10954_v60, 1  ;;  %v10962_v50 = vrot.slane %v10954_v60, 2 }
 0x32e   : > { %v4619_v15 = vsel %vm2468_vm1, %v4617_v3, %v10959_v51  ;;  %v10974_v8 = vsel %vm3501_vm2, %v5692_v61, %v10962_v50  ;;  %v4807_v14 = vcombine.low %v10947_v10, %v10959_v51  ;;  %v4808_v37 = vcombine.high %v10947_v10, %v10959_v51 }
 0x32f   : > { %v10976_v13 = vpop.permute.xlu0 %3247  ;;  %v4671_v23 = vcombine.low %v4613_v53, %v4619_v15  ;;  %v4672_v16 = vcombine.high %v4613_v53, %v4619_v15  ;;  %v5746_v54 = vcombine.low %v10970_v22, %v10974_v8  ;;  %v5747_v20 = vcombine.high %v10970_v22, %v10974_v8 }
 0x330   : > { %3895 = vrot.lane.b32.xlu1 %v10940_v32, %s13867_s28  ;;  %v11091_v41 = vrot.slane %v4807_v14, %v9952_v0  ;;  %v11097_v25 = vrot.slane %v4808_v37, %v9952_v0 }
 0x331   : > { %v11022_v59 = vrot.slane %v4671_v23, %v9952_v0  ;;  %v11025_v34 = vrot.slane %v4672_v16, %v9952_v0  ;;  %v11039_v26 = vrot.slane %v5746_v54, %v9952_v0  ;;  %v11042_v31 = vrot.slane %v5747_v20, %v9952_v0 }
 0x333   : > { %v10984_v38 = vpop.permute.xlu0 %3526  ;;  %13868 = vst [vmem:[#allocation9_spill] sm:$0xff] %v11039_v26  ;;  %13869 = vst [vmem:[#allocation10_spill] sm:$0xff] %v11042_v31 }
 0x334   : > { %3897 = vrot.lane.b32.xlu0 %v10984_v38, %s13867_s28  ;;  %3903 = vrot.lane.b32.xlu1 %v10954_v60, %s13867_s28  ;;  %v4614_v4 = vrot.slane %v10984_v38, 1  ;;  %v5689_v42 = vrot.slane %v10984_v38, 2 }
 0x337   : > { %v10990_v29 = vpop.permute.xlu0 %3534 }
 0x338   : > { %3905 = vrot.lane.b32.xlu0 %v10990_v29, %s13867_s28  ;;  %4968 = vrot.lane.b32.xlu1 %v4613_v53, %s13867_s28  ;;  %v4620_v7 = vrot.slane %v10990_v29, 1  ;;  %v5695_v2 = vrot.slane %v10990_v29, 2 }
 0x33b   : > { %v10995_v45 = vpop.permute.xlu0 %3528 }
 0x33c   : > { %4258 = vrot.lane.b32.xlu0 %v10984_v38, %s13778_s18  ;;  %4976 = vrot.lane.b32.xlu1 %v4619_v15, %s13867_s28  ;;  %v11003_v30 = vrot.slane %v10995_v45, 1  ;;  %v11006_v52 = vrot.slane %v10995_v45, 2 }
 0x33e   : > { %v4616_v49 = vsel %vm2468_vm1, %v4614_v4, %v11003_v30  ;;  %v5691_v44 = vsel %vm3501_vm2, %v5689_v42, %v11006_v52 }
 0x33f   : > { %v11010_v46 = vpop.permute.xlu0 %3536 }
 0x340   : > { %4266 = vrot.lane.b32.xlu0 %v10990_v29, %s13778_s18  ;;  %v11015_v17 = vrot.slane %v11010_v46, 1  ;;  %v11018_v21 = vrot.slane %v11010_v46, 2  ;;  %5329 = vrot.lane.b32.xlu1 %v4613_v53, %s13778_s18 }
 0x342   : > { %v4622_v58 = vsel %vm2468_vm1, %v4620_v7, %v11015_v17  ;;  %v5697_v35 = vsel %vm3501_vm2, %v5695_v2, %v11018_v21  ;;  %v4823_v6 = vcombine.low %v11003_v30, %v11015_v17  ;;  %v4824_v27 = vcombine.high %v11003_v30, %v11015_v17 }
 0x343   : > { %v4687_v62 = vcombine.low %v4616_v49, %v4622_v58  ;;  %v4688_v9 = vcombine.high %v4616_v49, %v4622_v58  ;;  %v5762_v48 = vcombine.low %v5691_v44, %v5697_v35  ;;  %v5763_v39 = vcombine.high %v5691_v44, %v5697_v35 }
 0x344   : > { %3899 = vrot.lane.b32.xlu0 %v10995_v45, %s13867_s28  ;;  %5337 = vrot.lane.b32.xlu1 %v4619_v15, %s13778_s18  ;;  %v11094_v56 = vrot.slane %v4823_v6, %v9952_v0  ;;  %v11100_v3 = vrot.slane %v4824_v27, %v9952_v0 }
 0x345   : > { %v11045_v43 = vrot.slane %v4687_v62, %v9952_v0  ;;  %v11048_v63 = vrot.slane %v4688_v9, %v9952_v0  ;;  %v11051_v40 = vrot.slane %v5762_v48, %v9952_v0  ;;  %v11054_v57 = vrot.slane %v5763_v39, %v9952_v0 }
 0x347   : > { %13870 = vst [vmem:[#allocation5_spill] sm:$0xff] %v11051_v40  ;;  %13871 = vst [vmem:[#allocation6_spill] sm:$0xff] %v11054_v57 }
 0x348   : > { %3907 = vrot.lane.b32.xlu0 %v11010_v46, %s13867_s28  ;;  %4256 = vrot.lane.b32.xlu1 %v10940_v32, %s13778_s18 }
 0x34c   : > { %4972 = vrot.lane.b32.xlu0 %v4616_v49, %s13867_s28  ;;  %4264 = vrot.lane.b32.xlu1 %v10954_v60, %s13778_s18 }
 0x350   : > { %4980 = vrot.lane.b32.xlu0 %v4622_v58, %s13867_s28  ;;  %6043 = vrot.lane.b32.xlu1 %v10970_v22, %s13867_s28 }
 0x354   : > { %5333 = vrot.lane.b32.xlu0 %v4616_v49, %s13778_s18  ;;  %6051 = vrot.lane.b32.xlu1 %v10974_v8, %s13867_s28 }
 0x358   : > { %5341 = vrot.lane.b32.xlu0 %v4622_v58, %s13778_s18  ;;  %4970 = vrot.lane.b32.xlu1 %v10947_v10, %s13867_s28 }
 0x35c   : > { %4260 = vrot.lane.b32.xlu0 %v10995_v45, %s13778_s18  ;;  %4978 = vrot.lane.b32.xlu1 %v10959_v51, %s13867_s28 }
 0x360   : > { %4268 = vrot.lane.b32.xlu0 %v11010_v46, %s13778_s18  ;;  %5331 = vrot.lane.b32.xlu1 %v10947_v10, %s13778_s18 }
 0x364   : > { %6047 = vrot.lane.b32.xlu0 %v5691_v44, %s13867_s28  ;;  %5339 = vrot.lane.b32.xlu1 %v10959_v51, %s13778_s18 }
 0x368   : > { %6055 = vrot.lane.b32.xlu0 %v5697_v35, %s13867_s28  ;;  %6404 = vrot.lane.b32.xlu1 %v10970_v22, %s13778_s18 }
 0x36c   : > { %4974 = vrot.lane.b32.xlu0 %v11003_v30, %s13867_s28  ;;  %6412 = vrot.lane.b32.xlu1 %v10974_v8, %s13778_s18 }
 0x370   : > { %4982 = vrot.lane.b32.xlu0 %v11015_v17, %s13867_s28  ;;  %6045 = vrot.lane.b32.xlu1 %v10950_v18, %s13867_s28 }
 0x374   : > { %5335 = vrot.lane.b32.xlu0 %v11003_v30, %s13778_s18  ;;  %6053 = vrot.lane.b32.xlu1 %v10962_v50, %s13867_s28 }
 0x378   : > { %5343 = vrot.lane.b32.xlu0 %v11015_v17, %s13778_s18  ;;  %6406 = vrot.lane.b32.xlu1 %v10950_v18, %s13778_s18 }
 0x37c   : > { %6408 = vrot.lane.b32.xlu0 %v5691_v44, %s13778_s18  ;;  %6414 = vrot.lane.b32.xlu1 %v10962_v50, %s13778_s18 }
 0x380   : > { %6416 = vrot.lane.b32.xlu0 %v5697_v35, %s13778_s18 }
 0x384   : > { %6049 = vrot.lane.b32.xlu0 %v11006_v52, %s13867_s28 }
 0x388   : > { %6057 = vrot.lane.b32.xlu0 %v11018_v21, %s13867_s28 }
 0x38c   : > { %6410 = vrot.lane.b32.xlu0 %v11006_v52, %s13778_s18 }
 0x390   : > { %6418 = vrot.lane.b32.xlu0 %v11018_v21, %s13778_s18 }
 0x392   : > { %v11156_v10 = vpop.permute.xlu1 %3893 }
 0x396   : > { %v11160_v22 = vpop.permute.xlu1 %3901 }
 0x39a   : > { %v11164_v23 = vpop.permute.xlu1 %4254 }
 0x39b   : > { %13873 = vst [vmem:[#allocation8_spill] sm:$0xff] %v11164_v23 }
 0x39e   : > { %v11168_v54 = vpop.permute.xlu1 %4262 }
 0x39f   : > { %13875 = vst [vmem:[#allocation16_spill] sm:$0xff] %v11168_v54 }
 0x3a2   : > { %v11172_v4 = vpop.permute.xlu1 %3895 }
 0x3a3   : > { %13877 = vst [vmem:[#allocation12_spill] sm:$0xff] %v11172_v4 }
 0x3a6   : > { %v11158_v51 = vpop.permute.xlu0 %3897  ;;  %v11182_v58 = vpop.permute.xlu1 %3903 }
 0x3a7   : > { %13872 = vst [vmem:[#allocation7_spill] sm:$0xff] %v11158_v51  ;;  %13879 = vst [vmem:[#allocation14_spill] sm:$0xff] %v11182_v58 }
 0x3aa   : > { %v11162_v8 = vpop.permute.xlu0 %3905  ;;  %v11188_v35 = vpop.permute.xlu1 %4968 }
 0x3ab   : > { %13881 = vst [vmem:[#allocation18_spill] sm:$0xff] %v11188_v35 }
 0x3ae   : > { %v11166_v16 = vpop.permute.xlu0 %4258  ;;  %v11196_v48 = vpop.permute.xlu1 %4976 }
 0x3af   : > { %13874 = vst [vmem:[#allocation15_spill] sm:$0xff] %v11166_v16  ;;  %13883 = vst [vmem:[#allocation20_spill] sm:$0xff] %v11196_v48 }
 0x3b2   : > { %v11170_v20 = vpop.permute.xlu0 %4266  ;;  %v11201_v14 = vpop.permute.xlu1 %5329 }
 0x3b3   : > { %13876 = vst [vmem:[#allocation11_spill] sm:$0xff] %v11170_v20  ;;  %13885 = vst [vmem:[#allocation22_spill] sm:$0xff] %v11201_v14 }
 0x3b6   : > { %v11174_v42 = vpop.permute.xlu0 %3899 }
 0x3b7   : > { %13878 = vst [vmem:[#allocation13_spill] sm:$0xff] %v11174_v42 }
 0x3ba   : > { %v11184_v44 = vpop.permute.xlu0 %3907 }
 0x3bb   : > { %13880 = vst [vmem:[#allocation17_spill] sm:$0xff] %v11184_v44 }
 0x3be   : > { %v11190_v62 = vpop.permute.xlu0 %4972 }
 0x3bf   : > { %13882 = vst [vmem:[#allocation19_spill] sm:$0xff] %v11190_v62 }
 0x3c2   : > { %v11198_v39 = vpop.permute.xlu0 %4980 }
 0x3c3   : > { %13884 = vst [vmem:[#allocation21_spill] sm:$0xff] %v11198_v39 }
 0x3c6   : > { %v11203_v6 = vpop.permute.xlu0 %5333 }
 0x3c7   : > { %13886 = vst [vmem:[#allocation23_spill] sm:$0xff] %v11203_v6 }
 0x3ca   : > { %v11209_v37 = vpop.permute.xlu0 %5341 }
 0x3cb   : > { %13888 = vst [vmem:[#allocation25_spill] sm:$0xff] %v11209_v37 }
 0x3fb   : > { %v3288_v30 = vpop.f32.mrb[16].mxu0 }
 0x3fc   : > { %v11177_v7 = vadd.f32 %v3288_v30, %v10976_v13  ;;  %v3290_v2 = vpop.f32.mrb[17].mxu0  ;;  %v11213_v30 = vpop.permute.xlu0 %4260 }
 0x3fd   : > { %v3292_v17 = vpop.f32.mrb[18].mxu0  ;;  %v3291_v9 = vadd.f32 %v3290_v2, %v10976_v13  ;;  %v11207_v13 = vpop.permute.xlu1 %5337  ;;  %13890 = vst [vmem:[#allocation27_spill] sm:$0xff] %v11213_v30 }
 0x3fe   : > { %v3293_v49 = vpop.f32.mrb[19].mxu0  ;;  %3302 = vrot.lane.b32.xlu0 %v11177_v7, %s9679_s12  ;;  %3296 = vrot.lane.b32.xlu1 %v11177_v7, %s13667_s20  ;;  %s9685_s12 = smov 8   ;;  %s9686_s20 = smov 38   ;;  %13887 = vst [vmem:[#allocation24_spill] sm:$0xff] %v11207_v13 }
 0x400   : > { %v11217_v17 = vpop.permute.xlu0 %4268 }
 0x401   : > { %v11211_v27 = vpop.permute.xlu1 %4256  ;;  %13892 = vst [vmem:[#allocation29_spill] sm:$0xff] %v11217_v17 }
 0x402   : > { %3308 = vrot.lane.b32.xlu0 %v11177_v7, %s9681_s11  ;;  %3299 = vrot.lane.b32.xlu1 %v11177_v7, %s9682_s29  ;;  %s9687_s11 = smov 106   ;;  %s13783_s29 = smov 76   ;;  %13889 = vst [vmem:[#allocation26_spill] sm:$0xff] %v11211_v27 }
 0x404   : > { %v11221_v1 = vpop.permute.xlu0 %6047 }
 0x405   : > { %v11215_v2 = vpop.permute.xlu1 %4264  ;;  %13894 = vst [vmem:[#allocation31_spill] sm:$0xff] %v11221_v1 }
 0x406   : > { %3314 = vrot.lane.b32.xlu0 %v11177_v7, %s9683_s27  ;;  %3305 = vrot.lane.b32.xlu1 %v11177_v7, %s9684_s30  ;;  %s9689_s27 = smov 121   ;;  %s9690_s30 = smov 61   ;;  %13891 = vst [vmem:[#allocation28_spill] sm:$0xff] %v11215_v2 }
 0x408   : > { %v11225_v11 = vpop.permute.xlu0 %6055 }
 0x409   : > { %v11219_v49 = vpop.permute.xlu1 %6043  ;;  %13896 = vst [vmem:[#allocation33_spill] sm:$0xff] %v11225_v11 }
 0x40a   : > { %3320 = vrot.lane.b32.xlu0 %v3291_v9, %s9685_s12  ;;  %3311 = vrot.lane.b32.xlu1 %v11177_v7, %s9686_s20  ;;  %s13784_s20 = smov 91   ;;  %13893 = vst [vmem:[#allocation30_spill] sm:$0xff] %v11219_v49 }
 0x40c   : > { %v11229_v15 = vpop.permute.xlu0 %4974 }
 0x40d   : > { %v11223_v28 = vpop.permute.xlu1 %6051  ;;  %13898 = vst [vmem:[#allocation35_spill] sm:$0xff] %v11229_v15 }
 0x40e   : > { %3327 = vrot.lane.b32.xlu0 %v3291_v9, %s9687_s11  ;;  %3318 = vrot.lane.b32.xlu1 %v11177_v7, %s9685_s12  ;;  %s9692_s11 = smov 46   ;;  %13895 = vst [vmem:[#allocation32_spill] sm:$0xff] %v11223_v28  ;;  %s9693_s12 = smov 26  }
 0x410   : > { %v11233_v53 = vpop.permute.xlu0 %4982 }
 0x411   : > { %v11227_v55 = vpop.permute.xlu1 %4970  ;;  %13900 = vst [vmem:[#allocation37_spill] sm:$0xff] %v11233_v53 }
 0x412   : > { %3333 = vrot.lane.b32.xlu0 %v3291_v9, %s13783_s29  ;;  %3324 = vrot.lane.b32.xlu1 %v3291_v9, %s9689_s27  ;;  %13897 = vst [vmem:[#allocation34_spill] sm:$0xff] %v11227_v55  ;;  %s9694_s27 = smov 13   ;;  %s9699_s29 = smov 104  }
 0x414   : > { %v11237_v19 = vpop.permute.xlu0 %5335 }
 0x415   : > { %13902 = vst [vmem:[#allocation39_spill] sm:$0xff] %v11237_v19 }
 0x416   : > { %3336 = vrot.lane.b32.xlu0 %v3291_v9, %s9690_s30  ;;  %3330 = vrot.lane.b32.xlu1 %v3291_v9, %s13784_s20  ;;  %s9695_s30 = smov 39  }
 0x418   : > { %v11241_v12 = vpop.permute.xlu0 %5343 }
 0x419   : > { %13904 = vst [vmem:[#allocation41_spill] sm:$0xff] %v11241_v12 }
 0x41a   : > { %3338 = vrot.lane.b32.xlu1 %v3291_v9, %s9692_s11  ;;  %v11231_v9 = vpop.permute.xlu1 %4978  ;;  %s9696_s11 = smov 65  }
 0x41b   : > { %13899 = vst [vmem:[#allocation36_spill] sm:$0xff] %v11231_v9 }
 0x41c   : > { %v11245_v57 = vpop.permute.xlu0 %6408 }
 0x41d   : > { %13906 = vst [vmem:[#allocation43_spill] sm:$0xff] %v11245_v57 }
 0x41e   : > { %v11235_v61 = vpop.permute.xlu1 %5331 }
 0x41f   : > { %13901 = vst [vmem:[#allocation38_spill] sm:$0xff] %v11235_v61 }
 0x420   : > { %v11249_v1 = vpop.permute.xlu0 %6416 }
 0x421   : > { %13908 = vst [vmem:[#allocation45_spill] sm:$0xff] %v11249_v1 }
 0x422   : > { %v11239_v47 = vpop.permute.xlu1 %5339 }
 0x423   : > { %13903 = vst [vmem:[#allocation40_spill] sm:$0xff] %v11239_v47 }
 0x424   : > { %v11253_v11 = vpop.permute.xlu0 %6049 }
 0x425   : > { %13910 = vst [vmem:[#allocation47_spill] sm:$0xff] %v11253_v11 }
 0x426   : > { %v11243_v24 = vpop.permute.xlu1 %6404 }
 0x427   : > { %13905 = vst [vmem:[#allocation42_spill] sm:$0xff] %v11243_v24 }
 0x428   : > { %v11257_v61 = vpop.permute.xlu0 %6057 }
 0x429   : > { %13912 = vst [vmem:[#allocation49_spill] sm:$0xff] %v11257_v61 }
 0x42a   : > { %v11247_v31 = vpop.permute.xlu1 %6412 }
 0x42b   : > { %13907 = vst [vmem:[#allocation44_spill] sm:$0xff] %v11247_v31 }
 0x42c   : > { %v11261_v47 = vpop.permute.xlu0 %6410 }
 0x42d   : > { %13914 = vst [vmem:[#allocation51_spill] sm:$0xff] %v11261_v47 }
 0x42e   : > { %v11251_v15 = vpop.permute.xlu1 %6045 }
 0x42f   : > { %13909 = vst [vmem:[#allocation46_spill] sm:$0xff] %v11251_v15 }
 0x430   : > { %v11265_v24 = vpop.permute.xlu0 %6418 }
 0x431   : > { %13916 = vst [vmem:[#allocation53_spill] sm:$0xff] %v11265_v24 }
 0x432   : > { %v11255_v53 = vpop.permute.xlu1 %6053 }
 0x433   : > { %13911 = vst [vmem:[#allocation48_spill] sm:$0xff] %v11255_v53 }
 0x436   : > { %v11259_v19 = vpop.permute.xlu1 %6406 }
 0x437   : > { %13913 = vst [vmem:[#allocation50_spill] sm:$0xff] %v11259_v19 }
 0x43a   : > { %v11263_v12 = vpop.permute.xlu1 %6414 }
 0x43b   : > { %13915 = vst [vmem:[#allocation52_spill] sm:$0xff] %v11263_v12 }
 0x470   : > { %v3303_v57 = vpop.permute.xlu0 %3302  ;;  %v3297_v31 = vpop.permute.xlu1 %3296 }
 0x471   : > { %v3349_v55 = vcombine.low %v3297_v31, %v3303_v57  ;;  %v3578_v31 = vcombine.low %v10923_v33, %v10933_v36  ;;  %v3594_v57 = vcombine.low %v10984_v38, %v10990_v29 }
 0x473   : > { %v3356_v11 = vrot.slane %v3349_v55, %v9952_v0  ;;  %v11288_v27 = vrot.slane %v3594_v57, %v9952_v0 }
 0x474   : > { %v3309_v1 = vpop.permute.xlu0 %3308  ;;  %v3300_v9 = vpop.permute.xlu1 %3299 }
 0x475   : > { %v3341_v15 = vcombine.low %v11177_v7, %v3300_v9 }
 0x477   : > { %v3348_v53 = vrot.slane %v3341_v15, %v9952_v0 }
 0x478   : > { %v3315_v61 = vpop.permute.xlu0 %3314  ;;  %v3306_v49 = vpop.permute.xlu1 %3305 }
 0x479   : > { %v3373_v19 = vcombine.low %v3348_v53, %v3356_v11  ;;  %v3374_v28 = vcombine.high %v3348_v53, %v3356_v11  ;;  %v3365_v24 = vcombine.low %v3309_v1, %v3315_v61  ;;  %v11285_v53 = vrot.slane %v3578_v31, %v9952_v0 }
 0x47b   : > { %v3381_v47 = vrot.slane %v3373_v19, %v9964_v5  ;;  %v3388_v12 = vrot.slane %v3374_v28, %v9964_v5  ;;  %v3372_v17 = vrot.slane %v3365_v24, %v9952_v0  ;;  %v3642_v31 = vcombine.low %v11285_v53, %v11288_v27 }
 0x47c   : > { %v3321_v7 = vpop.permute.xlu0 %3320  ;;  %v3312_v9 = vpop.permute.xlu1 %3311 }
 0x47d   : > { %v8750_v55 = vcombine.low %v3381_v47, %v3388_v12  ;;  %v8752_v30 = vcombine.high %v3381_v47, %v3388_v12  ;;  %v3357_v15 = vcombine.low %v3306_v49, %v3312_v9 }
 0x47f   : > { %v3364_v11 = vrot.slane %v3357_v15, %v9952_v0  ;;  %v11279_v19 = vrot.slane %v8750_v55, %v9952_v0  ;;  %v11282_v28 = vrot.slane %v8752_v30, %v9952_v0 }
 0x480   : > { %v3328_v1 = vpop.permute.xlu0 %3327  ;;  %v3319_v61 = vpop.permute.xlu1 %3318 }
 0x481   : > { %13917 = vst [vmem:[#allocation54_spill] sm:$0xff] %v11279_v19  ;;  %13918 = vst [vmem:[#allocation55_spill] sm:$0xff] %v11282_v28  ;;  %v3389_v2 = vcombine.low %v3364_v11, %v3372_v17  ;;  %v3390_v49 = vcombine.high %v3364_v11, %v3372_v17  ;;  %v3610_v9 = vcombine.low %v11279_v19, %v11282_v28 }
 0x482   : > { %v3322_v15 = vsel %vm13919_vm0, %v3319_v61, %v3321_v7  ;;  %v11313_v61 = vrot.slane %v3642_v31, %v9964_v5  ;;  %vm6766_vm0 = vcmask 588800  }
 0x483   : > { %v3397_v55 = vrot.slane %v3389_v2, %v9964_v5  ;;  %v3404_v30 = vrot.slane %v3390_v49, %v9964_v5  ;;  %v3409_v24 = vcombine.low %v3322_v15, %v3328_v1  ;;  %v11304_v28 = vrot.slane %v3610_v9, %v9964_v5 }
 0x484   : > { %v3325_v6 = vpop.permute.xlu1 %3324  ;;  %v3334_v14 = vpop.permute.xlu0 %3333  ;;  %13921 = vst [vmem:[#allocation57_spill] sm:$0xff] %v11313_v61 }
 0x485   : > { %v8751_v57 = vcombine.low %v3397_v55, %v3404_v30  ;;  %v8753_v37 = vcombine.high %v3397_v55, %v3404_v30  ;;  %v11299_v17 = vcombine.high %v3381_v47, %v3397_v55  ;;  %v11301_v11 = vcombine.low %v3381_v47, %v3397_v55  ;;  %13920 = vst [vmem:[#allocation56_spill] sm:$0xff] %v11304_v28 }
 0x486   : > { %v11310_v7 = vcombine.high %v3388_v12, %v3404_v30  ;;  %v11315_v19 = vcombine.low %v3388_v12, %v3404_v30  ;;  %v3416_v9 = vrot.slane %v3409_v24, %v9952_v0 }
 0x487   : > { %3881 = vrot.lane.b32.xlu0 %v11299_v17, %s13867_s28  ;;  %3877 = vrot.lane.b32.xlu1 %v11301_v11, %s13867_s28  ;;  %v11318_v47 = vrot.slane %v8751_v57, %v9952_v0  ;;  %v11321_v1 = vrot.slane %v8753_v37, %v9952_v0  ;;  %v5674_v44 = vrot.slane %v11301_v11, 2 }
 0x488   : > { %v3331_v2 = vpop.permute.xlu1 %3330  ;;  %v3337_v15 = vpop.permute.xlu0 %3336  ;;  %v5683_v4 = vrot.slane %v11310_v7, 2  ;;  %v5680_v23 = vrot.slane %v11315_v19, 2 }
 0x489   : > { %v3417_v49 = vcombine.low %v3325_v6, %v3331_v2  ;;  %13922 = vst [vmem:[#allocation58_spill] sm:$0xff] %v11318_v47  ;;  %13923 = vst [vmem:[#allocation59_spill] sm:$0xff] %v11321_v1  ;;  %v3440_v57 = vrot.slane %v3337_v15, %v9952_v0 }
 0x48b   : > { %v3424_v13 = vrot.slane %v3417_v49, %v9952_v0  ;;  %3889 = vrot.lane.b32.xlu0 %v11310_v7, %s13867_s28  ;;  %3885 = vrot.lane.b32.xlu1 %v11315_v19, %s13867_s28 }
 0x48c   : > { %v3339_v37 = vpop.permute.xlu1 %3338 }
 0x48d   : > { %v3441_v24 = vcombine.low %v3416_v9, %v3424_v13  ;;  %v3442_v30 = vcombine.high %v3416_v9, %v3424_v13  ;;  %v3425_v31 = vcombine.low %v3334_v14, %v3339_v37 }
 0x48f   : > { %v3449_v2 = vrot.slane %v3441_v24, %v9964_v5  ;;  %v3456_v49 = vrot.slane %v3442_v30, %v9964_v5  ;;  %v3432_v55 = vrot.slane %v3425_v31, %v9952_v0  ;;  %4242 = vrot.lane.b32.xlu0 %v11299_v17, %s13778_s18  ;;  %4238 = vrot.lane.b32.xlu1 %v11301_v11, %s13778_s18 }
 0x491   : > { %v8754_v12 = vcombine.low %v3449_v2, %v3456_v49  ;;  %v8756_v6 = vcombine.high %v3449_v2, %v3456_v49  ;;  %v3457_v1 = vcombine.low %v3432_v55, %v3440_v57  ;;  %v3458_v47 = vcombine.high %v3432_v55, %v3440_v57 }
 0x493   : > { %v11344_v14 = vrot.slane %v3457_v1, %v9964_v5  ;;  %v11347_v13 = vrot.slane %v3458_v47, %v9964_v5  ;;  %4250 = vrot.lane.b32.xlu0 %v11310_v7, %s13778_s18  ;;  %4246 = vrot.lane.b32.xlu1 %v11315_v19, %s13778_s18  ;;  %v11354_v9 = vrot.slane %v8754_v12, %v9952_v0  ;;  %v4599_v1 = vrot.slane %v11301_v11, 1 }
 0x494   : > { %v11357_v15 = vrot.slane %v8756_v6, %v9952_v0  ;;  %v4608_v12 = vrot.slane %v11310_v7, 1  ;;  %v4605_v6 = vrot.slane %v11315_v19, 1 }
 0x495   : > { %13924 = vst [vmem:[#allocation60_spill] sm:$0xff] %v11354_v9  ;;  %v3474_v47 = vcombine.high %v3449_v2, %v11344_v14  ;;  %v3473_v37 = vcombine.low %v3449_v2, %v11344_v14  ;;  %v3476_v24 = vcombine.high %v3456_v49, %v11347_v13  ;;  %v3475_v30 = vcombine.low %v3456_v49, %v11347_v13 }
 0x496   : > { %13925 = vst [vmem:[#allocation61_spill] sm:$0xff] %v11357_v15  ;;  %v4602_v2 = vrot.slane %v11299_v17, 1 }
 0x497   : > { %3883 = vrot.lane.b32.xlu0 %v3474_v47, %s13867_s28  ;;  %3879 = vrot.lane.b32.xlu1 %v3473_v37, %s13867_s28  ;;  %v11373_v31 = vrot.slane %v3474_v47, 1  ;;  %v11375_v57 = vrot.slane %v3473_v37, 1  ;;  %v11379_v55 = vrot.slane %v3476_v24, 1  ;;  %v11381_v49 = vrot.slane %v3475_v30, 1 }
 0x498   : > { %v11385_v15 = vrot.slane %v3474_v47, 2  ;;  %v11395_v61 = vrot.slane %v3473_v37, 2  ;;  %v11397_v62 = vrot.slane %v3476_v24, 2 }
 0x499   : > { %v11389_v9 = vsel %vm2468_vm1, %v4602_v2, %v11373_v31  ;;  %v11393_v28 = vsel %vm2468_vm1, %v4599_v1, %v11375_v57  ;;  %v11401_v39 = vsel %vm2468_vm1, %v4608_v12, %v11379_v55  ;;  %v11405_v35 = vsel %vm2468_vm1, %v4605_v6, %v11381_v49 }
 0x49a   : > { %v11409_v2 = vrot.slane %v3475_v30, 2  ;;  %v4655_v1 = vcombine.low %v11389_v9, %v11401_v39  ;;  %v4656_v48 = vcombine.high %v11389_v9, %v11401_v39  ;;  %v4639_v12 = vcombine.low %v11393_v28, %v11405_v35 }
 0x49b   : > { %3891 = vrot.lane.b32.xlu0 %v3476_v24, %s13867_s28  ;;  %3887 = vrot.lane.b32.xlu1 %v3475_v30, %s13867_s28  ;;  %v4640_v42 = vcombine.high %v11393_v28, %v11405_v35  ;;  %v5677_v6 = vrot.slane %v11299_v17, 2  ;;  %v11433_v17 = vsel %vm3501_vm2, %v5674_v44, %v11395_v61  ;;  %v11437_v11 = vsel %vm3501_vm2, %v5683_v4, %v11397_v62 }
 0x49c   : > { %v4663_v58 = vrot.slane %v4655_v1, %v9952_v0  ;;  %v4670_v16 = vrot.slane %v4656_v48, %v9952_v0  ;;  %v4647_v20 = vrot.slane %v4639_v12, %v9952_v0  ;;  %13927 = vst [vmem:[#allocation63_spill] sm:$0xff] %v11433_v17  ;;  %13928 = vst [vmem:[#allocation64_spill] sm:$0xff] %v11437_v11 }
 0x49d   : > { %v4654_v54 = vrot.slane %v4640_v42, %v9952_v0  ;;  %v11429_v51 = vsel %vm3501_vm2, %v5677_v6, %v11385_v15  ;;  %v11443_v42 = vsel %vm3501_vm2, %v5680_v23, %v11409_v2  ;;  %v13930_v44 = vcombine.low %v11022_v59, %v11045_v43 }
 0x49e   : > { %13926 = vst [vmem:[#allocation62_spill] sm:$0xff] %v11429_v51  ;;  %v4703_v48 = vcombine.low %v4647_v20, %v4663_v58  ;;  %v4704_v19 = vcombine.high %v4647_v20, %v4663_v58  ;;  %13929 = vst [vmem:[#allocation65_spill] sm:$0xff] %v11443_v42  ;;  %v13932_v4 = vcombine.high %v11022_v59, %v11045_v43 }
 0x49f   : > { %4244 = vrot.lane.b32.xlu0 %v3474_v47, %s13778_s18  ;;  %4240 = vrot.lane.b32.xlu1 %v3473_v37, %s13778_s18  ;;  %v4719_v7 = vcombine.low %v4654_v54, %v4670_v16  ;;  %v4720_v1 = vcombine.high %v4654_v54, %v4670_v16  ;;  %v11449_v12 = vrot.slane %v13930_v44, %v9964_v5 }
 0x4a0   : > { %v11455_v47 = vrot.slane %v13932_v4, %v9964_v5  ;;  %v5730_v20 = vcombine.low %v11429_v51, %v11437_v11  ;;  %v11460_v23 = vrot.slane %v4703_v48, %v9964_v5  ;;  %v11463_v16 = vrot.slane %v4704_v19, %v9964_v5 }
 0x4a1   : > { %13931 = vst [vmem:[#allocation66_spill] sm:$0xff] %v11449_v12  ;;  %v13933_v54 = vcombine.low %v11025_v34, %v11048_v63  ;;  %v5714_v59 = vcombine.low %v11433_v17, %v11443_v42  ;;  %v11474_v43 = vrot.slane %v4719_v7, %v9964_v5  ;;  %v11477_v37 = vrot.slane %v4720_v1, %v9964_v5 }
 0x4a2   : > { %v13936_v6 = vcombine.high %v11025_v34, %v11048_v63  ;;  %v13938_v63 = vcombine.low %v11091_v41, %v11094_v56  ;;  %v4791_v1 = vcombine.low %v11373_v31, %v11379_v55  ;;  %v13943_v4 = vcombine.high %v11344_v14, %v11347_v13 }
 0x4a3   : > { %v11469_v58 = vrot.slane %v13933_v54, %v9964_v5  ;;  %13935 = vst [vmem:[#allocation68_spill] sm:$0xff] %v11477_v37  ;;  %4252 = vrot.lane.b32.xlu0 %v3476_v24, %s13778_s18  ;;  %4248 = vrot.lane.b32.xlu1 %v3475_v30, %s13778_s18  ;;  %v11504_v30 = vrot.slane %v5730_v20, %v9952_v0 }
 0x4a4   : > { %v11483_v48 = vrot.slane %v13936_v6, %v9964_v5  ;;  %v11501_v24 = vrot.slane %v13938_v63, %v9964_v5  ;;  %v4775_v6 = vcombine.low %v11375_v57, %v11381_v49  ;;  %v11513_v34 = vrot.slane %v5714_v59, %v9952_v0 }
 0x4a5   : > { %13934 = vst [vmem:[#allocation67_spill] sm:$0xff] %v11469_v58  ;;  %13939 = vst [vmem:[#allocation70_spill] sm:$0xff] %v11504_v30  ;;  %v13941_v20 = vcombine.low %v11344_v14, %v11347_v13  ;;  %v11527_v54 = vrot.slane %v13943_v4, %v9952_v0  ;;  %v4776_v44 = vcombine.high %v11375_v57, %v11381_v49 }
 0x4a6   : > { %13937 = vst [vmem:[#allocation69_spill] sm:$0xff] %v11483_v48  ;;  %13940 = vst [vmem:[#allocation71_spill] sm:$0xff] %v11513_v34  ;;  %v4783_v59 = vrot.slane %v4775_v6, %v9952_v0  ;;  %v4799_v7 = vrot.slane %v4791_v1, %v9952_v0  ;;  %v5850_v13 = vcombine.low %v11395_v61, %v11409_v2 }
 0x4a7   : > { %v11521_v63 = vrot.slane %v13941_v20, %v9952_v0  ;;  %13944 = vst [vmem:[#allocation73_spill] sm:$0xff] %v11527_v54  ;;  %4958 = vrot.lane.b32.xlu0 %v11373_v31, %s13867_s28  ;;  %4954 = vrot.lane.b32.xlu1 %v11375_v57, %s13867_s28  ;;  %v4792_v20 = vcombine.high %v11373_v31, %v11379_v55 }
 0x4a8   : > { %v5866_v4 = vcombine.low %v11385_v15, %v11397_v62  ;;  %v4790_v19 = vrot.slane %v4776_v44, %v9952_v0  ;;  %v5851_v48 = vcombine.high %v11395_v61, %v11409_v2  ;;  %v5867_v37 = vcombine.high %v11385_v15, %v11397_v62 }
 0x4a9   : > { %13942 = vst [vmem:[#allocation72_spill] sm:$0xff] %v11521_v63  ;;  %v4806_v6 = vrot.slane %v4792_v20, %v9952_v0  ;;  %v4839_v1 = vcombine.low %v4783_v59, %v4799_v7  ;;  %v4840_v58 = vcombine.high %v4783_v59, %v4799_v7  ;;  %v13945_v14 = vcombine.high %v11091_v41, %v11094_v56 }
 0x4aa   : > { %v11558_v63 = vrot.slane %v5850_v13, %v9952_v0  ;;  %v11565_v20 = vrot.slane %v5866_v4, %v9952_v0  ;;  %v11568_v7 = vrot.slane %v5851_v48, %v9952_v0  ;;  %v5778_v41 = vcombine.low %v11513_v34, %v11504_v30 }
 0x4ab   : > { %v11555_v54 = vrot.slane %v13945_v14, %v9964_v5  ;;  %4966 = vrot.lane.b32.xlu0 %v11379_v55, %s13867_s28  ;;  %4962 = vrot.lane.b32.xlu1 %v11381_v49, %s13867_s28  ;;  %v4855_v44 = vcombine.low %v4790_v19, %v4806_v6  ;;  %v11573_v56 = vrot.slane %v4839_v1, %v9964_v5 }
 0x4ac   : > { %13947 = vst [vmem:[#allocation75_spill] sm:$0xff] %v11558_v63  ;;  %13948 = vst [vmem:[#allocation76_spill] sm:$0xff] %v11565_v20  ;;  %v11576_v59 = vrot.slane %v4840_v58, %v9964_v5  ;;  %v11579_v14 = vrot.slane %v5867_v37, %v9952_v0  ;;  %v13952_v48 = vcombine.low %v11097_v25, %v11100_v3  ;;  %v13964_v3 = vld [vmem:[#allocation17_spill] sm:$0xff] }
 0x4ad   : > { %13946 = vst [vmem:[#allocation74_spill] sm:$0xff] %v11555_v54  ;;  %13949 = vst [vmem:[#allocation77_spill] sm:$0xff] %v11568_v7  ;;  %v11582_v19 = vrot.slane %v4855_v44, %v9964_v5  ;;  %v13955_v6 = vcombine.low %v11039_v26, %v11051_v40  ;;  %v13977_v40 = vld [vmem:[#allocation23_spill] sm:$0xff] }
 0x4ae   : > { %13950 = vst [vmem:[#allocation78_spill] sm:$0xff] %v11579_v14  ;;  %v11588_v13 = vrot.slane %v13952_v48, %v9964_v5  ;;  %v11611_v48 = vrot.slane %v5778_v41, %v9964_v5  ;;  %v3958_v41 = vcombine.high %v11156_v10, %v11160_v22 }
 0x4af   : > { %13951 = vst [vmem:[#allocation79_spill] sm:$0xff] %v11582_v19  ;;  %5319 = vrot.lane.b32.xlu0 %v11373_v31, %s13778_s18  ;;  %5315 = vrot.lane.b32.xlu1 %v11375_v57, %s13778_s18  ;;  %v11617_v4 = vrot.slane %v13955_v6, %v9964_v5 }
 0x4b0   : > { %13953 = vst [vmem:[#allocation80_spill] sm:$0xff] %v11588_v13  ;;  %13954 = vst [vmem:[#allocation81_spill] sm:$0xff] %v11611_v48 }
 0x4b1   : > { %13956 = vst [vmem:[#allocation82_spill] sm:$0xff] %v11617_v4 }
 0x4b3   : > { %5327 = vrot.lane.b32.xlu0 %v11379_v55, %s13778_s18  ;;  %5323 = vrot.lane.b32.xlu1 %v11381_v49, %s13778_s18 }
 0x4b7   : > { %6033 = vrot.lane.b32.xlu0 %v11385_v15, %s13867_s28  ;;  %6029 = vrot.lane.b32.xlu1 %v11395_v61, %s13867_s28 }
 0x4bb   : > { %6041 = vrot.lane.b32.xlu0 %v11397_v62, %s13867_s28  ;;  %6037 = vrot.lane.b32.xlu1 %v11409_v2, %s13867_s28 }
 0x4bf   : > { %6394 = vrot.lane.b32.xlu0 %v11385_v15, %s13778_s18  ;;  %6390 = vrot.lane.b32.xlu1 %v11395_v61, %s13778_s18  ;;  %v3595_v61 = vcombine.high %v10984_v38, %v10990_v29  ;;  %v5882_v38 = vcombine.low %v10950_v18, %v10962_v50  ;;  %v5898_v29 = vcombine.low %v11006_v52, %v11018_v21 }
 0x4c3   : > { %6402 = vrot.lane.b32.xlu0 %v11397_v62, %s13778_s18  ;;  %6398 = vrot.lane.b32.xlu1 %v11409_v2, %s13778_s18  ;;  %v3579_v62 = vcombine.high %v10923_v33, %v10933_v36  ;;  %v3730_v33 = vcombine.low %v10995_v45, %v11010_v46  ;;  %v3731_v36 = vcombine.high %v10995_v45, %v11010_v46 }
 0x4c4   : > { %v5883_v45 = vcombine.high %v10950_v18, %v10962_v50  ;;  %v5899_v46 = vcombine.high %v11006_v52, %v11018_v21  ;;  %v3957_v2 = vcombine.low %v11156_v10, %v11160_v22  ;;  %v13957_v18 = vld [vmem:[#allocation7_spill] sm:$0xff]  ;;  %v5890_v52 = vrot.slane %v5882_v38, %v9952_v0 }
 0x4c5   : > { %v3738_v49 = vrot.slane %v3730_v33, %v9952_v0  ;;  %v3973_v50 = vcombine.low %v13957_v18, %v11162_v8  ;;  %v5906_v21 = vrot.slane %v5898_v29, %v9952_v0  ;;  %v3974_v6 = vcombine.high %v13957_v18, %v11162_v8  ;;  %v13961_v18 = vld [vmem:[#allocation15_spill] sm:$0xff] }
 0x4c6   : > { %v3972_v38 = vrot.slane %v3958_v41, %v9952_v0 }
 0x4c7   : > { %4956 = vrot.lane.b32.xlu0 %v11389_v9, %s13867_s28  ;;  %4952 = vrot.lane.b32.xlu1 %v11393_v28, %s13867_s28  ;;  %v3988_v29 = vrot.slane %v3974_v6, %v9952_v0 }
 0x4cb   : > { %4964 = vrot.lane.b32.xlu0 %v11401_v39, %s13867_s28  ;;  %4960 = vrot.lane.b32.xlu1 %v11405_v35, %s13867_s28 }
 0x4cf   : > { %5317 = vrot.lane.b32.xlu0 %v11389_v9, %s13778_s18  ;;  %5313 = vrot.lane.b32.xlu1 %v11393_v28, %s13778_s18  ;;  %v3593_v28 = vrot.slane %v3579_v62, %v9952_v0  ;;  %v3609_v9 = vrot.slane %v3595_v61, %v9952_v0 }
 0x4d1   : > { %v3659_v15 = vcombine.high %v3593_v28, %v3609_v9 }
 0x4d3   : > { %5325 = vrot.lane.b32.xlu0 %v11401_v39, %s13778_s18  ;;  %5321 = vrot.lane.b32.xlu1 %v11405_v35, %s13778_s18  ;;  %v3714_v39 = vcombine.low %v10940_v32, %v10954_v60  ;;  %v3715_v35 = vcombine.high %v10940_v32, %v10954_v60  ;;  %v3643_v32 = vcombine.high %v11285_v53, %v11288_v27 }
 0x4d4   : > { %v3658_v60 = vcombine.low %v3593_v28, %v3609_v9  ;;  %v3745_v53 = vrot.slane %v3731_v36, %v9952_v0  ;;  %v5897_v28 = vrot.slane %v5883_v45, %v9952_v0  ;;  %v5913_v9 = vrot.slane %v5899_v46, %v9952_v0  ;;  %v13960_v46 = vld [vmem:[#allocation11_spill] sm:$0xff] }
 0x4d5   : > { %v3722_v55 = vrot.slane %v3714_v39, %v9952_v0  ;;  %v3729_v27 = vrot.slane %v3715_v35, %v9952_v0  ;;  %v11710_v62 = vrot.slane %v3643_v32, %v9964_v5  ;;  %v11722_v10 = vrot.slane %v3659_v15, %v9964_v5  ;;  %v13958_v32 = vld [vmem:[#allocation16_spill] sm:$0xff] }
 0x4d6   : > { %v11713_v61 = vrot.slane %v3658_v60, %v9964_v5  ;;  %v3965_v39 = vrot.slane %v3957_v2, %v9952_v0  ;;  %v3981_v35 = vrot.slane %v3973_v50, %v9952_v0  ;;  %v5939_v36 = vcombine.high %v5890_v52, %v5906_v21  ;;  %v13959_v60 = vld [vmem:[#allocation8_spill] sm:$0xff] }
 0x4d7   : > { %6031 = vrot.lane.b32.xlu0 %v11429_v51, %s13867_s28  ;;  %6027 = vrot.lane.b32.xlu1 %v11433_v17, %s13867_s28  ;;  %v3770_v22 = vcombine.low %v3722_v55, %v3738_v49  ;;  %v3771_v8 = vcombine.high %v3722_v55, %v3738_v49  ;;  %v3786_v33 = vcombine.low %v3729_v27, %v3745_v53  ;;  %v13962_v27 = vld [vmem:[#allocation14_spill] sm:$0xff]  ;;  %v13963_v53 = vld [vmem:[#allocation12_spill] sm:$0xff] }
 0x4d8   : > { %v4318_v45 = vcombine.low %v13959_v60, %v13958_v32  ;;  %v4334_v57 = vcombine.low %v13961_v18, %v13960_v46  ;;  %v4319_v15 = vcombine.high %v13959_v60, %v13958_v32  ;;  %v4335_v55 = vcombine.high %v13961_v18, %v13960_v46  ;;  %v13965_v32 = vld [vmem:[#allocation13_spill] sm:$0xff] }
 0x4d9   : > { %v5954_v49 = vcombine.low %v5897_v28, %v5913_v9  ;;  %v5938_v2 = vcombine.low %v5890_v52, %v5906_v21  ;;  %v4093_v50 = vcombine.low %v13963_v53, %v13962_v27  ;;  %v4094_v41 = vcombine.high %v13963_v53, %v13962_v27 }
 0x4da   : > { %v11741_v6 = vrot.slane %v3770_v22, %v9964_v5  ;;  %v11744_v31 = vrot.slane %v3771_v8, %v9964_v5  ;;  %v4021_v44 = vcombine.low %v3965_v39, %v3981_v35  ;;  %v4109_v60 = vcombine.low %v13965_v32, %v13964_v3 }
 0x4db   : > { %6039 = vrot.lane.b32.xlu0 %v11437_v11, %s13867_s28  ;;  %6035 = vrot.lane.b32.xlu1 %v11443_v42, %s13867_s28  ;;  %v11749_v46 = vrot.slane %v3786_v33, %v9964_v5  ;;  %v11752_v52 = vrot.slane %v5939_v36, %v9964_v5  ;;  %v4022_v21 = vcombine.high %v3965_v39, %v3981_v35 }
 0x4dc   : > { %v4037_v28 = vcombine.low %v3972_v38, %v3988_v29  ;;  %v4326_v9 = vrot.slane %v4318_v45, %v9952_v0  ;;  %v4342_v22 = vrot.slane %v4334_v57, %v9952_v0  ;;  %v4333_v18 = vrot.slane %v4319_v15, %v9952_v0  ;;  %v13970_v15 = vld [vmem:[#allocation20_spill] sm:$0xff] }
 0x4dd   : > { %13966 = vst [vmem:[#allocation7_spill] sm:$0xff] %v11752_v52  ;;  %v4349_v8 = vrot.slane %v4335_v55, %v9952_v0  ;;  %v11759_v27 = vrot.slane %v5954_v49, %v9964_v5  ;;  %v11762_v53 = vrot.slane %v5938_v2, %v9964_v5  ;;  %v4038_v33 = vcombine.high %v3972_v38, %v3988_v29  ;;  %v13971_v55 = vld [vmem:[#allocation18_spill] sm:$0xff] }
 0x4de   : > { %v4101_v36 = vrot.slane %v4093_v50, %v9952_v0  ;;  %v4108_v39 = vrot.slane %v4094_v41, %v9952_v0  ;;  %v4110_v35 = vcombine.high %v13965_v32, %v13964_v3  ;;  %v11769_v57 = vrot.slane %v4021_v44, %v9964_v5  ;;  %v13972_v41 = vld [vmem:[#allocation21_spill] sm:$0xff]  ;;  %v13973_v3 = vld [vmem:[#allocation19_spill] sm:$0xff] }
 0x4df   : > { %6392 = vrot.lane.b32.xlu0 %v11429_v51, %s13778_s18  ;;  %6388 = vrot.lane.b32.xlu1 %v11433_v17, %s13778_s18  ;;  %13967 = vst [vmem:[#allocation16_spill] sm:$0xff] %v11759_v27  ;;  %13968 = vst [vmem:[#allocation8_spill] sm:$0xff] %v11762_v53  ;;  %v4117_v45 = vrot.slane %v4109_v60, %v9952_v0  ;;  %v5032_v49 = vcombine.low %v13971_v55, %v13970_v15  ;;  %v13983_v17 = vld [vmem:[#allocation32_spill] sm:$0xff] }
 0x4e0   : > { %13969 = vst [vmem:[#allocation11_spill] sm:$0xff] %v11769_v57  ;;  %v5033_v2 = vcombine.high %v13971_v55, %v13970_v15  ;;  %v11777_v38 = vrot.slane %v4022_v21, %v9964_v5  ;;  %v11780_v29 = vrot.slane %v4037_v28, %v9964_v5  ;;  %v4382_v50 = vcombine.low %v4326_v9, %v4342_v22  ;;  %v13974_v21 = vld [vmem:[#allocation24_spill] sm:$0xff]  ;;  %v13975_v55 = vld [vmem:[#allocation22_spill] sm:$0xff]  ;;  %v13976_v28 = vld [vmem:[#allocation25_spill] sm:$0xff] }
 0x4e1   : > { %v5048_v32 = vcombine.low %v13973_v3, %v13972_v41  ;;  %v4383_v44 = vcombine.high %v4326_v9, %v4342_v22  ;;  %v4398_v25 = vcombine.low %v4333_v18, %v4349_v8  ;;  %v4399_v1 = vcombine.high %v4333_v18, %v4349_v8  ;;  %v13985_v27 = vld [vmem:[#allocation36_spill] sm:$0xff] }
 0x4e2   : > { %v5049_v60 = vcombine.high %v13973_v3, %v13972_v41  ;;  %v11787_v37 = vrot.slane %v4038_v33, %v9964_v5  ;;  %v4124_v15 = vrot.slane %v4110_v35, %v9952_v0  ;;  %v5393_v58 = vcombine.low %v13975_v55, %v13974_v21 }
 0x4e3   : > { %6400 = vrot.lane.b32.xlu0 %v11437_v11, %s13778_s18  ;;  %6396 = vrot.lane.b32.xlu1 %v11443_v42, %s13778_s18  ;;  %v5409_v26 = vcombine.low %v13977_v40, %v13976_v28  ;;  %v4149_v48 = vcombine.low %v4101_v36, %v4117_v45  ;;  %v5040_v4 = vrot.slane %v5032_v49, %v9952_v0  ;;  %s13786_s18 = smov 78  }
 0x4e4   : > { %v5394_v9 = vcombine.high %v13975_v55, %v13974_v21  ;;  %v5410_v22 = vcombine.high %v13977_v40, %v13976_v28  ;;  %v11800_v18 = vrot.slane %v4382_v50, %v9964_v5  ;;  %v4150_v8 = vcombine.high %v4101_v36, %v4117_v45  ;;  %v13979_v45 = vld [vmem:[#allocation28_spill] sm:$0xff] }
 0x4e5   : > { %v5047_v33 = vrot.slane %v5033_v2, %v9952_v0  ;;  %v5056_v35 = vrot.slane %v5048_v32, %v9952_v0  ;;  %v11805_v41 = vrot.slane %v4383_v44, %v9964_v5  ;;  %v11808_v3 = vrot.slane %v4398_v25, %v9964_v5  ;;  %v13980_v2 = vld [vmem:[#allocation26_spill] sm:$0xff] }
 0x4e6   : > { %13978 = vst [vmem:[#allocation15_spill] sm:$0xff] %v11800_v18  ;;  %v11811_v49 = vrot.slane %v4399_v1, %v9964_v5  ;;  %v5063_v21 = vrot.slane %v5049_v60, %v9952_v0  ;;  %v4165_v40 = vcombine.low %v4108_v39, %v4124_v15  ;;  %v5401_v50 = vrot.slane %v5393_v58, %v9952_v0  ;;  %v13981_v58 = vld [vmem:[#allocation29_spill] sm:$0xff]  ;;  %v13982_v15 = vld [vmem:[#allocation27_spill] sm:$0xff] }
 0x4e7   : > { %v5417_v36 = vrot.slane %v5409_v26, %v9952_v0  ;;  %v4454_v55 = vcombine.low %v13980_v2, %v13979_v45  ;;  %v11819_v32 = vrot.slane %v4149_v48, %v9964_v5  ;;  %v5408_v44 = vrot.slane %v5394_v9, %v9952_v0  ;;  %v13984_v9 = vld [vmem:[#allocation30_spill] sm:$0xff] }
 0x4e8   : > { %v5424_v25 = vrot.slane %v5410_v22, %v9952_v0  ;;  %v4455_v1 = vcombine.high %v13980_v2, %v13979_v45  ;;  %v11826_v60 = vrot.slane %v4150_v8, %v9964_v5  ;;  %v5096_v39 = vcombine.low %v5040_v4, %v5056_v35 }
 0x4e9   : > { %v4470_v26 = vcombine.low %v13982_v15, %v13981_v58  ;;  %v4471_v28 = vcombine.high %v13982_v15, %v13981_v58  ;;  %v5097_v34 = vcombine.high %v5040_v4, %v5056_v35  ;;  %v5112_v48 = vcombine.low %v5047_v33, %v5063_v21  ;;  %v13986_v58 = vld [vmem:[#allocation34_spill] sm:$0xff] }
 0x4ea   : > { %v5113_v30 = vcombine.high %v5047_v33, %v5063_v21  ;;  %v6107_v42 = vcombine.low %v13984_v9, %v13983_v17  ;;  %v11835_v22 = vrot.slane %v4165_v40, %v9964_v5  ;;  %v5457_v45 = vcombine.low %v5401_v50, %v5417_v36 }
 0x4eb   : > { %v4462_v8 = vrot.slane %v4454_v55, %v9952_v0  ;;  %v6108_v2 = vcombine.high %v13984_v9, %v13983_v17  ;;  %v5458_v53 = vcombine.high %v5401_v50, %v5417_v36  ;;  %v5473_v51 = vcombine.low %v5408_v44, %v5424_v25 }
 0x4ec   : > { %v5474_v11 = vcombine.high %v5408_v44, %v5424_v25  ;;  %v5168_v4 = vcombine.low %v13986_v58, %v13985_v27  ;;  %v11843_v33 = vrot.slane %v5096_v39, %v9964_v5  ;;  %v4469_v35 = vrot.slane %v4455_v1, %v9952_v0  ;;  %v13994_v1 = vld [vmem:[#allocation33_spill] sm:$0xff]  ;;  %v13995_v39 = vld [vmem:[#allocation31_spill] sm:$0xff] }
 0x4ed   : > { %v4478_v21 = vrot.slane %v4470_v26, %v9952_v0  ;;  %v4485_v40 = vrot.slane %v4471_v28, %v9952_v0  ;;  %v11849_v52 = vrot.slane %v5097_v34, %v9964_v5  ;;  %v11852_v17 = vrot.slane %v5112_v48, %v9964_v5 }
 0x4ee   : > { %13987 = vst [vmem:[#allocation14_spill] sm:$0xff] %v11843_v33  ;;  %v11855_v50 = vrot.slane %v5113_v30, %v9964_v5  ;;  %v11858_v36 = vrot.slane %v6107_v42, %v9952_v0  ;;  %v11861_v44 = vrot.slane %v5457_v45, %v9964_v5  ;;  %v11864_v25 = vrot.slane %v6108_v2, %v9952_v0 }
 0x4ef   : > { %13988 = vst [vmem:[#allocation12_spill] sm:$0xff] %v11849_v52  ;;  %13989 = vst [vmem:[#allocation17_spill] sm:$0xff] %v11852_v17  ;;  %v6123_v26 = vcombine.low %v13995_v39, %v13994_v1  ;;  %v5169_v34 = vcombine.high %v13986_v58, %v13985_v27  ;;  %v11871_v28 = vrot.slane %v5458_v53, %v9964_v5 }
 0x4f0   : > { %13990 = vst [vmem:[#allocation13_spill] sm:$0xff] %v11855_v50  ;;  %13991 = vst [vmem:[#allocation20_spill] sm:$0xff] %v11858_v36  ;;  %v11874_v30 = vrot.slane %v5473_v51, %v9964_v5  ;;  %v11877_v42 = vrot.slane %v5474_v11, %v9964_v5  ;;  %v11880_v48 = vrot.slane %v5168_v4, %v9952_v0  ;;  %v13999_v50 = vld [vmem:[#allocation40_spill] sm:$0xff] }
 0x4f1   : > { %13992 = vst [vmem:[#allocation18_spill] sm:$0xff] %v11861_v44  ;;  %13993 = vst [vmem:[#allocation21_spill] sm:$0xff] %v11864_v25  ;;  %v4510_v9 = vcombine.low %v4462_v8, %v4478_v21  ;;  %v4511_v45 = vcombine.high %v4462_v8, %v4478_v21  ;;  %v4526_v2 = vcombine.low %v4469_v35, %v4485_v40  ;;  %v14000_v25 = vld [vmem:[#allocation38_spill] sm:$0xff] }
 0x4f2   : > { %13996 = vst [vmem:[#allocation19_spill] sm:$0xff] %v11871_v28  ;;  %13997 = vst [vmem:[#allocation24_spill] sm:$0xff] %v11874_v30  ;;  %v5529_v17 = vcombine.low %v14000_v25, %v13999_v50  ;;  %v6124_v51 = vcombine.high %v13995_v39, %v13994_v1  ;;  %v11887_v11 = vrot.slane %v6123_v26, %v9952_v0 }
 0x4f3   : > { %13998 = vst [vmem:[#allocation22_spill] sm:$0xff] %v11877_v42  ;;  %v11890_v4 = vrot.slane %v5169_v34, %v9952_v0  ;;  %v5530_v8 = vcombine.high %v14000_v25, %v13999_v50  ;;  %v11905_v1 = vrot.slane %v4526_v2, %v9964_v5  ;;  %v14003_v50 = vld [vmem:[#allocation54_spill] sm:$0xff]  ;;  %v14004_v25 = vld [vmem:[#allocation55_spill] sm:$0xff] }
 0x4f4   : > { %14001 = vst [vmem:[#allocation25_spill] sm:$0xff] %v11887_v11  ;;  %v14005_v34 = vcombine.high %v14003_v50, %v14004_v25  ;;  %v14007_v50 = vld [vmem:[#allocation44_spill] sm:$0xff]  ;;  %v14008_v25 = vld [vmem:[#allocation42_spill] sm:$0xff] }
 0x4f5   : > { %14002 = vst [vmem:[#allocation23_spill] sm:$0xff] %v11905_v1  ;;  %v11922_v42 = vrot.slane %v5530_v8, %v9952_v0  ;;  %v14012_v8 = vld [vmem:[#allocation57_spill] sm:$0xff] }
 0x4f9   : > { %v3882_v15 = vpop.permute.xlu0 %3881  ;;  %v3878_v55 = vpop.permute.xlu1 %3877 }
 0x4fd   : > { %v3890_v52 = vpop.permute.xlu0 %3889  ;;  %v3886_v27 = vpop.permute.xlu1 %3885 }
 0x4fe   : > { %v3941_v58 = vcombine.low %v3882_v15, %v3890_v52  ;;  %v3942_v53 = vcombine.high %v3882_v15, %v3890_v52  ;;  %v3925_v28 = vcombine.low %v3878_v55, %v3886_v27  ;;  %v3926_v44 = vcombine.high %v3878_v55, %v3886_v27 }
 0x4ff   : > { %v11899_v15 = vrot.slane %v4510_v9, %v9964_v5  ;;  %v11902_v55 = vrot.slane %v4511_v45, %v9964_v5  ;;  %v3625_v27 = vrot.slane %v14005_v34, %v9964_v5  ;;  %v6171_v45 = vcombine.low %v11858_v36, %v11887_v11  ;;  %v14013_v11 = vld [vmem:[#allocation56_spill] sm:$0xff] }
 0x500   : > { %v3949_v35 = vrot.slane %v3941_v58, %v9952_v0  ;;  %v3956_v21 = vrot.slane %v3942_v53, %v9952_v0  ;;  %v3933_v52 = vrot.slane %v3925_v28, %v9952_v0  ;;  %v3940_v40 = vrot.slane %v3926_v44, %v9952_v0 }
 0x501   : > { %v4243_v39 = vpop.permute.xlu0 %4242  ;;  %v4239_v26 = vpop.permute.xlu1 %4238  ;;  %v11912_v28 = vrot.slane %v5529_v17, %v9952_v0  ;;  %v11915_v53 = vrot.slane %v6124_v51, %v9952_v0  ;;  %v6468_v34 = vcombine.low %v14008_v25, %v14007_v50  ;;  %v3676_v2 = vcombine.low %v3625_v27, %v11710_v62  ;;  %v14014_v25 = vld [vmem:[#allocation58_spill] sm:$0xff]  ;;  %v14015_v50 = vld [vmem:[#allocation59_spill] sm:$0xff] }
 0x502   : > { %v3989_v44 = vcombine.low %v3933_v52, %v3949_v35  ;;  %v3990_v58 = vcombine.high %v3933_v52, %v3949_v35  ;;  %v4005_v9 = vcombine.low %v3940_v40, %v3956_v21  ;;  %v14010_v52 = vld [vmem:[#allocation37_spill] sm:$0xff]  ;;  %v3675_v36 = vcombine.high %v14013_v11, %v14012_v8 }
 0x503   : > { %14006 = vst [vmem:[#allocation28_spill] sm:$0xff] %v11915_v53  ;;  %v14011_v53 = vld [vmem:[#allocation35_spill] sm:$0xff]  ;;  %v4006_v13 = vcombine.high %v3940_v40, %v3956_v21 }
 0x504   : > { %v11927_v17 = vrot.slane %v3989_v44, %v9964_v5  ;;  %v4004_v35 = vrot.slane %v3990_v58, %v9964_v5  ;;  %v11931_v51 = vrot.slane %v4005_v9, %v9964_v5  ;;  %v5184_v30 = vcombine.low %v14011_v53, %v14010_v52 }
 0x505   : > { %v4251_v33 = vpop.permute.xlu0 %4250  ;;  %v4247_v14 = vpop.permute.xlu1 %4246  ;;  %v14016_v44 = vcombine.low %v14014_v25, %v14015_v50 }
 0x506   : > { %14009 = vst [vmem:[#allocation26_spill] sm:$0xff] %v11927_v17  ;;  %v4302_v9 = vcombine.low %v4243_v39, %v4251_v33  ;;  %v4303_v20 = vcombine.high %v4243_v39, %v4251_v33  ;;  %v4286_v63 = vcombine.low %v4239_v26, %v4247_v14  ;;  %v4287_v19 = vcombine.high %v4239_v26, %v4247_v14 }
 0x507   : > { %v3634_v7 = vrot.slane %v14016_v44, %v9964_v5  ;;  %v4055_v1 = vcombine.low %v4004_v35, %v11777_v38  ;;  %v4054_v54 = vcombine.high %v11927_v17, %v11769_v57  ;;  %v4057_v58 = vcombine.low %v11931_v51, %v11780_v29 }
 0x508   : > { %v4310_v8 = vrot.slane %v4302_v9, %v9952_v0  ;;  %v11949_v11 = vrot.slane %v4303_v20, %v9952_v0  ;;  %v4294_v44 = vrot.slane %v4286_v63, %v9952_v0  ;;  %v11955_v33 = vrot.slane %v4287_v19, %v9952_v0 }
 0x509   : > { %v11957_v21 = vpop.permute.xlu0 %3883  ;;  %v11959_v14 = vpop.permute.xlu1 %3879  ;;  %v9160_v40 = vpack.i.bf16 %v4055_v1, %v3676_v2  ;;  %v9155_v39 = vpack.i.bf16 %v4054_v54, %v3675_v36  ;;  %v4056_v26 = vcombine.high %v4004_v35, %v11777_v38  ;;  %v11963_v9 = vrot.slane %v6171_v45, %v9964_v5 }
 0x50a   : > { %v5185_v63 = vcombine.high %v14011_v53, %v14010_v52  ;;  %v4350_v20 = vcombine.low %v4294_v44, %v4310_v8  ;;  %v4351_v57 = vcombine.high %v4294_v44, %v4310_v8  ;;  %v11968_v17 = vrot.slane %v6468_v34, %v9952_v0 }
 0x50b   : > { %9161 = vrot.lane.b32.xlu0 %v9160_v40, %s9693_s12  ;;  %9156 = vrot.lane.b32.xlu1 %v9155_v39, %s9694_s27  ;;  %v3678_v54 = vcombine.low %v3634_v7, %v11713_v61  ;;  %v3677_v19 = vcombine.high %v3625_v27, %v11710_v62  ;;  %v11975_v38 = vrot.slane %v5184_v30, %v9952_v0 }
 0x50c   : > { %v4020_v36 = vrot.slane %v4006_v13, %v9964_v5  ;;  %v11979_v1 = vrot.slane %v4350_v20, %v9964_v5  ;;  %v4366_v53 = vcombine.low %v11955_v33, %v11949_v11  ;;  %v11984_v45 = vrot.slane %v4351_v57, %v9964_v5 }
 0x50d   : > { %v11986_v2 = vpop.permute.xlu0 %3891  ;;  %v11988_v34 = vpop.permute.xlu1 %3887  ;;  %v9170_v35 = vpack.i.bf16 %v4057_v58, %v3678_v54  ;;  %v9165_v62 = vpack.i.bf16 %v4056_v26, %v3677_v19  ;;  %v4058_v30 = vcombine.high %v11931_v51, %v11780_v29  ;;  %v5199_v13 = vrot.slane %v5185_v63, %v9952_v0 }
 0x50e   : > { %14017 = vst [vmem:[#allocation29_spill] sm:$0xff] %v11979_v1  ;;  %v4077_v52 = vcombine.low %v11957_v21, %v11986_v2  ;;  %v4061_v57 = vcombine.low %v11959_v14, %v11988_v34  ;;  %v3679_v8 = vcombine.high %v3634_v7, %v11713_v61  ;;  %v4415_v29 = vcombine.high %v11979_v1, %v11800_v18  ;;  %v14033_v1 = vld [vmem:[#allocation50_spill] sm:$0xff] }
 0x50f   : > { %9171 = vrot.lane.b32.xlu0 %v9170_v35, %s9670_s26  ;;  %9166 = vrot.lane.b32.xlu1 %v9165_v62, %s9695_s30  ;;  %v14018_v51 = vcombine.high %v14014_v25, %v14015_v50  ;;  %v5224_v44 = vcombine.low %v11880_v48, %v11975_v38  ;;  %v12011_v40 = vrot.slane %v4366_v53, %v9964_v5  ;;  %v14020_v35 = vld [vmem:[#allocation41_spill] sm:$0xff]  ;;  %v14021_v62 = vld [vmem:[#allocation39_spill] sm:$0xff] }
 0x510   : > { %v4085_v39 = vrot.slane %v4077_v52, %v9952_v0  ;;  %v4069_v26 = vrot.slane %v4061_v57, %v9952_v0  ;;  %v9175_v61 = vpack.i.bf16 %v4058_v30, %v3679_v8  ;;  %v14019_v20 = vcombine.high %v11460_v23, %v11449_v12  ;;  %v14023_v30 = vld [vmem:[#allocation46_spill] sm:$0xff] }
 0x511   : > { %v3641_v58 = vrot.slane %v14018_v51, %v9964_v5  ;;  %v12015_v63 = vpop.permute.xlu0 %4244  ;;  %v12017_v7 = vpop.permute.xlu1 %4240  ;;  %v4059_v25 = vcombine.low %v4020_v36, %v11787_v37  ;;  %v4416_v54 = vcombine.low %v11984_v45, %v11805_v41  ;;  %v5225_v19 = vcombine.high %v11880_v48, %v11975_v38  ;;  %v14022_v51 = vld [vmem:[#allocation48_spill] sm:$0xff] }
 0x512   : > { %v9180_v50 = vpack.i.bf16 %v14019_v20, %v4415_v29  ;;  %v5240_v53 = vcombine.low %v11890_v4, %v5199_v13  ;;  %v5545_v52 = vcombine.low %v14021_v62, %v14020_v35  ;;  %v4125_v57 = vcombine.low %v4069_v26, %v4085_v39 }
 0x513   : > { %v6243_v8 = vcombine.low %v14023_v30, %v14022_v51  ;;  %v6244_v29 = vcombine.high %v14023_v30, %v14022_v51  ;;  %9176 = vrot.lane.b32.xlu1 %v9175_v61, %s9696_s11  ;;  %v3680_v20 = vcombine.low %v3641_v58, %v11722_v10  ;;  %v12038_v48 = vrot.slane %v5224_v44, %v9964_v5 }
 0x514   : > { %9181 = vrot.lane.b32.xlu0 %v9180_v50, %s9694_s27  ;;  %v5546_v4 = vcombine.high %v14021_v62, %v14020_v35  ;;  %v4060_v38 = vcombine.high %v4020_v36, %v11787_v37  ;;  %v4418_v13 = vcombine.low %v12011_v40, %v11808_v3  ;;  %v4126_v27 = vcombine.high %v4069_v26, %v4085_v39  ;;  %v14026_v62 = vld [vmem:[#allocation61_spill] sm:$0xff] }
 0x515   : > { %v12046_v51 = vrot.slane %v4125_v57, %v9964_v5  ;;  %v12048_v61 = vpop.permute.xlu0 %4252  ;;  %v12050_v50 = vpop.permute.xlu1 %4248  ;;  %v9185_v30 = vpack.i.bf16 %v4059_v25, %v3680_v20  ;;  %v14024_v44 = vcombine.low %v11463_v16, %v11455_v47  ;;  %v5553_v35 = vrot.slane %v5545_v52, %v9952_v0 }
 0x516   : > { %v4438_v37 = vcombine.low %v12015_v63, %v12048_v61  ;;  %v4422_v36 = vcombine.low %v12017_v7, %v12050_v50  ;;  %v3681_v39 = vcombine.high %v3641_v58, %v11722_v10  ;;  %v4367_v26 = vcombine.high %v11955_v33, %v11949_v11  ;;  %v14028_v11 = vld [vmem:[#allocation67_spill] sm:$0xff] }
 0x517   : > { %v9190_v18 = vpack.i.bf16 %v14024_v44, %v4416_v54  ;;  %v4078_v25 = vcombine.high %v11957_v21, %v11986_v2  ;;  %9186 = vrot.lane.b32.xlu1 %v9185_v30, %s13786_s18  ;;  %v14025_v54 = vld [vmem:[#allocation60_spill] sm:$0xff]  ;;  %v4062_v10 = vcombine.high %v11959_v14, %v11988_v34  ;;  %v14029_v33 = vcombine.low %v11474_v43, %v14028_v11 }
 0x518   : > { %v14027_v52 = vcombine.low %v14025_v54, %v14026_v62  ;;  %v9195_v58 = vpack.i.bf16 %v4060_v38, %v3681_v39  ;;  %v4417_v21 = vcombine.high %v11984_v45, %v11805_v41  ;;  %v12081_v2 = vrot.slane %v4126_v27, %v9964_v5 }
 0x519   : > { %9191 = vrot.lane.b32.xlu0 %v9190_v18, %s9693_s12  ;;  %v9205_v20 = vpack.i.bf16 %v14029_v33, %v4418_v13  ;;  %v4446_v18 = vrot.slane %v4438_v37, %v9952_v0  ;;  %v4430_v30 = vrot.slane %v4422_v36, %v9952_v0  ;;  %v12085_v44 = vpop.permute.xlu0 %4958  ;;  %v4174_v14 = vcombine.high %v12046_v51, %v11819_v32 }
 0x51a   : > { %v12071_v57 = vrot.slane %v14027_v52, %v9964_v5  ;;  %v12087_v52 = vpop.permute.xlu1 %4954  ;;  %v12092_v34 = vrot.slane %v5225_v19, %v9964_v5  ;;  %v12095_v38 = vrot.slane %v5240_v53, %v9964_v5  ;;  %v5560_v41 = vrot.slane %v5546_v4, %v9952_v0 }
 0x51b   : > { %v12099_v45 = vrot.slane %v6243_v8, %v9952_v0  ;;  %v5585_v27 = vcombine.low %v11912_v28, %v5553_v35  ;;  %9196 = vrot.lane.b32.xlu1 %v9195_v58, %s13784_s20  ;;  %v14030_v19 = vcombine.high %v14025_v54, %v14026_v62  ;;  %v12113_v4 = vrot.slane %v4367_v26, %v9964_v5 }
 0x51c   : > { %v3795_v13 = vcombine.high %v12071_v57, %v11741_v6  ;;  %v4092_v8 = vrot.slane %v4078_v25, %v9952_v0  ;;  %v4076_v37 = vrot.slane %v4062_v10, %v9952_v0  ;;  %v4419_v36 = vcombine.high %v12011_v40, %v11808_v3  ;;  %v14032_v40 = vld [vmem:[#allocation52_spill] sm:$0xff] }
 0x51d   : > { %9206 = vrot.lane.b32.xlu0 %v9205_v20, %s9670_s26  ;;  %v12110_v53 = vrot.slane %v14030_v19, %v9964_v5  ;;  %v4486_v39 = vcombine.low %v4430_v30, %v4446_v18  ;;  %v12119_v58 = vpop.permute.xlu0 %4966  ;;  %v14031_v54 = vcombine.high %v11463_v16, %v11455_v47  ;;  %v4176_v26 = vcombine.high %v12081_v2, %v11826_v60 }
 0x51e   : > { %v12121_v33 = vpop.permute.xlu1 %4962  ;;  %v9225_v20 = vpack.i.bf16 %v4174_v14, %v3795_v13  ;;  %v5586_v25 = vcombine.high %v11912_v28, %v5553_v35  ;;  %v5601_v10 = vcombine.low %v11922_v42, %v5560_v41  ;;  %v12131_v19 = vrot.slane %v6244_v29, %v9952_v0 }
 0x51f   : > { %v9200_v62 = vpack.i.bf16 %v14031_v54, %v4417_v21  ;;  %v4439_v3 = vcombine.high %v12015_v63, %v12048_v61  ;;  %v6604_v12 = vcombine.low %v14033_v1, %v14032_v40  ;;  %v4423_v47 = vcombine.high %v12017_v7, %v12050_v50 }
 0x520   : > { %v3797_v16 = vcombine.high %v12110_v53, %v11744_v31  ;;  %v12144_v42 = vrot.slane %v5585_v27, %v9964_v5  ;;  %v4141_v28 = vcombine.low %v4076_v37, %v4092_v8  ;;  %v14034_v63 = vcombine.high %v11474_v43, %v14028_v11 }
 0x521   : > { %9201 = vrot.lane.b32.xlu1 %v9200_v62, %s9695_s30  ;;  %9226 = vrot.lane.b32.xlu0 %v9225_v20, %s9698_s21  ;;  %v4420_v61 = vcombine.low %v12113_v4, %v11811_v49  ;;  %v4487_v7 = vcombine.high %v4430_v30, %v4446_v18  ;;  %v12152_v50 = vrot.slane %v4486_v39, %v9964_v5  ;;  %v12154_v35 = vpop.permute.xlu0 %5319  ;;  %v14038_v39 = vld [vmem:[#allocation69_spill] sm:$0xff] }
 0x522   : > { %v9210_v29 = vpack.i.bf16 %v14034_v63, %v4419_v36  ;;  %v12156_v21 = vpop.permute.xlu1 %5315  ;;  %v9235_v14 = vpack.i.bf16 %v4176_v26, %v3797_v16  ;;  %v4173_v41 = vcombine.low %v12046_v51, %v11819_v32  ;;  %v12161_v27 = vrot.slane %v5586_v25, %v9964_v5  ;;  %v14035_v32 = vld [vmem:[#allocation49_spill] sm:$0xff]  ;;  %v14036_v51 = vld [vmem:[#allocation47_spill] sm:$0xff]  ;;  %v14040_v63 = vld [vmem:[#allocation72_spill] sm:$0xff] }
 0x523   : > { %v12164_v43 = vrot.slane %v5601_v10, %v9964_v5  ;;  %v4453_v11 = vrot.slane %v4439_v3, %v9952_v0  ;;  %v3794_v18 = vcombine.low %v12071_v57, %v11741_v6  ;;  %v4437_v30 = vrot.slane %v4423_v47, %v9952_v0  ;;  %v14037_v57 = vld [vmem:[#allocation68_spill] sm:$0xff] }
 0x524   : > { %v5152_v13 = vcombine.low %v12085_v44, %v12119_v58  ;;  %v5136_v8 = vcombine.low %v12087_v52, %v12121_v33  ;;  %v6259_v37 = vcombine.low %v14036_v51, %v14035_v32  ;;  %v12179_v36 = vrot.slane %v6604_v12, %v9952_v0 }
 0x525   : > { %9211 = vrot.lane.b32.xlu1 %v9210_v29, %s9696_s11  ;;  %9236 = vrot.lane.b32.xlu0 %v9235_v14, %s9669_s25  ;;  %v4148_v6 = vrot.slane %v4141_v28, %v9964_v5  ;;  %v14039_v54 = vcombine.low %v14037_v57, %v14038_v39  ;;  %v12186_v20 = vrot.slane %v4487_v7, %v9964_v5  ;;  %v5328_v26 = vpop.permute.xlu0 %5327  ;;  %v14041_v29 = vld [vmem:[#allocation73_spill] sm:$0xff] }
 0x526   : > { %v5324_v25 = vpop.permute.xlu1 %5323  ;;  %v9240_v10 = vpack.i.bf16 %v4173_v41, %v3794_v18  ;;  %v4421_v3 = vcombine.high %v12113_v4, %v11811_v49  ;;  %v4535_v47 = vcombine.high %v12152_v50, %v11899_v15  ;;  %v6260_v12 = vcombine.high %v14036_v51, %v14035_v32 }
 0x527   : > { %v9215_v62 = vpack.i.bf16 %v14039_v54, %v4420_v61  ;;  %v5513_v16 = vcombine.low %v12154_v35, %v5328_v26  ;;  %v5497_v28 = vcombine.low %v12156_v21, %v5324_v25  ;;  %v14042_v61 = vcombine.low %v14040_v63, %v14041_v29 }
 0x528   : > { %v4502_v14 = vcombine.low %v4437_v30, %v4453_v11  ;;  %v5160_v41 = vrot.slane %v5152_v13, %v9952_v0  ;;  %v5144_v49 = vrot.slane %v5136_v8, %v9952_v0  ;;  %v4175_v32 = vcombine.low %v12081_v2, %v11826_v60 }
 0x529   : > { %v3769_v7 = vrot.slane %v14042_v61, %v9964_v5  ;;  %9216 = vrot.lane.b32.xlu1 %v9215_v62, %s13786_s18  ;;  %9241 = vrot.lane.b32.xlu0 %v9240_v10, %s9699_s29  ;;  %v5521_v4 = vrot.slane %v5513_v16, %v9952_v0  ;;  %v5505_v18 = vrot.slane %v5497_v28, %v9952_v0  ;;  %v6034_v30 = vpop.permute.xlu0 %6033  ;;  %s9701_s18 = smov 28  }
 0x52a   : > { %v4177_v51 = vcombine.low %v4148_v6, %v11835_v22  ;;  %v12210_v11 = vrot.slane %v6259_v37, %v9952_v0  ;;  %v6030_v13 = vpop.permute.xlu1 %6029  ;;  %v14043_v8 = vcombine.high %v14037_v57, %v14038_v39  ;;  %v14044_v62 = vcombine.high %v11573_v56, %v11501_v24 }
 0x52b   : > { %v4537_v16 = vcombine.high %v12186_v20, %v11902_v55  ;;  %v12221_v60 = vrot.slane %v6260_v12, %v9952_v0  ;;  %v5561_v22 = vcombine.low %v5505_v18, %v5521_v4  ;;  %v3796_v2 = vcombine.low %v12110_v53, %v11744_v31 }
 0x52c   : > { %v9220_v54 = vpack.i.bf16 %v14043_v8, %v4421_v3  ;;  %v9250_v10 = vpack.i.bf16 %v14044_v62, %v4535_v47  ;;  %v3798_v37 = vcombine.low %v3769_v7, %v11749_v46  ;;  %v5200_v6 = vcombine.low %v5144_v49, %v5160_v41 }
 0x52d   : > { %v5514_v57 = vcombine.high %v12154_v35, %v5328_v26  ;;  %v5498_v39 = vcombine.high %v12156_v21, %v5324_v25  ;;  %v4509_v3 = vrot.slane %v4502_v14, %v9964_v5  ;;  %v9230_v47 = vpack.i.bf16 %v4175_v32, %v3796_v2  ;;  %v6042_v35 = vpop.permute.xlu0 %6041  ;;  %v14045_v26 = vld [vmem:[#allocation74_spill] sm:$0xff] }
 0x52e   : > { %9221 = vrot.lane.b32.xlu1 %v9220_v54, %s13784_s20  ;;  %9251 = vrot.lane.b32.xlu0 %v9250_v10, %s9698_s21  ;;  %v9245_v12 = vpack.i.bf16 %v4177_v51, %v3798_v37  ;;  %v4534_v28 = vcombine.low %v12152_v50, %v11899_v15  ;;  %v5153_v31 = vcombine.high %v12085_v44, %v12119_v58  ;;  %v6038_v21 = vpop.permute.xlu1 %6037  ;;  %s9700_s20 = smov 2  }
 0x52f   : > { %v5562_v46 = vcombine.high %v5505_v18, %v5521_v4  ;;  %v12236_v53 = vrot.slane %v5561_v22, %v9964_v5  ;;  %v14046_v25 = vcombine.high %v11576_v59, %v14045_v26  ;;  %v5137_v29 = vcombine.high %v12087_v52, %v12121_v33  ;;  %v14050_v22 = vld [vmem:[#allocation43_spill] sm:$0xff] }
 0x530   : > { %v5201_v61 = vcombine.high %v5144_v49, %v5160_v41  ;;  %v6227_v7 = vcombine.low %v6034_v30, %v6042_v35  ;;  %v6211_v14 = vcombine.low %v6030_v13, %v6038_v21  ;;  %v12244_v15 = vrot.slane %v5200_v6, %v9964_v5 }
 0x531   : > { %v9260_v63 = vpack.i.bf16 %v14046_v25, %v4537_v16  ;;  %v5528_v44 = vrot.slane %v5514_v57, %v9952_v0  ;;  %v5512_v58 = vrot.slane %v5498_v39, %v9952_v0  ;;  %v6228_v50 = vcombine.high %v6034_v30, %v6042_v35  ;;  %v12258_v51 = vpop.permute.xlu0 %6394  ;;  %v14049_v16 = vld [vmem:[#allocation45_spill] sm:$0xff] }
 0x532   : > { %9231 = vrot.lane.b32.xlu1 %v9230_v47, %s9700_s20  ;;  %v6212_v4 = vcombine.high %v6030_v13, %v6038_v21  ;;  %v14047_v52 = vcombine.low %v11573_v56, %v11501_v24  ;;  %v4536_v41 = vcombine.low %v12186_v20, %v11902_v55  ;;  %v5576_v49 = vrot.slane %v5562_v46, %v9964_v5  ;;  %v12260_v8 = vpop.permute.xlu1 %6390  ;;  %v14048_v20 = vld [vmem:[#allocation23_spill] sm:$0xff] }
 0x533   : > { %9261 = vrot.lane.b32.xlu0 %v9260_v63, %s9669_s25  ;;  %v6235_v18 = vrot.slane %v6227_v7, %v9952_v0  ;;  %v6219_v32 = vrot.slane %v6211_v14, %v9952_v0  ;;  %v5610_v30 = vcombine.high %v12236_v53, %v12144_v42  ;;  %v6299_v24 = vcombine.low %v12099_v45, %v12210_v11  ;;  %v14053_v21 = vld [vmem:[#allocation51_spill] sm:$0xff] }
 0x534   : > { %v9265_v33 = vpack.i.bf16 %v14047_v52, %v4534_v28  ;;  %v5167_v56 = vrot.slane %v5153_v31, %v9952_v0  ;;  %v5151_v55 = vrot.slane %v5137_v29, %v9952_v0  ;;  %v4538_v13 = vcombine.low %v4509_v3, %v14048_v20 }
 0x535   : > { %v5215_v54 = vrot.slane %v5201_v61, %v9964_v5  ;;  %v5577_v62 = vcombine.low %v5512_v58, %v5528_v44  ;;  %v5249_v10 = vcombine.high %v12244_v15, %v12038_v48  ;;  %v6484_v2 = vcombine.low %v14050_v22, %v14049_v16  ;;  %v12280_v3 = vpop.permute.xlu0 %6402 }
 0x536   : > { %9246 = vrot.lane.b32.xlu1 %v9245_v12, %s9701_s18  ;;  %v6300_v37 = vcombine.high %v12099_v45, %v12210_v11  ;;  %v6242_v6 = vrot.slane %v6228_v50, %v9952_v0  ;;  %v6226_v57 = vrot.slane %v6212_v4, %v9952_v0  ;;  %v6276_v39 = vcombine.high %v6219_v32, %v6235_v18  ;;  %v12282_v47 = vpop.permute.xlu1 %6398  ;;  %v14052_v11 = vld [vmem:[#allocation53_spill] sm:$0xff] }
 0x537   : > { %9266 = vrot.lane.b32.xlu0 %v9265_v33, %s9699_s29  ;;  %v14051_v12 = vcombine.low %v11576_v59, %v14045_v26  ;;  %v9275_v31 = vpack.i.bf16 %v5610_v30, %v5249_v10  ;;  %v5612_v46 = vcombine.high %v5576_v49, %v12161_v27  ;;  %v12289_v35 = vrot.slane %v6299_v24, %v9964_v5  ;;  %v14054_v59 = vld [vmem:[#allocation79_spill] sm:$0xff]  ;;  %v14055_v26 = vld [vmem:[#allocation80_spill] sm:$0xff] }
 0x538   : > { %v6315_v45 = vcombine.low %v12131_v19, %v12221_v60  ;;  %v6620_v25 = vcombine.low %v14053_v21, %v14052_v11  ;;  %v5216_v63 = vcombine.low %v5151_v55, %v5167_v56  ;;  %v5584_v29 = vrot.slane %v5577_v62, %v9964_v5 }
 0x539   : > { %v9255_v28 = vpack.i.bf16 %v14051_v12, %v4536_v41  ;;  %v14056_v61 = vcombine.low %v14054_v59, %v14055_v26  ;;  %v5251_v14 = vcombine.high %v5215_v54, %v12092_v34  ;;  %v6291_v44 = vcombine.low %v6226_v57, %v6242_v6  ;;  %v12310_v52 = vpop.permute.xlu0 %4956 }
 0x53a   : > { %v6588_v19 = vcombine.low %v12258_v51, %v12280_v3  ;;  %v6572_v60 = vcombine.low %v12260_v8, %v12282_v47  ;;  %v5611_v58 = vcombine.low %v5576_v49, %v12161_v27  ;;  %v6275_v50 = vcombine.low %v6219_v32, %v6235_v18  ;;  %v12312_v33 = vpop.permute.xlu1 %4952 }
 0x53b   : > { %9256 = vrot.lane.b32.xlu1 %v9255_v28, %s9700_s20  ;;  %9276 = vrot.lane.b32.xlu0 %v9275_v31, %s9698_s21  ;;  %v9270_v7 = vpack.i.bf16 %v14056_v61, %v4538_v13  ;;  %v12308_v4 = vrot.slane %v6276_v39, %v9964_v5  ;;  %v9285_v41 = vpack.i.bf16 %v5612_v46, %v5251_v14  ;;  %v14060_v31 = vld [vmem:[#allocation77_spill] sm:$0xff]  ;;  %v14061_v46 = vld [vmem:[#allocation78_spill] sm:$0xff] }
 0x53c   : > { %v5609_v30 = vcombine.low %v12236_v53, %v12144_v42  ;;  %v12317_v24 = vrot.slane %v6300_v37, %v9964_v5  ;;  %v6322_v56 = vrot.slane %v6315_v45, %v9964_v5  ;;  %v12321_v55 = vrot.slane %v6620_v25, %v9952_v0  ;;  %v14057_v42 = vld [vmem:[#allocation75_spill] sm:$0xff]  ;;  %v14058_v53 = vld [vmem:[#allocation76_spill] sm:$0xff] }
 0x53d   : > { %v5250_v27 = vcombine.low %v5215_v54, %v12092_v34  ;;  %v5223_v49 = vrot.slane %v5216_v63, %v9964_v5  ;;  %v5248_v18 = vcombine.low %v12244_v15, %v12038_v48  ;;  %v14059_v32 = vcombine.high %v14057_v42, %v14058_v53  ;;  %v4965_v37 = vpop.permute.xlu0 %4964  ;;  %v14063_v63 = vld [vmem:[#allocation7_spill] sm:$0xff] }
 0x53e   : > { %v6298_v13 = vrot.slane %v6291_v44, %v9964_v5  ;;  %v12335_v62 = vrot.slane %v6588_v19, %v9952_v0  ;;  %v12338_v34 = vrot.slane %v6572_v60, %v9952_v0  ;;  %v12341_v10 = vrot.slane %v6275_v50, %v9964_v5  ;;  %v4961_v6 = vpop.permute.xlu1 %4960 }
 0x53f   : > { %9271 = vrot.lane.b32.xlu1 %v9270_v7, %s9701_s18  ;;  %9286 = vrot.lane.b32.xlu0 %v9285_v41, %s9669_s25  ;;  %v5929_v20 = vrot.slane %v14059_v32, %v9964_v5  ;;  %v9280_v54 = vpack.i.bf16 %v5611_v58, %v5250_v27  ;;  %v9290_v48 = vpack.i.bf16 %v5609_v30, %v5248_v18 }
 0x540   : > { %v5613_v15 = vcombine.low %v5584_v29, %v12164_v43  ;;  %v6325_v57 = vcombine.low %v12308_v4, %v12317_v24  ;;  %v6660_v39 = vcombine.low %v12179_v36, %v12321_v55  ;;  %v5016_v12 = vcombine.low %v12310_v52, %v4965_v37 }
 0x541   : > { %v5000_v28 = vcombine.low %v12312_v33, %v4961_v6  ;;  %v14062_v45 = vcombine.low %v14060_v31, %v14061_v46  ;;  %v5252_v43 = vcombine.low %v5223_v49, %v12095_v38  ;;  %v5964_v29 = vcombine.low %v5929_v20, %v14063_v63  ;;  %v5318_v60 = vpop.permute.xlu0 %5317  ;;  %v14065_v49 = vld [vmem:[#allocation16_spill] sm:$0xff] }
 0x542   : > { %v14064_v59 = vcombine.low %v14057_v42, %v14058_v53  ;;  %v6636_v61 = vcombine.low %v12338_v34, %v12335_v62  ;;  %v5024_v7 = vrot.slane %v5016_v12, %v9952_v0  ;;  %v6327_v44 = vcombine.low %v6298_v13, %v6322_v56  ;;  %v5314_v38 = vpop.permute.xlu1 %5313  ;;  %v14066_v53 = vld [vmem:[#allocation64_spill] sm:$0xff]  ;;  %v14067_v56 = vld [vmem:[#allocation62_spill] sm:$0xff] }
 0x543   : > { %v5937_v25 = vrot.slane %v14062_v45, %v9964_v5  ;;  %9281 = vrot.lane.b32.xlu1 %v9280_v54, %s9700_s20  ;;  %9291 = vrot.lane.b32.xlu0 %v9290_v48, %s9699_s29  ;;  %v5008_v14 = vrot.slane %v5000_v28, %v9952_v0  ;;  %v12367_v19 = vrot.slane %v6484_v2, %v9952_v0  ;;  %v14068_v2 = vld [vmem:[#allocation8_spill] sm:$0xff]  ;;  %v14069_v45 = vld [vmem:[#allocation14_spill] sm:$0xff] }
 0x544   : > { %v5922_v26 = vrot.slane %v14064_v59, %v9964_v5  ;;  %v9295_v58 = vpack.i.bf16 %v5613_v15, %v5252_v43  ;;  %v9305_v50 = vpack.i.bf16 %v6325_v57, %v5964_v29  ;;  %v6324_v41 = vcombine.high %v12341_v10, %v12289_v35 }
 0x545   : > { %v6661_v30 = vcombine.high %v12179_v36, %v12321_v55  ;;  %v5064_v27 = vcombine.low %v5008_v14, %v5024_v7  ;;  %v5966_v18 = vcombine.low %v5937_v25, %v14065_v49  ;;  %v6668_v42 = vrot.slane %v6660_v39, %v9964_v5  ;;  %v5326_v28 = vpop.permute.xlu0 %5325 }
 0x546   : > { %v5731_v32 = vcombine.high %v14067_v56, %v14066_v53  ;;  %v5963_v13 = vcombine.high %v5922_v26, %v14068_v2  ;;  %v6326_v54 = vcombine.high %v12308_v4, %v12317_v24  ;;  %v5965_v55 = vcombine.high %v5929_v20, %v14063_v63  ;;  %v5322_v31 = vpop.permute.xlu1 %5321 }
 0x547   : > { %9296 = vrot.lane.b32.xlu1 %v9295_v58, %s9701_s18  ;;  %9306 = vrot.lane.b32.xlu0 %v9305_v50, %s9700_s20  ;;  %v12383_v48 = vrot.slane %v5064_v27, %v9964_v5  ;;  %v9320_v36 = vpack.i.bf16 %v6327_v44, %v5966_v18  ;;  %v6644_v15 = vrot.slane %v6636_v61, %v9964_v5  ;;  %v14070_v50 = vld [vmem:[#allocation65_spill] sm:$0xff] }
 0x548   : > { %v6637_v57 = vcombine.high %v12338_v34, %v12335_v62  ;;  %v5017_v39 = vcombine.high %v12310_v52, %v4965_v37  ;;  %v5001_v12 = vcombine.high %v12312_v33, %v4961_v6  ;;  %v9300_v46 = vpack.i.bf16 %v6324_v41, %v5963_v13  ;;  %v14071_v41 = vld [vmem:[#allocation63_spill] sm:$0xff] }
 0x549   : > { %v5377_v24 = vcombine.low %v5318_v60, %v5326_v28  ;;  %v5378_v25 = vcombine.high %v5318_v60, %v5326_v28  ;;  %v5361_v43 = vcombine.low %v5314_v38, %v5322_v31  ;;  %v5362_v29 = vcombine.high %v5314_v38, %v5322_v31  ;;  %v6032_v44 = vpop.permute.xlu0 %6031 }
 0x54a   : > { %v9310_v20 = vpack.i.bf16 %v6326_v54, %v5965_v55  ;;  %v6323_v52 = vcombine.low %v12341_v10, %v12289_v35  ;;  %v6685_v37 = vcombine.high %v6644_v15, %v6668_v42  ;;  %v12401_v6 = vrot.slane %v5017_v39, %v9952_v0  ;;  %v6028_v60 = vpop.permute.xlu1 %6027  ;;  %v14072_v55 = vld [vmem:[#allocation18_spill] sm:$0xff] }
 0x54b   : > { %9321 = vrot.lane.b32.xlu0 %v9320_v36, %s9701_s18  ;;  %9301 = vrot.lane.b32.xlu1 %v9300_v46, %s9698_s21  ;;  %v5385_v33 = vrot.slane %v5377_v24, %v9952_v0  ;;  %v5392_v62 = vrot.slane %v5378_v25, %v9952_v0  ;;  %v5369_v34 = vrot.slane %v5361_v43, %v9952_v0 }
 0x54c   : > { %v12404_v63 = vrot.slane %v5001_v12, %v9952_v0  ;;  %v5065_v59 = vcombine.high %v5008_v14, %v5024_v7  ;;  %v5376_v61 = vrot.slane %v5362_v29, %v9952_v0  ;;  %v6532_v35 = vcombine.low %v11968_v17, %v12367_v19 }
 0x54d   : > { %v5425_v10 = vcombine.low %v5369_v34, %v5385_v33  ;;  %v5426_v38 = vcombine.high %v5369_v34, %v5385_v33  ;;  %v5962_v58 = vcombine.low %v5922_v26, %v14068_v2  ;;  %v5715_v27 = vcombine.high %v14071_v41, %v14070_v50  ;;  %v6040_v54 = vpop.permute.xlu0 %6039  ;;  %v14073_v33 = vld [vmem:[#allocation19_spill] sm:$0xff] }
 0x54e   : > { %v5441_v49 = vcombine.low %v5376_v61, %v5392_v62  ;;  %v12415_v7 = vrot.slane %v6661_v30, %v9964_v5  ;;  %v12418_v14 = vrot.slane %v5731_v32, %v9952_v0  ;;  %v12424_v26 = vrot.slane %v6637_v57, %v9964_v5  ;;  %v6036_v30 = vpop.permute.xlu1 %6035 }
 0x54f   : > { %9311 = vrot.lane.b32.xlu1 %v9310_v20, %s9669_s25  ;;  %6722 = vrot.lane.b32.xlu0 %v6685_v37, %s9698_s21  ;;  %v12421_v18 = vrot.slane %v5425_v10, %v9964_v5  ;;  %v9315_v53 = vpack.i.bf16 %v6323_v52, %v5962_v58  ;;  %v5079_v56 = vrot.slane %v5065_v59, %v9964_v5  ;;  %v14074_v10 = vld [vmem:[#allocation12_spill] sm:$0xff]  ;;  %s14091_s21 = smov 78  }
 0x550   : > { %v5080_v2 = vcombine.low %v12404_v63, %v12401_v6  ;;  %v5440_v13 = vrot.slane %v5426_v38, %v9964_v5  ;;  %v6684_v36 = vcombine.low %v6644_v15, %v6668_v42  ;;  %v6091_v39 = vcombine.low %v6032_v44, %v6040_v54 }
 0x551   : > { %v6075_v12 = vcombine.low %v6028_v60, %v6036_v30  ;;  %v5129_v28 = vcombine.high %v12383_v48, %v14069_v45  ;;  %v5442_v57 = vcombine.high %v5376_v61, %v5392_v62  ;;  %v5449_v31 = vrot.slane %v5441_v49, %v9964_v5  ;;  %v12441_v43 = vpop.permute.xlu0 %6392 }
 0x552   : > { %v5490_v46 = vcombine.high %v12421_v18, %v14072_v55  ;;  %v6092_v24 = vcombine.high %v6032_v44, %v6040_v54  ;;  %v6099_v42 = vrot.slane %v6091_v39, %v9952_v0  ;;  %v6076_v15 = vcombine.high %v6028_v60, %v6036_v30  ;;  %v12443_v29 = vpop.permute.xlu1 %6388 }
 0x553   : > { %9316 = vrot.lane.b32.xlu1 %v9315_v53, %s9699_s29  ;;  %6718 = vrot.lane.b32.xlu0 %v6684_v36, %s9699_s29  ;;  %v6083_v25 = vrot.slane %v6075_v12, %v9952_v0  ;;  %v6686_v20 = vcombine.low %v12424_v26, %v12415_v7  ;;  %v5492_v62 = vcombine.high %v5440_v13, %v14073_v33  ;;  %v14076_v12 = vld [vmem:[#allocation17_spill] sm:$0xff]  ;;  %s14095_s29 = smov 91  }
 0x554   : > { %v9325_v52 = vpack.i.bf16 %v5490_v46, %v5129_v28  ;;  %v5491_v34 = vcombine.low %v5440_v13, %v14073_v33  ;;  %v12450_v37 = vrot.slane %v5715_v27, %v9952_v0  ;;  %v5081_v59 = vcombine.high %v12404_v63, %v12401_v6  ;;  %v14075_v63 = vld [vmem:[#allocation24_spill] sm:$0xff]  ;;  %v14078_v46 = vld [vmem:[#allocation71_spill] sm:$0xff] }
 0x555   : > { %v5088_v61 = vrot.slane %v5080_v2, %v9964_v5  ;;  %v6139_v44 = vcombine.low %v6083_v25, %v6099_v42  ;;  %v5456_v60 = vrot.slane %v5442_v57, %v9964_v5  ;;  %v5131_v38 = vcombine.high %v5079_v56, %v14074_v10  ;;  %v12470_v53 = vpop.permute.xlu0 %6400  ;;  %v14077_v57 = vld [vmem:[#allocation70_spill] sm:$0xff] }
 0x556   : > { %v5130_v58 = vcombine.low %v5079_v56, %v14074_v10  ;;  %v12461_v50 = vrot.slane %v6092_v24, %v9952_v0  ;;  %v12464_v41 = vrot.slane %v6076_v15, %v9952_v0  ;;  %v5494_v27 = vcombine.high %v5449_v31, %v14075_v63  ;;  %v12472_v2 = vpop.permute.xlu1 %6396  ;;  %v14081_v10 = vld [vmem:[#allocation25_spill] sm:$0xff] }
 0x557   : > { %6726 = vrot.lane.b32.xlu1 %v6686_v20, %s9700_s20  ;;  %9326 = vrot.lane.b32.xlu0 %v9325_v52, %s9694_s27  ;;  %v12467_v6 = vrot.slane %v6139_v44, %v9964_v5  ;;  %v6140_v49 = vcombine.high %v6083_v25, %v6099_v42  ;;  %v9335_v13 = vpack.i.bf16 %v5492_v62, %v5131_v38  ;;  %s14116_s20 = smov 37  }
 0x558   : > { %v9330_v54 = vpack.i.bf16 %v5491_v34, %v5130_v58  ;;  %v5493_v56 = vcombine.low %v5449_v31, %v14075_v63  ;;  %v6452_v36 = vcombine.low %v12441_v43, %v12470_v53  ;;  %v6436_v39 = vcombine.low %v12443_v29, %v12472_v2  ;;  %v14079_v34 = vld [vmem:[#allocation22_spill] sm:$0xff]  ;;  %v14083_v63 = vld [vmem:[#allocation28_spill] sm:$0xff] }
 0x559   : > { %v5133_v28 = vcombine.high %v5088_v61, %v14076_v12  ;;  %v5779_v24 = vcombine.high %v14078_v46, %v14077_v57  ;;  %v5095_v42 = vrot.slane %v5081_v59, %v9964_v5  ;;  %v5132_v31 = vcombine.low %v5088_v61, %v14076_v12  ;;  %v14080_v61 = vld [vmem:[#allocation20_spill] sm:$0xff]  ;;  %v14087_v12 = vld [vmem:[#allocation81_spill] sm:$0xff] }
 0x55a   : > { %v6155_v15 = vcombine.low %v12464_v41, %v12461_v50  ;;  %v12491_v25 = vrot.slane %v6452_v36, %v9952_v0  ;;  %v12494_v20 = vrot.slane %v6436_v39, %v9952_v0  ;;  %v6154_v33 = vrot.slane %v6140_v49, %v9964_v5  ;;  %v14085_v49 = vld [vmem:[#allocation13_spill] sm:$0xff]  ;;  %v14086_v39 = vld [vmem:[#allocation82_spill] sm:$0xff] }
 0x55b   : > { %9336 = vrot.lane.b32.xlu1 %v9335_v13, %s9695_s30  ;;  %9331 = vrot.lane.b32.xlu0 %v9330_v54, %s9693_s12  ;;  %v9345_v52 = vpack.i.bf16 %v5494_v27, %v5133_v28  ;;  %v9340_v62 = vpack.i.bf16 %v5493_v56, %v5132_v31  ;;  %v5495_v59 = vcombine.low %v5456_v60, %v14079_v34  ;;  %v14084_v13 = vld [vmem:[#allocation21_spill] sm:$0xff] }
 0x55c   : > { %v6204_v44 = vcombine.high %v12467_v6, %v11963_v9  ;;  %v14082_v38 = vcombine.high %v14080_v61, %v14081_v10  ;;  %v6187_v54 = vcombine.low %v14084_v13, %v14083_v63  ;;  %v5794_v36 = vcombine.low %v12450_v37, %v12418_v14  ;;  %v14088_v31 = vld [vmem:[#allocation9_spill] sm:$0xff] }
 0x55d   : > { %v6500_v27 = vcombine.low %v12494_v20, %v12491_v25  ;;  %v5134_v56 = vcombine.low %v5095_v42, %v14085_v49  ;;  %v5843_v28 = vcombine.high %v14087_v12, %v14086_v39  ;;  %v5793_v57 = vrot.slane %v5779_v24, %v9964_v5  ;;  %v14089_v61 = vld [vmem:[#allocation5_spill] sm:$0xff] }
 0x55e   : > { %v6186_v58 = vrot.slane %v14082_v38, %v9964_v5  ;;  %v6163_v46 = vrot.slane %v6155_v15, %v9964_v5  ;;  %v14090_v10 = vcombine.high %v14088_v31, %v14089_v61  ;;  %v5496_v24 = vcombine.high %v5456_v60, %v14079_v34  ;;  %v14092_v60 = vld [vmem:[#allocation10_spill] sm:$0xff] }
 0x55f   : > { %9346 = vrot.lane.b32.xlu1 %v9345_v52, %s9696_s11  ;;  %9341 = vrot.lane.b32.xlu0 %v9340_v62, %s9670_s26  ;;  %v12522_v30 = vrot.slane %v6500_v27, %v9964_v5  ;;  %v12528_v52 = vrot.slane %v6532_v35, %v9964_v5  ;;  %v9355_v62 = vpack.i.bf16 %v5495_v59, %v5134_v56  ;;  %v14093_v34 = vld [vmem:[#allocation6_spill] sm:$0xff] }
 0x560   : > { %v5825_v38 = vrot.slane %v14090_v10, %v9964_v5  ;;  %v9350_v32 = vpack.i.bf16 %v6204_v44, %v5843_v28  ;;  %v6205_v4 = vcombine.low %v6154_v33, %v6186_v58  ;;  %v6195_v15 = vrot.slane %v6187_v54, %v9964_v5 }
 0x561   : > { %v5135_v27 = vcombine.high %v5095_v42, %v14085_v49  ;;  %v5802_v35 = vrot.slane %v5794_v36, %v9964_v5  ;;  %v6156_v59 = vcombine.high %v12464_v41, %v12461_v50  ;;  %v14094_v44 = vcombine.low %v14092_v60, %v14093_v34 }
 0x562   : > { %v5844_v61 = vcombine.low %v5793_v57, %v5825_v38  ;;  %v6206_v10 = vcombine.high %v6154_v33, %v6186_v58  ;;  %v6207_v31 = vcombine.low %v6163_v46, %v6195_v15  ;;  %v5795_v42 = vcombine.high %v12450_v37, %v12418_v14 }
 0x563   : > { %9356 = vrot.lane.b32.xlu1 %v9355_v62, %s14091_s21  ;;  %9351 = vrot.lane.b32.xlu0 %v9350_v32, %s9694_s27  ;;  %v5834_v54 = vrot.slane %v14094_v44, %v9964_v5  ;;  %v9365_v56 = vpack.i.bf16 %v5496_v24, %v5135_v27  ;;  %v6188_v32 = vcombine.high %v14084_v13, %v14083_v63  ;;  %v14096_v13 = vld [vmem:[#allocation44_spill] sm:$0xff]  ;;  %v14097_v62 = vld [vmem:[#allocation42_spill] sm:$0xff] }
 0x564   : > { %v9360_v28 = vpack.i.bf16 %v6205_v4, %v5844_v61  ;;  %v5845_v50 = vcombine.high %v5793_v57, %v5825_v38  ;;  %v6170_v36 = vrot.slane %v6156_v59, %v9964_v5  ;;  %v6453_v49 = vcombine.high %v12441_v43, %v12470_v53 }
 0x565   : > { %v5846_v41 = vcombine.low %v5802_v35, %v5834_v54  ;;  %v6437_v4 = vcombine.high %v12443_v29, %v12472_v2  ;;  %v6501_v33 = vcombine.high %v12494_v20, %v12491_v25  ;;  %v6208_v14 = vcombine.high %v6163_v46, %v6195_v15 }
 0x566   : > { %v9370_v58 = vpack.i.bf16 %v6206_v10, %v5845_v50  ;;  %v6202_v37 = vrot.slane %v6188_v32, %v9964_v5  ;;  %v6469_v57 = vcombine.high %v14097_v62, %v14096_v13  ;;  %v6485_v38 = vcombine.high %v14050_v22, %v14049_v16 }
 0x567   : > { %9366 = vrot.lane.b32.xlu1 %v9365_v56, %s14095_s29  ;;  %9361 = vrot.lane.b32.xlu0 %v9360_v28, %s9693_s12  ;;  %v9375_v63 = vpack.i.bf16 %v6207_v31, %v5846_v41  ;;  %v6533_v43 = vcombine.high %v11968_v17, %v12367_v19  ;;  %v5847_v29 = vcombine.high %v5802_v35, %v5834_v54 }
 0x568   : > { %v5809_v53 = vrot.slane %v5795_v42, %v9964_v5  ;;  %v6467_v2 = vrot.slane %v6453_v49, %v9952_v0  ;;  %v6451_v25 = vrot.slane %v6437_v4, %v9952_v0  ;;  %v14098_v20 = vcombine.high %v14092_v60, %v14093_v34 }
 0x569   : > { %v9380_v16 = vpack.i.bf16 %v6208_v14, %v5847_v29  ;;  %v6565_v17 = vcombine.high %v12522_v30, %v12528_v52  ;;  %v6209_v22 = vcombine.low %v6170_v36, %v6202_v37  ;;  %v6515_v19 = vrot.slane %v6501_v33, %v9964_v5 }
 0x56a   : > { %v5841_v46 = vrot.slane %v14098_v20, %v9964_v5  ;;  %v6483_v24 = vrot.slane %v6469_v57, %v9952_v0  ;;  %v6499_v15 = vrot.slane %v6485_v38, %v9952_v0  ;;  %v6547_v27 = vrot.slane %v6533_v43, %v9964_v5  ;;  %v6760_v43 = vld [vmem:[%s13626_s7] sm:$0xf] }
 0x56b   : > { %9371 = vrot.lane.b32.xlu1 %v9370_v58, %s9695_s30  ;;  %9376 = vrot.lane.b32.xlu0 %v9375_v63, %s9670_s26  ;;  %v6589_v61 = vcombine.high %v12258_v51, %v12280_v3  ;;  %v6573_v35 = vcombine.high %v12260_v8, %v12282_v47  ;;  %v6516_v59 = vcombine.low %v6451_v25, %v6467_v2 }
 0x56c   : > { %v5848_v31 = vcombine.low %v5809_v53, %v5841_v46  ;;  %v6566_v34 = vcombine.low %v6515_v19, %v6547_v27  ;;  %v6210_v44 = vcombine.high %v6170_v36, %v6202_v37  ;;  %v6605_v54 = vcombine.high %v14033_v1, %v14032_v40 }
 0x56d   : > { %v6548_v56 = vcombine.low %v6483_v24, %v6499_v15  ;;  %v6621_v28 = vcombine.high %v14053_v21, %v14052_v11  ;;  %v5849_v10 = vcombine.high %v5809_v53, %v5841_v46  ;;  %v6603_v51 = vrot.slane %v6589_v61, %v9952_v0  ;;  %v14102_v61 = vld [vmem:[#allocation56_spill] sm:$0xff] }
 0x56e   : > { %v9385_v60 = vpack.i.bf16 %v6209_v22, %v5848_v31  ;;  %v6587_v8 = vrot.slane %v6573_v35, %v9952_v0  ;;  %v6517_v3 = vcombine.high %v6451_v25, %v6467_v2  ;;  %v6567_v32 = vcombine.high %v6515_v19, %v6547_v27  ;;  %v14103_v35 = vld [vmem:[#allocation57_spill] sm:$0xff] }
 0x56f   : > { %9381 = vrot.lane.b32.xlu0 %v9380_v16, %s9696_s11  ;;  %6690 = vrot.lane.b32.xlu1 %v6565_v17, %s9694_s27  ;;  %v9390_v47 = vpack.i.bf16 %v6210_v44, %v5849_v10  ;;  %v6524_v42 = vrot.slane %v6516_v59, %v9964_v5  ;;  %v6619_v1 = vrot.slane %v6605_v54, %v9952_v0  ;;  %s9703_s27 = smov 115  }
 0x570   : > { %v6549_v40 = vcombine.high %v6483_v24, %v6499_v15  ;;  %v6635_v50 = vrot.slane %v6621_v28, %v9952_v0  ;;  %v6556_v11 = vrot.slane %v6548_v56, %v9964_v5  ;;  %v6652_v21 = vcombine.low %v6587_v8, %v6603_v51  ;;  %v14099_v24 = vld [vmem:[#allocation26_spill] sm:$0xff]  ;;  %v14100_v15 = vld [vmem:[#allocation11_spill] sm:$0xff] }
 0x571   : > { %v6531_v49 = vrot.slane %v6517_v3, %v9964_v5  ;;  %v6687_v38 = vcombine.high %v12424_v26, %v12415_v7  ;;  %v14101_v31 = vcombine.low %v14099_v24, %v14100_v15  ;;  %v14104_v59 = vcombine.low %v14102_v61, %v14103_v35  ;;  %v14107_v15 = vld [vmem:[#allocation29_spill] sm:$0xff] }
 0x572   : > { %v6568_v41 = vcombine.low %v6524_v42, %v6556_v11  ;;  %v6569_v36 = vcombine.high %v6524_v42, %v6556_v11  ;;  %v6676_v4 = vcombine.low %v6619_v1, %v6635_v50  ;;  %v6563_v33 = vrot.slane %v6549_v40, %v9964_v5 }
 0x573   : > { %9386 = vrot.lane.b32.xlu0 %v9385_v60, %s14091_s21  ;;  %6694 = vrot.lane.b32.xlu1 %v6566_v34, %s9693_s12  ;;  %v6659_v14 = vrot.slane %v6652_v21, %v9964_v5  ;;  %s9702_s12 = smov 102  }
 0x574   : > { %v6570_v58 = vcombine.low %v6531_v49, %v6563_v33  ;;  %v6571_v63 = vcombine.high %v6531_v49, %v6563_v33  ;;  %v6683_v37 = vrot.slane %v6676_v4, %v9964_v5 }
 0x576   : > { %v6688_v57 = vcombine.low %v6659_v14, %v6683_v37 }
 0x577   : > { %9391 = vrot.lane.b32.xlu0 %v9390_v47, %s14095_s29  ;;  %6698 = vrot.lane.b32.xlu1 %v6567_v32, %s9695_s30  ;;  %s14115_s30 = smov 76  }
 0x57b   : > { %6702 = vrot.lane.b32.xlu0 %v6568_v41, %s9670_s26  ;;  %6706 = vrot.lane.b32.xlu1 %v6569_v36, %s9696_s11  ;;  %s9704_s11 = smov 89   ;;  %s9707_s26 = smov 11  }
 0x57d   : > { %v9162_v13 = vpop.permute.xlu0 %9161  ;;  %v9157_v62 = vpop.permute.xlu1 %9156 }
 0x57e   : > { %v9159_v16 = vunpack.i.h.bf16 %v9157_v62  ;;  %v9158_v17 = vunpack.i.l.bf16 %v9157_v62  ;;  %v9164_v22 = vunpack.i.h.bf16 %v9162_v13  ;;  %v9163_v19 = vunpack.i.l.bf16 %v9162_v13 }
 0x57f   : > { %6710 = vrot.lane.b32.xlu0 %v6570_v58, %s14091_s21  ;;  %6714 = vrot.lane.b32.xlu1 %v6571_v63, %s14095_s29  ;;  %s9705_s21 = smov 50   ;;  %s9706_s29 = smov 63  }
 0x580   : > { %v4226_v27 = vsel %vm3847_vm5, %v14101_v31, %v9159_v16  ;;  %v3848_v60 = vsel %vm3847_vm5, %v14104_v59, %v9158_v17  ;;  %v14108_v31 = vld [vmem:[#allocation15_spill] sm:$0xff] }
 0x581   : > { %v9172_v29 = vpop.permute.xlu0 %9171  ;;  %v9167_v53 = vpop.permute.xlu1 %9166  ;;  %v3850_v51 = vsel %vm3849_vm7, %v3848_v60, %v9163_v19  ;;  %v4227_v8 = vsel %vm3849_vm7, %v4226_v27, %v9164_v22  ;;  %v14105_v22 = vld [vmem:[#allocation66_spill] sm:$0xff]  ;;  %v14109_v27 = vcombine.low %v14107_v15, %v14108_v31 }
 0x582   : > { %v9169_v34 = vunpack.i.h.bf16 %v9167_v53  ;;  %v9168_v44 = vunpack.i.l.bf16 %v9167_v53  ;;  %v9174_v28 = vunpack.i.h.bf16 %v9172_v29  ;;  %v9173_v10 = vunpack.i.l.bf16 %v9172_v29 }
 0x583   : > { %6734 = vrot.lane.b32.xlu0 %v6688_v57, %s9701_s18  ;;  %6730 = vrot.lane.b32.xlu1 %v6687_v38, %s9669_s25  ;;  %v14106_v19 = vcombine.low %v11460_v23, %v14105_v22  ;;  %s9709_s25 = smov 24   ;;  %s14117_s18 = smov 113  }
 0x584   : > { %v3852_v3 = vsel %vm3851_vm8, %v3850_v51, %v9168_v44  ;;  %v4228_v47 = vsel %vm3851_vm8, %v4227_v8, %v9169_v34 }
 0x585   : > { %v9177_v25 = vpop.permute.xlu1 %9176  ;;  %v3853_v36 = vsel %vm2057_vm6, %v3852_v3, %v9173_v10  ;;  %v4229_v49 = vsel %vm2057_vm6, %v4228_v47, %v9174_v28 }
 0x586   : > { %v12614_v2 = vpop.permute.xlu0 %9181  ;;  %v9179_v32 = vunpack.i.h.bf16 %v9177_v25  ;;  %v9178_v42 = vunpack.i.l.bf16 %v9177_v25 }
 0x587   : > { %6763 = vperm.xlu1 %9395, %v6760_v43   ;;  %v9184_v4 = vunpack.i.h.bf16 %v12614_v2  ;;  %v9183_v33 = vunpack.i.l.bf16 %v12614_v2 }
 0x588   : > { %v3855_v58 = vsel %vm3854_vm10, %v3853_v36, %v9178_v42  ;;  %v4230_v63 = vsel %vm3854_vm10, %v4229_v49, %v9179_v32 }
 0x589   : > { %v9187_v46 = vpop.permute.xlu1 %9186  ;;  %v4940_v24 = vsel %vm3847_vm5, %v14106_v19, %v9184_v4  ;;  %v4587_v61 = vsel %vm3847_vm5, %v14109_v27, %v9183_v33 }
 0x58a   : > { %v9189_v1 = vunpack.i.h.bf16 %v9187_v46  ;;  %v9188_v40 = vunpack.i.l.bf16 %v9187_v46 }
 0x58b   : > { %v12616_v20 = vpop.permute.xlu0 %9191 }
 0x58c   : > { %v9194_v14 = vunpack.i.h.bf16 %v12616_v20  ;;  %v9193_v37 = vunpack.i.l.bf16 %v12616_v20  ;;  %v3857_v13 = vsel %vm3856_vm11, %v3855_v58, %v9188_v40  ;;  %v4231_v62 = vsel %vm3856_vm11, %v4230_v63, %v9189_v1 }
 0x58d   : > { %v9197_v26 = vpop.permute.xlu1 %9196 }
 0x58e   : > { %v9199_v21 = vunpack.i.h.bf16 %v9197_v26  ;;  %v9198_v41 = vunpack.i.l.bf16 %v9197_v26  ;;  %v4588_v44 = vsel %vm3849_vm7, %v4587_v61, %v9193_v37 }
 0x58f   : > { %v12618_v7 = vpop.permute.xlu0 %9206 }
 0x590   : > { %v3859_v43 = vsel %vm3858_vm12, %v3857_v13, %v9198_v41  ;;  %v4232_v29 = vsel %vm3858_vm12, %v4231_v62, %v9199_v21  ;;  %v9209_v10 = vunpack.i.h.bf16 %v12618_v7  ;;  %v9208_v51 = vunpack.i.l.bf16 %v12618_v7 }
 0x593   : > { %v12628_v54 = vpop.permute.xlu0 %9226  ;;  %v9202_v56 = vpop.permute.xlu1 %9201 }
 0x594   : > { %v9229_v25 = vunpack.i.h.bf16 %v12628_v54  ;;  %v9228_v46 = vunpack.i.l.bf16 %v12628_v54  ;;  %v9204_v16 = vunpack.i.h.bf16 %v9202_v56  ;;  %v9203_v17 = vunpack.i.l.bf16 %v9202_v56 }
 0x595   : > { %v4941_v54 = vsel %vm3849_vm7, %v4940_v24, %v9194_v14 }
 0x596   : > { %v4942_v56 = vsel %vm3851_vm8, %v4941_v54, %v9204_v16  ;;  %v4589_v23 = vsel %vm3851_vm8, %v4588_v44, %v9203_v17 }
 0x597   : > { %v12634_v50 = vpop.permute.xlu0 %9236  ;;  %v9212_v11 = vpop.permute.xlu1 %9211  ;;  %v4590_v40 = vsel %vm2057_vm6, %v4589_v23, %v9208_v51  ;;  %v4943_v21 = vsel %vm2057_vm6, %v4942_v56, %v9209_v10 }
 0x598   : > { %v9214_v8 = vunpack.i.h.bf16 %v9212_v11  ;;  %v9213_v3 = vunpack.i.l.bf16 %v9212_v11  ;;  %v9239_v49 = vunpack.i.h.bf16 %v12634_v50  ;;  %v9238_v4 = vunpack.i.l.bf16 %v12634_v50 }
 0x59a   : > { %v4591_v11 = vsel %vm3854_vm10, %v4590_v40, %v9213_v3  ;;  %v4944_v58 = vsel %vm3854_vm10, %v4943_v21, %v9214_v8 }
 0x59b   : > { %v9242_v57 = vpop.permute.xlu0 %9241  ;;  %v9217_v38 = vpop.permute.xlu1 %9216 }
 0x59c   : > { %v9244_v53 = vunpack.i.h.bf16 %v9242_v57  ;;  %v9243_v2 = vunpack.i.l.bf16 %v9242_v57  ;;  %v9219_v47 = vunpack.i.h.bf16 %v9217_v38  ;;  %v9218_v32 = vunpack.i.l.bf16 %v9217_v38 }
 0x59e   : > { %v3861_v20 = vsel %vm3860_vm13, %v3859_v43, %v9243_v2  ;;  %v4233_v26 = vsel %vm3860_vm13, %v4232_v29, %v9244_v53  ;;  %v4592_v37 = vsel %vm3856_vm11, %v4591_v11, %v9218_v32  ;;  %v4945_v13 = vsel %vm3856_vm11, %v4944_v58, %v9219_v47 }
 0x59f   : > { %v3863_v60 = vsel %vm3862_vm14, %v3861_v20, %v9228_v46  ;;  %v4234_v34 = vsel %vm3862_vm14, %v4233_v26, %v9229_v25 }
 0x5a0   : > { %v9252_v35 = vpop.permute.xlu0 %9251  ;;  %v9222_v59 = vpop.permute.xlu1 %9221  ;;  %v6749_v28 = vpack.c.bf16 %v4234_v34, %v3863_v60 }
 0x5a1   : > { %v9224_v33 = vunpack.i.h.bf16 %v9222_v59  ;;  %v9223_v7 = vunpack.i.l.bf16 %v9222_v59  ;;  %v9254_v62 = vunpack.i.h.bf16 %v9252_v35  ;;  %v9253_v57 = vunpack.i.l.bf16 %v9252_v35 }
 0x5a3   : > { %v4593_v16 = vsel %vm3858_vm12, %v4592_v37, %v9223_v7  ;;  %v4946_v17 = vsel %vm3858_vm12, %v4945_v13, %v9224_v33 }
 0x5a4   : > { %v9232_v1 = vpop.permute.xlu1 %9231 }
 0x5a5   : > { %v9262_v42 = vpop.permute.xlu0 %9261  ;;  %v9234_v41 = vunpack.i.h.bf16 %v9232_v1  ;;  %v9233_v36 = vunpack.i.l.bf16 %v9232_v1 }
 0x5a6   : > { %v9264_v54 = vunpack.i.h.bf16 %v9262_v42  ;;  %v9263_v56 = vunpack.i.l.bf16 %v9262_v42 }
 0x5a7   : > { %v4235_v63 = vsel %vm3864_vm15, %v9229_v25, %v9234_v41  ;;  %v3865_v14 = vsel %vm3864_vm15, %v9228_v46, %v9233_v36 }
 0x5a8   : > { %v9247_v43 = vpop.permute.xlu1 %9246  ;;  %v3866_v25 = vsel %vm2035_vm9, %v3865_v14, %v9238_v4  ;;  %v4236_v46 = vsel %vm2035_vm9, %v4235_v63, %v9239_v49 }
 0x5a9   : > { %v9267_v38 = vpop.permute.xlu0 %9266  ;;  %v9249_v53 = vunpack.i.h.bf16 %v9247_v43  ;;  %v9248_v2 = vunpack.i.l.bf16 %v9247_v43 }
 0x5aa   : > { %v9269_v29 = vunpack.i.h.bf16 %v9267_v38  ;;  %v9268_v50 = vunpack.i.l.bf16 %v9267_v38 }
 0x5ab   : > { %v3868_v22 = vsel %vm3867_vm3, %v3866_v25, %v9248_v2  ;;  %v4237_v19 = vsel %vm3867_vm3, %v4236_v46, %v9249_v53 }
 0x5ac   : > { %v4594_v20 = vsel %vm3860_vm13, %v4593_v16, %v9268_v50  ;;  %v4947_v26 = vsel %vm3860_vm13, %v4946_v17, %v9269_v29  ;;  %v6750_v31 = vpack.c.bf16 %v4237_v19, %v3868_v22 }
 0x5ad   : > { %v12686_v24 = vpop.permute.xlu0 %9276  ;;  %v9257_v15 = vpop.permute.xlu1 %9256  ;;  %v4595_v27 = vsel %vm3862_vm14, %v4594_v20, %v9253_v57  ;;  %v4948_v61 = vsel %vm3862_vm14, %v4947_v26, %v9254_v62 }
 0x5ae   : > { %v9259_v35 = vunpack.i.h.bf16 %v9257_v15  ;;  %v9258_v59 = vunpack.i.l.bf16 %v9257_v15  ;;  %6777 = vmatprep.subr.bf16.mxu1 %v6750_v31  ;;  %v6751_v60 = vpack.c.bf16 %v4948_v61, %v4595_v27  ;;  %v9278_v42 = vunpack.i.l.bf16 %v12686_v24 }
 0x5af   : > { %6778 = vmatpush1.bf16.msra.mxu1 %v6749_v28  ;;  %v9279_v28 = vunpack.i.h.bf16 %v12686_v24  ;;  %v14113_v24 = vcombine.low %v12467_v6, %v11963_v9 }
 0x5b0   : > { %v4949_v34 = vsel %vm3864_vm15, %v9254_v62, %v9259_v35  ;;  %v4596_v44 = vsel %vm3864_vm15, %v9253_v57, %v9258_v59  ;;  %v14110_v35 = vcombine.low %v12383_v48, %v14069_v45 }
 0x5b1   : > { %v9287_v23 = vpop.permute.xlu0 %9286  ;;  %v9272_v10 = vpop.permute.xlu1 %9271  ;;  %v4597_v3 = vsel %vm2035_vm9, %v4596_v44, %v9263_v56  ;;  %v4950_v47 = vsel %vm2035_vm9, %v4949_v34, %v9264_v54 }
 0x5b2   : > { %v9274_v51 = vunpack.i.h.bf16 %v9272_v10  ;;  %v9273_v8 = vunpack.i.l.bf16 %v9272_v10  ;;  %v9289_v7 = vunpack.i.h.bf16 %v9287_v23  ;;  %v9288_v11 = vunpack.i.l.bf16 %v9287_v23 }
 0x5b4   : > { %v4598_v32 = vsel %vm3867_vm3, %v4597_v3, %v9273_v8  ;;  %v4951_v1 = vsel %vm3867_vm3, %v4950_v47, %v9274_v51 }
 0x5b5   : > { %v12696_v40 = vpop.permute.xlu0 %9291  ;;  %v9282_v21 = vpop.permute.xlu1 %9281  ;;  %v6752_v41 = vpack.c.bf16 %v4951_v1, %v4598_v32 }
 0x5b6   : > { %v9284_v36 = vunpack.i.h.bf16 %v9282_v21  ;;  %v9283_v49 = vunpack.i.l.bf16 %v9282_v21 }
 0x5b7   : > { %6779 = vmatprep.subr.bf16.mxu1 %v6752_v41 }
 0x5b8   : > { %v5671_v4 = vsel %vm3864_vm15, %v9279_v28, %v9284_v36  ;;  %v5310_v33 = vsel %vm3864_vm15, %v9278_v42, %v9283_v49  ;;  %6780 = vmatpush1.bf16.msra.mxu1 %v6751_v60  ;;  %v14111_v60 = vcombine.low %v12421_v18, %v14072_v55 }
 0x5b9   : > { %v9307_v58 = vpop.permute.xlu0 %9306  ;;  %v9297_v63 = vpop.permute.xlu1 %9296  ;;  %v5311_v13 = vsel %vm2035_vm9, %v5310_v33, %v9288_v11  ;;  %v5672_v62 = vsel %vm2035_vm9, %v5671_v4, %v9289_v7  ;;  %v9294_v11 = vunpack.i.h.bf16 %v12696_v40 }
 0x5ba   : > { %v9299_v14 = vunpack.i.h.bf16 %v9297_v63  ;;  %v9298_v37 = vunpack.i.l.bf16 %v9297_v63  ;;  %v9309_v8 = vunpack.i.h.bf16 %v9307_v58  ;;  %v9308_v3 = vunpack.i.l.bf16 %v9307_v58 }
 0x5bb   : > { %v9293_v58 = vunpack.i.l.bf16 %v12696_v40 }
 0x5bc   : > { %v5312_v57 = vsel %vm3867_vm3, %v5311_v13, %v9298_v37  ;;  %v5673_v38 = vsel %vm3867_vm3, %v5672_v62, %v9299_v14 }
 0x5bd   : > { %v12710_v43 = vpop.permute.xlu0 %9321  ;;  %v12712_v29 = vpop.permute.xlu1 %9301  ;;  %v6754_v50 = vpack.c.bf16 %v5673_v38, %v5312_v57 }
 0x5be   : > { %v9304_v47 = vunpack.i.h.bf16 %v12712_v29  ;;  %v9303_v48 = vunpack.i.l.bf16 %v12712_v29 }
 0x5bf   : > { %6781 = vmatprep.subr.bf16.mxu1 %v6754_v50 }
 0x5c0   : > { %v6385_v63 = vsel %vm3864_vm15, %v9304_v47, %v9309_v8  ;;  %v6024_v14 = vsel %vm3864_vm15, %v9303_v48, %v9308_v3 }
 0x5c1   : > { %v12714_v53 = vpop.permute.xlu0 %6722  ;;  %v9312_v2 = vpop.permute.xlu1 %9311 }
 0x5c2   : > { %v9314_v45 = vunpack.i.h.bf16 %v9312_v2  ;;  %v9313_v32 = vunpack.i.l.bf16 %v9312_v2 }
 0x5c5   : > { %v12716_v16 = vpop.permute.xlu0 %6718  ;;  %v12718_v17 = vpop.permute.xlu1 %9316 }
 0x5c6   : > { %v9319_v9 = vunpack.i.h.bf16 %v12718_v17 }
 0x5c9   : > { %v9327_v25 = vpop.permute.xlu0 %9326  ;;  %v12720_v46 = vpop.permute.xlu1 %6726 }
 0x5ca   : > { %v9329_v22 = vunpack.i.h.bf16 %v9327_v25  ;;  %v9328_v19 = vunpack.i.l.bf16 %v9327_v25  ;;  %v6025_v25 = vsel %vm2035_vm9, %v6024_v14, %v9313_v32 }
 0x5cc   : > { %v5301_v59 = vsel %vm3847_vm5, %v14110_v35, %v9328_v19  ;;  %v5662_v34 = vsel %vm3847_vm5, %v14111_v60, %v9329_v22  ;;  %v9323_v22 = vunpack.i.l.bf16 %v12710_v43 }
 0x5cd   : > { %v9332_v20 = vpop.permute.xlu0 %9331  ;;  %v9337_v26 = vpop.permute.xlu1 %9336 }
 0x5ce   : > { %v9334_v15 = vunpack.i.h.bf16 %v9332_v20  ;;  %v9333_v31 = vunpack.i.l.bf16 %v9332_v20  ;;  %v9339_v44 = vunpack.i.h.bf16 %v9337_v26  ;;  %v9338_v54 = vunpack.i.l.bf16 %v9337_v26 }
 0x5cf   : > { %v6386_v20 = vsel %vm2035_vm9, %v6385_v63, %v9314_v45  ;;  %v9324_v26 = vunpack.i.h.bf16 %v12710_v43 }
 0x5d0   : > { %v5302_v56 = vsel %vm3849_vm7, %v5301_v59, %v9333_v31  ;;  %v5663_v23 = vsel %vm3849_vm7, %v5662_v34, %v9334_v15  ;;  %v6026_v59 = vsel %vm3867_vm3, %v6025_v25, %v9323_v22 }
 0x5d1   : > { %v9342_v27 = vpop.permute.xlu0 %9341  ;;  %v9347_v61 = vpop.permute.xlu1 %9346  ;;  %v5664_v55 = vsel %vm3851_vm8, %v5663_v23, %v9339_v44  ;;  %v5303_v21 = vsel %vm3851_vm8, %v5302_v56, %v9338_v54  ;;  %v6387_v60 = vsel %vm3867_vm3, %v6386_v20, %v9324_v26 }
 0x5d2   : > { %v9344_v10 = vunpack.i.h.bf16 %v9342_v27  ;;  %v9343_v51 = vunpack.i.l.bf16 %v9342_v27  ;;  %v9349_v41 = vunpack.i.h.bf16 %v9347_v61  ;;  %v9348_v36 = vunpack.i.l.bf16 %v9347_v61 }
 0x5d3   : > { %v6756_v3 = vpack.c.bf16 %v6387_v60, %v6026_v59 }
 0x5d4   : > { %v5304_v49 = vsel %vm2057_vm6, %v5303_v21, %v9343_v51  ;;  %v5665_v4 = vsel %vm2057_vm6, %v5664_v55, %v9344_v10 }
 0x5d5   : > { %v9352_v1 = vpop.permute.xlu0 %9351  ;;  %v9357_v18 = vpop.permute.xlu1 %9356  ;;  %v5305_v62 = vsel %vm3854_vm10, %v5304_v49, %v9348_v36  ;;  %v5666_v57 = vsel %vm3854_vm10, %v5665_v4, %v9349_v41 }
 0x5d6   : > { %v9359_v33 = vunpack.i.h.bf16 %v9357_v18  ;;  %v9358_v7 = vunpack.i.l.bf16 %v9357_v18  ;;  %v9354_v44 = vunpack.i.h.bf16 %v9352_v1  ;;  %v9353_v54 = vunpack.i.l.bf16 %v9352_v1 }
 0x5d7   : > { %v14112_v18 = vcombine.low %v14087_v12, %v14086_v39 }
 0x5d8   : > { %v5306_v2 = vsel %vm3856_vm11, %v5305_v62, %v9358_v7  ;;  %v5667_v40 = vsel %vm3856_vm11, %v5666_v57, %v9359_v33 }
 0x5d9   : > { %v9362_v37 = vpop.permute.xlu0 %9361  ;;  %v9367_v13 = vpop.permute.xlu1 %9366 }
 0x5da   : > { %v9369_v38 = vunpack.i.h.bf16 %v9367_v13  ;;  %v9368_v50 = vunpack.i.l.bf16 %v9367_v13  ;;  %v9364_v23 = vunpack.i.h.bf16 %v9362_v37  ;;  %v9363_v10 = vunpack.i.l.bf16 %v9362_v37 }
 0x5dc   : > { %v5307_v19 = vsel %vm3858_vm12, %v5306_v2, %v9368_v50  ;;  %v5668_v15 = vsel %vm3858_vm12, %v5667_v40, %v9369_v38  ;;  %v9318_v38 = vunpack.i.l.bf16 %v12718_v17  ;;  %v14114_v50 = vcombine.low %v12522_v30, %v12528_v52 }
 0x5dd   : > { %v5308_v31 = vsel %vm3860_vm13, %v5307_v19, %v9293_v58  ;;  %v5669_v27 = vsel %vm3860_vm13, %v5668_v15, %v9294_v11  ;;  %v9377_v61 = vpop.permute.xlu0 %9376  ;;  %v9372_v35 = vpop.permute.xlu1 %9371 }
 0x5de   : > { %v5309_v34 = vsel %vm3862_vm14, %v5308_v31, %v9278_v42  ;;  %v5670_v43 = vsel %vm3862_vm14, %v5669_v27, %v9279_v28  ;;  %v9374_v45 = vunpack.i.h.bf16 %v9372_v35  ;;  %v9373_v32 = vunpack.i.l.bf16 %v9372_v35 }
 0x5df   : > { %v6753_v56 = vpack.c.bf16 %v5670_v43, %v5309_v34  ;;  %v6015_v42 = vsel %vm3847_vm5, %v14112_v18, %v9353_v54  ;;  %v6376_v28 = vsel %vm3847_vm5, %v14113_v24, %v9354_v44  ;;  %v9379_v21 = vunpack.i.h.bf16 %v9377_v61 }
 0x5e0   : > { %v6016_v1 = vsel %vm3849_vm7, %v6015_v42, %v9363_v10  ;;  %v6377_v55 = vsel %vm3849_vm7, %v6376_v28, %v9364_v23  ;;  %v9378_v41 = vunpack.i.l.bf16 %v9377_v61 }
 0x5e1   : > { %v9382_v51 = vpop.permute.xlu0 %9381  ;;  %v6691_v8 = vpop.permute.xlu1 %6690  ;;  %6782 = vmatpush1.bf16.msra.mxu1 %v6753_v56  ;;  %v6378_v4 = vsel %vm3851_vm8, %v6377_v55, %v9374_v45  ;;  %v6017_v33 = vsel %vm3851_vm8, %v6016_v1, %v9373_v32  ;;  %v9708_v55 = vmov 0.0  }
 0x5e2   : > { %6783 = vmatprep.subr.bf16.mxu1 %v6756_v3  ;;  %v9384_v39 = vunpack.i.h.bf16 %v9382_v51  ;;  %v9383_v12 = vunpack.i.l.bf16 %v9382_v51  ;;  %v6018_v6 = vsel %vm2057_vm6, %v6017_v33, %v9378_v41  ;;  %v6379_v58 = vsel %vm2057_vm6, %v6378_v4, %v9379_v21  ;;  %8904 = vmatprep.subr.bf16.mxu0 %v9708_v55 }
 0x5e3   : > { %v6737_v2 = vsel %vm3847_vm5, %v14114_v50, %v6691_v8  ;;  %vm7133_vm5 = vcmask 359424  }
 0x5e4   : > { %v6019_v37 = vsel %vm3854_vm10, %v6018_v6, %v9383_v12  ;;  %v6380_v13 = vsel %vm3854_vm10, %v6379_v58, %v9384_v39 }
 0x5e5   : > { %v9387_v36 = vpop.permute.xlu0 %9386  ;;  %v6695_v49 = vpop.permute.xlu1 %6694 }
 0x5e6   : > { %v9389_v7 = vunpack.i.h.bf16 %v9387_v36  ;;  %v9388_v11 = vunpack.i.l.bf16 %v9387_v36  ;;  %v6738_v20 = vsel %vm3849_vm7, %v6737_v2, %v6695_v49  ;;  %vm7135_vm7 = vcmask 449536  }
 0x5e8   : > { %v6020_v40 = vsel %vm3856_vm11, %v6019_v37, %v9388_v11  ;;  %v6381_v25 = vsel %vm3856_vm11, %v6380_v13, %v9389_v7 }
 0x5e9   : > { %v9392_v63 = vpop.permute.xlu0 %9391  ;;  %v6699_v14 = vpop.permute.xlu1 %6698 }
 0x5ea   : > { %v9394_v62 = vunpack.i.h.bf16 %v9392_v63  ;;  %v9393_v57 = vunpack.i.l.bf16 %v9392_v63  ;;  %v6739_v17 = vsel %vm3851_vm8, %v6738_v20, %v6699_v14  ;;  %vm7137_vm8 = vcmask 539648  }
 0x5ec   : > { %v6021_v26 = vsel %vm3858_vm12, %v6020_v40, %v9393_v57  ;;  %v6382_v22 = vsel %vm3858_vm12, %v6381_v25, %v9394_v62 }
 0x5ed   : > { %v6022_v19 = vsel %vm3860_vm13, %v6021_v26, %v9318_v38  ;;  %v6383_v15 = vsel %vm3860_vm13, %v6382_v22, %v9319_v9  ;;  %v6703_v31 = vpop.permute.xlu0 %6702  ;;  %v6707_v30 = vpop.permute.xlu1 %6706 }
 0x5ee   : > { %v6740_v52 = vsel %vm2057_vm6, %v6739_v17, %v6703_v31  ;;  %v6023_v27 = vsel %vm3862_vm14, %v6022_v19, %v9303_v48  ;;  %v6384_v61 = vsel %vm3862_vm14, %v6383_v15, %v9304_v47  ;;  %v6746_v48 = vsel %vm3864_vm15, %v12714_v53, %v12720_v46  ;;  %v6759_v46 = vld [vmem:[%s13625_s6] sm:$0x3] }
 0x5ef   : > { %v6755_v35 = vpack.c.bf16 %v6384_v61, %v6023_v27  ;;  %v6741_v59 = vsel %vm3854_vm10, %v6740_v52, %v6707_v30  ;;  %vm6770_vm6 = vcmask 1043456   ;;  %vm7139_vm10 = vcmask 629760  }
 0x5f0   : > { %vm8622_vm15 = vcmask 986112  }
 0x5f1   : > { %v6711_v60 = vpop.permute.xlu0 %6710  ;;  %v6715_v34 = vpop.permute.xlu1 %6714  ;;  %6784 = vmatpush1.bf16.msra.mxu1 %v6755_v35 }
 0x5f2   : > { %v6742_v43 = vsel %vm3856_vm11, %v6741_v59, %v6711_v60  ;;  %vm7141_vm11 = vcmask 719872  }
 0x5f3   : > { %v6743_v44 = vsel %vm3858_vm12, %v6742_v43, %v6715_v34  ;;  %vm7143_vm12 = vcmask 809984  }
 0x5f4   : > { %v6744_v54 = vsel %vm3860_vm13, %v6743_v44, %v12716_v16  ;;  %vm7145_vm13 = vcmask 900096  }
 0x5f5   : > { %v6735_v29 = vpop.permute.xlu0 %6734  ;;  %v6731_v56 = vpop.permute.xlu1 %6730  ;;  %v6745_v47 = vsel %vm3862_vm14, %v6744_v54, %v12714_v53  ;;  %vm8573_vm14 = vcmask 293888  }
 0x5f6   : > { %v6747_v23 = vsel %vm2035_vm9, %v6746_v48, %v6731_v56  ;;  %v6757_v10 = vpack.c.bf16 %v6745_v47, %v6745_v47  ;;  %vm6850_vm9 = vcmask 89088  }
 0x5f7   : > { %v6748_v51 = vsel %vm3867_vm3, %v6747_v23, %v6735_v29 }
 0x5f8   : > { %v6758_v8 = vpack.c.bf16 %v6748_v51, %v6748_v51  ;;  %v6772_v16 = vsel %vm6770_vm6, %v6757_v10, 0 }
 0x5fa   : > { %8758 = vmatprep.subr.msk.bf16.mxu1 %vm6770_vm6, %v6758_v8 }
 0x5fb   : > { %6786 = vmatpush1.bf16.msra.mxu1 %v6772_v16 }
 0x5fe   : > { %8759 = vmatmul.mubr.msk.bf16.vlgmr.msra.gmra.mrb[16].mxu1 %vm6766_vm0, %v6759_v46 }
 0x606   : > { %v6764_v3 = vpop.permute.xlu1 %6763 }
 0x6d1   : > { %v6811_v53 = vpop.f32.mrb[16].mxu1 }
 0x6d2   : > { %v6812_v45 = vadd.f32 %v6811_v53, %v6764_v3  ;;  %v6813_v32 = vpop.f32.mrb[17].mxu1 }
 0x6d3   : > { %v6815_v18 = vpop.f32.mrb[18].mxu1  ;;  %v6814_v28 = vadd.f32 %v6813_v32, %v6764_v3 }
 0x6d4   : > { %v6818_v42 = vmax.f32 %v6812_v45, 0.0  ;;  %v6816_v24 = vpop.f32.mrb[19].mxu1 }
 0x6d5   : > { %v6819_v1 = vmax.f32 %v6814_v28, 0.0 }
 0x6d6   : > { %6824 = vrot.lane.b32.xlu1 %v6818_v42, %s9702_s12  ;;  %6821 = vrot.lane.b32.xlu0 %v6818_v42, %s9703_s27  ;;  %s14118_s12 = smov 126   ;;  %s9710_s27 = smov 100  }
 0x6da   : > { %6830 = vrot.lane.b32.xlu1 %v6818_v42, %s14115_s30  ;;  %6827 = vrot.lane.b32.xlu0 %v6818_v42, %s9704_s11  ;;  %s9711_s30 = smov 44   ;;  %s9712_s11 = smov 33  }
 0x6de   : > { %6836 = vrot.lane.b32.xlu1 %v6818_v42, %s9705_s21  ;;  %6833 = vrot.lane.b32.xlu0 %v6818_v42, %s9706_s29  ;;  %s9713_s21 = smov 66   ;;  %s9714_s29 = smov 55  }
 0x6e2   : > { %6846 = vrot.lane.b32.xlu1 %v6818_v42, %s9707_s26  ;;  %6839 = vrot.lane.b32.xlu0 %v6818_v42, %s14116_s20  ;;  %s9715_s20 = smov 77  }
 0x6e6   : > { %6842 = vrot.lane.b32.xlu1 %v6818_v42, %s9709_s25  ;;  %6848 = vrot.lane.b32.xlu0 %v6819_v1, %s9707_s26  ;;  %s9716_s25 = smov 88  }
 0x6ea   : > { %6856 = vrot.lane.b32.xlu1 %v6819_v1, %s14117_s18  ;;  %6853 = vrot.lane.b32.xlu0 %v6819_v1, %s14118_s12  ;;  %s9717_s18 = smov 110  }
 0x6ee   : > { %6859 = vrot.lane.b32.xlu0 %v6819_v1, %s9710_s27 }
 0x748   : > { %v6825_v21 = vpop.permute.xlu1 %6824  ;;  %v6822_v41 = vpop.permute.xlu0 %6821 }
 0x749   : > { %v6861_v36 = vcombine.low %v6818_v42, %v6825_v21 }
 0x74b   : > { %v6868_v39 = vrot.slane %v6861_v36, %v9952_v0 }
 0x74c   : > { %v6831_v49 = vpop.permute.xlu1 %6830  ;;  %v6828_v4 = vpop.permute.xlu0 %6827 }
 0x74d   : > { %v6869_v33 = vcombine.low %v6822_v41, %v6828_v4 }
 0x74f   : > { %v6876_v12 = vrot.slane %v6869_v33, %v9952_v0 }
 0x750   : > { %v6837_v7 = vpop.permute.xlu1 %6836  ;;  %v6834_v11 = vpop.permute.xlu0 %6833 }
 0x751   : > { %v6893_v9 = vcombine.low %v6868_v39, %v6876_v12  ;;  %v6894_v6 = vcombine.high %v6868_v39, %v6876_v12  ;;  %v6877_v14 = vcombine.low %v6831_v49, %v6837_v7 }
 0x753   : > { %v6901_v58 = vrot.slane %v6893_v9, %v9964_v5  ;;  %v6908_v63 = vrot.slane %v6894_v6, %v9964_v5  ;;  %v6884_v50 = vrot.slane %v6877_v14, %v9952_v0 }
 0x754   : > { %v6847_v37 = vpop.permute.xlu1 %6846  ;;  %v6840_v13 = vpop.permute.xlu0 %6839 }
 0x755   : > { %v6885_v62 = vcombine.low %v6834_v11, %v6840_v13  ;;  %v8760_v57 = vcombine.low %v6901_v58, %v6908_v63  ;;  %v8762_v38 = vcombine.high %v6901_v58, %v6908_v63 }
 0x757   : > { %v6892_v2 = vrot.slane %v6885_v62, %v9952_v0  ;;  %v12834_v40 = vrot.slane %v8760_v57, %v9952_v0  ;;  %v12837_v25 = vrot.slane %v8762_v38, %v9952_v0 }
 0x758   : > { %v6843_v20 = vpop.permute.xlu1 %6842  ;;  %v6849_v26 = vpop.permute.xlu0 %6848 }
 0x759   : > { %v6909_v22 = vcombine.low %v6884_v50, %v6892_v2  ;;  %v6910_v19 = vcombine.high %v6884_v50, %v6892_v2  ;;  %v7021_v15 = vcombine.high %v12834_v40, %v12837_v25  ;;  %v7020_v17 = vcombine.low %v12834_v40, %v12837_v25 }
 0x75a   : > { %v6851_v52 = vsel %vm6850_vm9, %v6847_v37, %v6849_v26 }
 0x75b   : > { %v6917_v31 = vrot.slane %v6909_v22, %v9964_v5  ;;  %v6924_v30 = vrot.slane %v6910_v19, %v9964_v5 }
 0x75c   : > { %v6857_v27 = vpop.permute.xlu1 %6856  ;;  %v6854_v61 = vpop.permute.xlu0 %6853 }
 0x75d   : > { %v6937_v35 = vcombine.low %v6851_v52, %v6857_v27  ;;  %v6929_v59 = vcombine.low %v6843_v20, %v6854_v61  ;;  %v12846_v60 = vcombine.high %v6901_v58, %v6917_v31  ;;  %v12848_v34 = vcombine.low %v6901_v58, %v6917_v31 }
 0x75e   : > { %v8761_v43 = vcombine.low %v6917_v31, %v6924_v30  ;;  %v8763_v44 = vcombine.high %v6917_v31, %v6924_v30  ;;  %v12857_v10 = vcombine.high %v6908_v63, %v6924_v30  ;;  %v12859_v51 = vcombine.low %v6908_v63, %v6924_v30 }
 0x75f   : > { %v6944_v54 = vrot.slane %v6937_v35, %v9952_v0  ;;  %v6936_v48 = vrot.slane %v6929_v59, %v9952_v0  ;;  %7159 = vrot.lane.b32.xlu0 %v12846_v60, %s13867_s28  ;;  %7155 = vrot.lane.b32.xlu1 %v12848_v34, %s13867_s28  ;;  %v7508_v30 = vrot.slane %v12846_v60, 1  ;;  %v7505_v52 = vrot.slane %v12848_v34, 1 }
 0x760   : > { %v6860_v29 = vpop.permute.xlu0 %6859  ;;  %v12862_v8 = vrot.slane %v8761_v43, %v9952_v0  ;;  %v12865_v16 = vrot.slane %v8763_v44, %v9952_v0  ;;  %v7514_v35 = vrot.slane %v12857_v10, 1  ;;  %v7511_v59 = vrot.slane %v12859_v51, 1 }
 0x761   : > { %v6953_v56 = vcombine.low %v6936_v48, %v6944_v54  ;;  %v6954_v47 = vcombine.high %v6936_v48, %v6944_v54  ;;  %v6952_v23 = vrot.slane %v6860_v29, %v9952_v0  ;;  %v8029_v54 = vrot.slane %v12846_v60, 2 }
 0x762   : > { %v7036_v45 = vcombine.low %v12862_v8, %v12865_v16  ;;  %v7037_v32 = vcombine.high %v12862_v8, %v12865_v16  ;;  %v8026_v48 = vrot.slane %v12848_v34, 2  ;;  %v13085_v8 = vrot.slane %v7020_v17, %v9964_v5 }
 0x763   : > { %v6961_v46 = vrot.slane %v6953_v56, %v9964_v5  ;;  %v6968_v3 = vrot.slane %v6954_v47, %v9964_v5  ;;  %v6969_v53 = vcombine.high %v6952_v23, %v9708_v55  ;;  %7167 = vrot.lane.b32.xlu0 %v12857_v10, %s13867_s28  ;;  %7163 = vrot.lane.b32.xlu1 %v12859_v51, %s13867_s28  ;;  %v8035_v47 = vrot.slane %v12857_v10, 2 }
 0x764   : > { %v6976_v28 = vrot.slane %v6952_v23, %v9964_v5  ;;  %v8032_v23 = vrot.slane %v12859_v51, 2 }
 0x765   : > { %v6983_v18 = vrot.slane %v6969_v53, %v9964_v5  ;;  %v8764_v42 = vcombine.low %v6961_v46, %v6968_v3  ;;  %v8765_v24 = vcombine.high %v6961_v46, %v6968_v3 }
 0x766   : > { %v6984_v41 = vcombine.low %v6961_v46, %v6976_v28  ;;  %v6985_v36 = vcombine.high %v6961_v46, %v6976_v28 }
 0x767   : > { %7334 = vrot.lane.b32.xlu0 %v12846_v60, %s14118_s12  ;;  %7330 = vrot.lane.b32.xlu1 %v12848_v34, %s14118_s12  ;;  %v6987_v1 = vcombine.high %v6968_v3, %v6983_v18  ;;  %v6986_v21 = vcombine.low %v6968_v3, %v6983_v18  ;;  %v12893_v6 = vrot.slane %v8764_v42, %v9952_v0 }
 0x768   : > { %v7509_v33 = vrot.slane %v6985_v36, 1  ;;  %v7506_v39 = vrot.slane %v6984_v41, 1  ;;  %v8027_v7 = vrot.slane %v6984_v41, 2  ;;  %v12903_v37 = vrot.slane %v8765_v24, %v9952_v0 }
 0x769   : > { %v7515_v49 = vrot.slane %v6987_v1, 1  ;;  %v7512_v4 = vrot.slane %v6986_v21, 1  ;;  %v12889_v12 = vrot.slane %v6986_v21, 2  ;;  %v8036_v58 = vrot.slane %v6987_v1, 2 }
 0x76a   : > { %v8030_v62 = vrot.slane %v6985_v36, 2  ;;  %v7072_v50 = vcombine.low %v12893_v6, %v12903_v37  ;;  %v7073_v2 = vcombine.high %v12893_v6, %v12903_v37  ;;  %v7510_v27 = vsel %vm2468_vm1, %v7508_v30, %v7509_v33 }
 0x76b   : > { %7342 = vrot.lane.b32.xlu0 %v12857_v10, %s14118_s12  ;;  %7338 = vrot.lane.b32.xlu1 %v12859_v51, %s14118_s12  ;;  %v7593_v11 = vcombine.low %v7506_v39, %v7512_v4  ;;  %v7601_v9 = vcombine.low %v7509_v33, %v7515_v49  ;;  %v8114_v13 = vcombine.low %v8027_v7, %v12889_v12 }
 0x76c   : > { %v8122_v26 = vcombine.low %v8030_v62, %v8036_v58  ;;  %v7507_v61 = vsel %vm2468_vm1, %v7505_v52, %v7506_v39  ;;  %v7516_v43 = vsel %vm2468_vm1, %v7514_v35, %v7515_v49  ;;  %v7513_v44 = vsel %vm2468_vm1, %v7511_v59, %v7512_v4 }
 0x76d   : > { %v12897_v63 = vrot.slane %v7593_v11, %v9952_v0  ;;  %v12900_v14 = vrot.slane %v7601_v9, %v9952_v0  ;;  %v12916_v20 = vrot.slane %v8114_v13, %v9952_v0  ;;  %v12962_v29 = vsel %vm3501_vm2, %v8029_v54, %v8030_v62 }
 0x76e   : > { %v12921_v22 = vrot.slane %v8122_v26, %v9952_v0  ;;  %v12967_v56 = vsel %vm3501_vm2, %v8026_v48, %v8027_v7  ;;  %v12974_v60 = vsel %vm3501_vm2, %v8035_v47, %v8036_v58  ;;  %v12980_v34 = vsel %vm3501_vm2, %v8032_v23, %v12889_v12 }
 0x76f   : > { %7161 = vrot.lane.b32.xlu0 %v6985_v36, %s13867_s28  ;;  %7157 = vrot.lane.b32.xlu1 %v6984_v41, %s13867_s28  ;;  %v7609_v57 = vcombine.low %v12897_v63, %v12900_v14  ;;  %v7610_v38 = vcombine.high %v12897_v63, %v12900_v14  ;;  %v7541_v10 = vcombine.low %v7510_v27, %v7516_v43  ;;  %vm9719_vm1 = vmmov 0  }
 0x770   : > { %v8130_v19 = vcombine.low %v12916_v20, %v12921_v22  ;;  %v8131_v31 = vcombine.high %v12916_v20, %v12921_v22  ;;  %v7525_v51 = vcombine.low %v7507_v61, %v7513_v44  ;;  %v7542_v53 = vcombine.high %v7510_v27, %v7516_v43  ;;  %8910 = vmatprep.mubr.msk.bf16.mxu0 %vm9719_vm1, %v9708_v55 }
 0x771   : > { %v12997_v18 = vrot.slane %v7541_v10, %v9952_v0  ;;  %v7526_v42 = vcombine.high %v7507_v61, %v7513_v44  ;;  %v8062_v20 = vcombine.low %v12962_v29, %v12974_v60  ;;  %vm7131_vm2 = vcmask 269312  }
 0x772   : > { %v13000_v24 = vrot.slane %v7525_v51, %v9952_v0  ;;  %v13165_v6 = vrot.slane %v8130_v19, %v9964_v5 }
 0x773   : > { %7169 = vrot.lane.b32.xlu0 %v6987_v1, %s13867_s28  ;;  %7165 = vrot.lane.b32.xlu1 %v6986_v21, %s13867_s28 }
 0x777   : > { %7336 = vrot.lane.b32.xlu0 %v6985_v36, %s14118_s12  ;;  %7332 = vrot.lane.b32.xlu1 %v6984_v41, %s14118_s12 }
 0x77b   : > { %7344 = vrot.lane.b32.xlu0 %v6987_v1, %s14118_s12  ;;  %7340 = vrot.lane.b32.xlu1 %v6986_v21, %s14118_s12 }
 0x77f   : > { %7857 = vrot.lane.b32.xlu0 %v7509_v33, %s14118_s12  ;;  %7853 = vrot.lane.b32.xlu1 %v7506_v39, %s14118_s12 }
 0x783   : > { %7865 = vrot.lane.b32.xlu0 %v7515_v49, %s14118_s12  ;;  %7861 = vrot.lane.b32.xlu1 %v7512_v4, %s14118_s12 }
 0x787   : > { %8203 = vrot.lane.b32.xlu0 %v8030_v62, %s13867_s28  ;;  %8199 = vrot.lane.b32.xlu1 %v8027_v7, %s13867_s28 }
 0x78b   : > { %8211 = vrot.lane.b32.xlu0 %v8036_v58, %s13867_s28  ;;  %8207 = vrot.lane.b32.xlu1 %v12889_v12, %s13867_s28 }
 0x78f   : > { %7682 = vrot.lane.b32.xlu0 %v7509_v33, %s13867_s28  ;;  %7678 = vrot.lane.b32.xlu1 %v7506_v39, %s13867_s28 }
 0x793   : > { %7690 = vrot.lane.b32.xlu0 %v7515_v49, %s13867_s28  ;;  %7686 = vrot.lane.b32.xlu1 %v7512_v4, %s13867_s28  ;;  %v7556_v4 = vrot.slane %v7542_v53, %v9952_v0 }
 0x797   : > { %8378 = vrot.lane.b32.xlu0 %v8030_v62, %s14118_s12  ;;  %8374 = vrot.lane.b32.xlu1 %v8027_v7, %s14118_s12 }
 0x79b   : > { %8386 = vrot.lane.b32.xlu0 %v8036_v58, %s14118_s12  ;;  %8382 = vrot.lane.b32.xlu1 %v12889_v12, %s14118_s12  ;;  %v7540_v12 = vrot.slane %v7526_v42, %v9952_v0  ;;  %v7558_v58 = vcombine.high %v13000_v24, %v12997_v18 }
 0x79f   : > { %7855 = vrot.lane.b32.xlu0 %v7510_v27, %s14118_s12  ;;  %7851 = vrot.lane.b32.xlu1 %v7507_v61, %s14118_s12 }
 0x7a3   : > { %7863 = vrot.lane.b32.xlu0 %v7516_v43, %s14118_s12  ;;  %7859 = vrot.lane.b32.xlu1 %v7513_v44, %s14118_s12 }
 0x7a7   : > { %8201 = vrot.lane.b32.xlu0 %v12962_v29, %s13867_s28  ;;  %8197 = vrot.lane.b32.xlu1 %v12967_v56, %s13867_s28 }
 0x7ab   : > { %8209 = vrot.lane.b32.xlu0 %v12974_v60, %s13867_s28  ;;  %8205 = vrot.lane.b32.xlu1 %v12980_v34, %s13867_s28 }
 0x7af   : > { %7680 = vrot.lane.b32.xlu0 %v7510_v27, %s13867_s28  ;;  %7676 = vrot.lane.b32.xlu1 %v7507_v61, %s13867_s28  ;;  %v7572_v27 = vrot.slane %v7558_v58, %v9964_v5  ;;  %v7573_v61 = vcombine.low %v7540_v12, %v7556_v4 }
 0x7b1   : > { %v7581_v53 = vrot.slane %v7573_v61, %v9964_v5 }
 0x7b3   : > { %7688 = vrot.lane.b32.xlu0 %v7516_v43, %s13867_s28  ;;  %7684 = vrot.lane.b32.xlu1 %v7513_v44, %s13867_s28  ;;  %s14119_s28 = smov 22  }
 0x7b7   : > { %8376 = vrot.lane.b32.xlu0 %v12962_v29, %s14118_s12  ;;  %8372 = vrot.lane.b32.xlu1 %v12967_v56, %s14118_s12 }
 0x7bb   : > { %8384 = vrot.lane.b32.xlu0 %v12974_v60, %s14118_s12  ;;  %8380 = vrot.lane.b32.xlu1 %v12980_v34, %s14118_s12  ;;  %s9718_s12 = smov 99  }
 0x7d1   : > { %v7156_v46 = vpop.permute.xlu1 %7155  ;;  %v7160_v3 = vpop.permute.xlu0 %7159 }
 0x7d5   : > { %v7168_v28 = vpop.permute.xlu0 %7167  ;;  %v7164_v1 = vpop.permute.xlu1 %7163 }
 0x7d6   : > { %v7195_v21 = vcombine.low %v7160_v3, %v7168_v28  ;;  %v7196_v41 = vcombine.high %v7160_v3, %v7168_v28  ;;  %v7179_v36 = vcombine.low %v7156_v46, %v7164_v1  ;;  %v7180_v49 = vcombine.high %v7156_v46, %v7164_v1 }
 0x7d8   : > { %v7203_v33 = vrot.slane %v7195_v21, %v9952_v0  ;;  %v7210_v39 = vrot.slane %v7196_v41, %v9952_v0  ;;  %v7187_v7 = vrot.slane %v7179_v36, %v9952_v0  ;;  %v7194_v11 = vrot.slane %v7180_v49, %v9952_v0 }
 0x7d9   : > { %v7335_v9 = vpop.permute.xlu0 %7334  ;;  %v7331_v13 = vpop.permute.xlu1 %7330  ;;  %v7574_v36 = vcombine.high %v7540_v12, %v7556_v4  ;;  %v13036_v4 = vrot.slane %v7021_v15, %v9964_v5  ;;  %v7557_v15 = vcombine.low %v13000_v24, %v12997_v18 }
 0x7da   : > { %v7212_v62 = vcombine.high %v7187_v7, %v7203_v33  ;;  %v7227_v26 = vcombine.low %v7194_v11, %v7210_v39  ;;  %v7228_v42 = vcombine.high %v7194_v11, %v7210_v39  ;;  %v13030_v39 = vrot.slane %v7036_v45, %v9964_v5 }
 0x7db   : > { %v7211_v12 = vcombine.low %v7187_v7, %v7203_v33  ;;  %v7590_v7 = vcombine.high %v7572_v27, %v9708_v55 }
 0x7dc   : > { %v7226_v30 = vrot.slane %v7212_v62, %v9964_v5  ;;  %v7235_v44 = vrot.slane %v7227_v26, %v9964_v5  ;;  %v7242_v11 = vrot.slane %v7228_v42, %v9964_v5  ;;  %v7054_v63 = vcombine.high %v13030_v39, %v9708_v55 }
 0x7dd   : > { %v7343_v52 = vpop.permute.xlu0 %7342  ;;  %v7339_v35 = vpop.permute.xlu1 %7338 }
 0x7de   : > { %v7370_v59 = vcombine.low %v7335_v9, %v7343_v52  ;;  %v7371_v43 = vcombine.high %v7335_v9, %v7343_v52  ;;  %v7354_v54 = vcombine.low %v7331_v13, %v7339_v35  ;;  %v7355_v48 = vcombine.high %v7331_v13, %v7339_v35 }
 0x7df   : > { %v9396_v47 = vpack.i.bf16 %v7572_v27, %v7226_v30  ;;  %v9406_v41 = vpack.i.bf16 %v7581_v53, %v7235_v44  ;;  %v7244_v26 = vcombine.high %v7226_v30, %v9708_v55  ;;  %v13053_v30 = vrot.slane %v7211_v12, %v9964_v5 }
 0x7e0   : > { %v7378_v23 = vrot.slane %v7370_v59, %v9952_v0  ;;  %v7385_v10 = vrot.slane %v7371_v43, %v9952_v0  ;;  %v7362_v51 = vrot.slane %v7354_v54, %v9952_v0  ;;  %v7369_v46 = vrot.slane %v7355_v48, %v9952_v0 }
 0x7e1   : > { %9397 = vrot.lane.b32.xlu0 %v9396_v47, %s14119_s28  ;;  %v7162_v3 = vpop.permute.xlu0 %7161  ;;  %v7158_v28 = vpop.permute.xlu1 %7157  ;;  %v7588_v59 = vrot.slane %v7574_v36, %v9964_v5  ;;  %v7245_v47 = vcombine.high %v7235_v44, %v9708_v55  ;;  %v13068_v44 = vrot.slane %v7037_v32, %v9964_v5 }
 0x7e2   : > { %v7387_v1 = vcombine.high %v7362_v51, %v7378_v23  ;;  %v7402_v21 = vcombine.low %v7369_v46, %v7385_v10  ;;  %v7403_v13 = vcombine.high %v7369_v46, %v7385_v10  ;;  %v7386_v43 = vcombine.low %v7362_v51, %v7378_v23 }
 0x7e3   : > { %v9416_v48 = vpack.i.bf16 %v7588_v59, %v7242_v11  ;;  %v9436_v46 = vpack.i.bf16 %v7590_v7, %v7244_v26  ;;  %v7591_v23 = vcombine.high %v7581_v53, %v9708_v55  ;;  %v13071_v51 = vrot.slane %v7557_v15, %v9964_v5 }
 0x7e4   : > { %v13020_v49 = vrot.slane %v7387_v1, %v9964_v5  ;;  %v13023_v9 = vrot.slane %v7402_v21, %v9964_v5  ;;  %v13057_v10 = vrot.slane %v7403_v13, %v9964_v5  ;;  %v7592_v32 = vcombine.high %v7588_v59, %v9708_v55 }
 0x7e5   : > { %9407 = vrot.lane.b32.xlu0 %v9406_v41, %s9711_s30  ;;  %v7170_v58 = vpop.permute.xlu0 %7169  ;;  %v7166_v62 = vpop.permute.xlu1 %7165  ;;  %v9446_v21 = vpack.i.bf16 %v7591_v23, %v7245_v47  ;;  %v7243_v41 = vcombine.high %v13053_v30, %v9708_v55  ;;  %v7589_v36 = vcombine.high %v13071_v51, %v9708_v55  ;;  %v7052_v13 = vcombine.high %v13085_v8, %v9708_v55 }
 0x7e6   : > { %v7247_v52 = vcombine.low %v7158_v28, %v7166_v62  ;;  %v7255_v61 = vcombine.low %v7162_v3, %v7170_v58  ;;  %v9411_v35 = vpack.i.bf16 %v13023_v9, %v13030_v39  ;;  %v9401_v45 = vpack.i.bf16 %v13020_v49, %v13036_v4 }
 0x7e7   : > { %v13074_v3 = vrot.slane %v7386_v43, %v9964_v5  ;;  %v7246_v28 = vcombine.high %v7242_v11, %v9708_v55  ;;  %v9421_v53 = vpack.i.bf16 %v13057_v10, %v13068_v44  ;;  %v9426_v11 = vpack.i.bf16 %v7589_v36, %v7243_v41 }
 0x7e8   : > { %9402 = vrot.lane.b32.xlu1 %v9401_v45, %s14119_s28  ;;  %v7254_v18 = vrot.slane %v7247_v52, %v9952_v0  ;;  %v7262_v24 = vrot.slane %v7255_v61, %v9952_v0  ;;  %v7617_v26 = vrot.slane %v7609_v57, %v9964_v5  ;;  %v7053_v43 = vcombine.high %v13036_v4, %v9708_v55 }
 0x7e9   : > { %9412 = vrot.lane.b32.xlu0 %v9411_v35, %s9711_s30  ;;  %v13049_v33 = vpop.permute.xlu0 %7336  ;;  %v7333_v54 = vpop.permute.xlu1 %7332  ;;  %v7418_v12 = vcombine.high %v13074_v3, %v9708_v55  ;;  %v9456_v17 = vpack.i.bf16 %v7592_v32, %v7246_v28  ;;  %v7419_v35 = vcombine.high %v13020_v49, %v9708_v55  ;;  %v7625_v49 = vrot.slane %v7610_v38, %v9964_v5 }
 0x7ea   : > { %v7263_v1 = vcombine.low %v7254_v18, %v7262_v24  ;;  %v7264_v40 = vcombine.high %v7254_v18, %v7262_v24  ;;  %v7618_v14 = vcombine.high %v7617_v26, %v9708_v55 }
 0x7eb   : > { %v9431_v61 = vpack.i.bf16 %v7418_v12, %v7052_v13  ;;  %v9441_v47 = vpack.i.bf16 %v7419_v35, %v7053_v43 }
 0x7ec   : > { %9417 = vrot.lane.b32.xlu1 %v9416_v48, %s9713_s21  ;;  %v7271_v25 = vrot.slane %v7263_v1, %v9964_v5  ;;  %v7279_v45 = vrot.slane %v7264_v40, %v9964_v5  ;;  %v7055_v1 = vcombine.high %v13068_v44, %v9708_v55 }
 0x7ed   : > { %9437 = vrot.lane.b32.xlu0 %v9436_v46, %s9712_s11  ;;  %v7345_v27 = vpop.permute.xlu0 %7344  ;;  %v7341_v42 = vpop.permute.xlu1 %7340 }
 0x7ee   : > { %v7422_v59 = vcombine.low %v7333_v54, %v7341_v42  ;;  %v7430_v15 = vcombine.low %v13049_v33, %v7345_v27  ;;  %v9461_v7 = vpack.i.bf16 %v7617_v26, %v7271_v25  ;;  %v7420_v33 = vcombine.high %v13023_v9, %v9708_v55 }
 0x7ef   : > { %v7272_v54 = vcombine.high %v7271_v25, %v9708_v55  ;;  %v9476_v24 = vpack.i.bf16 %v7625_v49, %v7279_v45  ;;  %v7421_v42 = vcombine.high %v13057_v10, %v9708_v55  ;;  %v7080_v25 = vrot.slane %v7072_v50, %v9964_v5 }
 0x7f0   : > { %9422 = vrot.lane.b32.xlu1 %v9421_v53, %s9713_s21  ;;  %v7429_v4 = vrot.slane %v7422_v59, %v9952_v0  ;;  %v7437_v18 = vrot.slane %v7430_v15, %v9952_v0  ;;  %v9451_v27 = vpack.i.bf16 %v7420_v33, %v7054_v63  ;;  %v7088_v45 = vrot.slane %v7073_v2, %v9964_v5 }
 0x7f1   : > { %9447 = vrot.lane.b32.xlu0 %v9446_v21, %s9714_s29  ;;  %v13089_v16 = vpop.permute.xlu0 %7857  ;;  %v13094_v58 = vpop.permute.xlu1 %7853  ;;  %v9486_v23 = vpack.i.bf16 %v7618_v14, %v7272_v54  ;;  %v9466_v36 = vpack.i.bf16 %v7421_v42, %v7055_v1  ;;  %v7081_v33 = vcombine.high %v7080_v25, %v9708_v55 }
 0x7f2   : > { %v7438_v9 = vcombine.low %v7429_v4, %v7437_v18  ;;  %v7439_v21 = vcombine.high %v7429_v4, %v7437_v18 }
 0x7f4   : > { %9427 = vrot.lane.b32.xlu1 %v9426_v11, %s9707_s26  ;;  %v7446_v53 = vrot.slane %v7438_v9, %v9964_v5  ;;  %v7454_v44 = vrot.slane %v7439_v21, %v9964_v5 }
 0x7f5   : > { %9457 = vrot.lane.b32.xlu0 %v9456_v17, %s9715_s20  ;;  %v7866_v62 = vpop.permute.xlu0 %7865  ;;  %v7862_v52 = vpop.permute.xlu1 %7861 }
 0x7f6   : > { %v7943_v12 = vcombine.low %v13094_v58, %v7862_v52  ;;  %v7951_v10 = vcombine.low %v13089_v16, %v7866_v62  ;;  %v9471_v58 = vpack.i.bf16 %v7446_v53, %v7080_v25  ;;  %v7447_v15 = vcombine.high %v7446_v53, %v9708_v55 }
 0x7f7   : > { %v8146_v25 = vrot.slane %v8131_v31, %v9964_v5 }
 0x7f8   : > { %9432 = vrot.lane.b32.xlu1 %v9431_v61, %s9707_s26  ;;  %v7950_v62 = vrot.slane %v7943_v12, %v9952_v0  ;;  %v7958_v52 = vrot.slane %v7951_v10, %v9952_v0 }
 0x7f9   : > { %9462 = vrot.lane.b32.xlu0 %v9461_v7, %s9716_s25  ;;  %v8204_v57 = vpop.permute.xlu0 %8203  ;;  %v8200_v48 = vpop.permute.xlu1 %8199 }
 0x7fa   : > { %v7959_v49 = vcombine.low %v7950_v62, %v7958_v52  ;;  %v7960_v14 = vcombine.high %v7950_v62, %v7958_v52 }
 0x7fc   : > { %9442 = vrot.lane.b32.xlu1 %v9441_v47, %s9712_s11 }
 0x7fd   : > { %9477 = vrot.lane.b32.xlu0 %v9476_v24, %s9717_s18  ;;  %v8212_v46 = vpop.permute.xlu0 %8211  ;;  %v8208_v38 = vpop.permute.xlu1 %8207  ;;  %v9491_v24 = vpack.i.bf16 %v7447_v15, %v7081_v33 }
 0x7fe   : > { %v8289_v41 = vcombine.low %v8200_v48, %v8208_v38  ;;  %v8297_v32 = vcombine.low %v8204_v57, %v8212_v46  ;;  %v9481_v57 = vpack.i.bf16 %v7454_v44, %v7088_v45  ;;  %v13176_v38 = vrot.slane %v7959_v49, %v9964_v5 }
 0x800   : > { %9452 = vrot.lane.b32.xlu1 %v9451_v27, %s9714_s29  ;;  %v8296_v13 = vrot.slane %v8289_v41, %v9952_v0  ;;  %v8304_v26 = vrot.slane %v8297_v32, %v9952_v0 }
 0x801   : > { %9487 = vrot.lane.b32.xlu0 %v9486_v23, %s9718_s12  ;;  %v7683_v28 = vpop.permute.xlu0 %7682  ;;  %v7679_v39 = vpop.permute.xlu1 %7678 }
 0x802   : > { %v8305_v7 = vcombine.low %v8296_v13, %v8304_v26  ;;  %v8306_v37 = vcombine.high %v8296_v13, %v8304_v26 }
 0x804   : > { %9467 = vrot.lane.b32.xlu1 %v9466_v36, %s9715_s20  ;;  %v13168_v4 = vrot.slane %v8305_v7, %v9964_v5  ;;  %v8321_v27 = vrot.slane %v8306_v37, %v9964_v5 }
 0x805   : > { %v7691_v40 = vpop.permute.xlu0 %7690  ;;  %v7687_v17 = vpop.permute.xlu1 %7686 }
 0x806   : > { %v7776_v11 = vcombine.low %v7683_v28, %v7691_v40  ;;  %v7768_v61 = vcombine.low %v7679_v39, %v7687_v17  ;;  %v9496_v21 = vpack.i.bf16 %v13168_v4, %v13176_v38  ;;  %v7975_v39 = vrot.slane %v7960_v14, %v9964_v5 }
 0x808   : > { %v7783_v16 = vrot.slane %v7776_v11, %v9952_v0  ;;  %v7775_v35 = vrot.slane %v7768_v61, %v9952_v0  ;;  %9472 = vrot.lane.b32.xlu1 %v9471_v58, %s9716_s25  ;;  %v9506_v36 = vpack.i.bf16 %v8321_v27, %v7975_v39 }
 0x809   : > { %v8379_v50 = vpop.permute.xlu0 %8378  ;;  %v8375_v59 = vpop.permute.xlu1 %8374 }
 0x80a   : > { %v7784_v43 = vcombine.low %v7775_v35, %v7783_v16  ;;  %v7785_v42 = vcombine.high %v7775_v35, %v7783_v16  ;;  %v8046_v35 = vcombine.low %v12967_v56, %v12980_v34 }
 0x80c   : > { %v13157_v48 = vrot.slane %v7784_v43, %v9964_v5  ;;  %9482 = vrot.lane.b32.xlu1 %v9481_v57, %s9717_s18  ;;  %v7800_v32 = vrot.slane %v7785_v42, %v9964_v5 }
 0x80d   : > { %v8387_v47 = vpop.permute.xlu0 %8386  ;;  %v8383_v2 = vpop.permute.xlu1 %8382 }
 0x80e   : > { %v8472_v54 = vcombine.low %v8379_v50, %v8387_v47  ;;  %v8464_v18 = vcombine.low %v8375_v59, %v8383_v2  ;;  %v9501_v46 = vpack.i.bf16 %v13165_v6, %v13157_v48  ;;  %v9511_v17 = vpack.i.bf16 %v8146_v25, %v7800_v32 }
 0x80f   : > { %v8063_v47 = vcombine.high %v12962_v29, %v12974_v60 }
 0x810   : > { %v13173_v63 = vrot.slane %v8472_v54, %v9952_v0  ;;  %v13179_v19 = vrot.slane %v8464_v18, %v9952_v0  ;;  %9492 = vrot.lane.b32.xlu1 %v9491_v24, %s9718_s12  ;;  %9502 = vrot.lane.b32.xlu0 %v9501_v46, %s9716_s25  ;;  %v13226_v54 = vrot.slane %v8062_v20, %v9952_v0 }
 0x811   : > { %v7856_v9 = vpop.permute.xlu0 %7855  ;;  %v7852_v23 = vpop.permute.xlu1 %7851  ;;  %v8047_v18 = vcombine.high %v12967_v56, %v12980_v34  ;;  %v13231_v24 = vrot.slane %v8046_v35, %v9952_v0 }
 0x812   : > { %v8480_v28 = vcombine.low %v13179_v19, %v13173_v63  ;;  %v8481_v1 = vcombine.high %v13179_v19, %v13173_v63 }
 0x814   : > { %9497 = vrot.lane.b32.xlu1 %v9496_v21, %s9716_s25 }
 0x815   : > { %v7864_v53 = vpop.permute.xlu0 %7863  ;;  %v7860_v41 = vpop.permute.xlu1 %7859 }
 0x816   : > { %v7875_v12 = vcombine.low %v7852_v23, %v7860_v41  ;;  %v7891_v10 = vcombine.low %v7856_v9, %v7864_v53  ;;  %v7892_v11 = vcombine.high %v7856_v9, %v7864_v53  ;;  %v7876_v13 = vcombine.high %v7852_v23, %v7860_v41 }
 0x817   : > { %v8077_v9 = vrot.slane %v8063_v47, %v9952_v0  ;;  %v8061_v41 = vrot.slane %v8047_v18, %v9952_v0 }
 0x818   : > { %9507 = vrot.lane.b32.xlu1 %v9506_v36, %s9717_s18  ;;  %v13199_v26 = vrot.slane %v7875_v12, %v9952_v0  ;;  %v13202_v61 = vrot.slane %v7891_v10, %v9952_v0  ;;  %v7906_v50 = vrot.slane %v7892_v11, %v9952_v0  ;;  %v7890_v15 = vrot.slane %v7876_v13, %v9952_v0 }
 0x819   : > { %v8202_v40 = vpop.permute.xlu0 %8201  ;;  %v8198_v44 = vpop.permute.xlu1 %8197 }
 0x81a   : > { %v7908_v7 = vcombine.high %v13199_v26, %v13202_v61  ;;  %v7923_v14 = vcombine.low %v7890_v15, %v7906_v50  ;;  %v7924_v32 = vcombine.high %v7890_v15, %v7906_v50  ;;  %v8094_v15 = vcombine.low %v8061_v41, %v8077_v9 }
 0x81c   : > { %9512 = vrot.lane.b32.xlu1 %v9511_v17, %s9717_s18  ;;  %v13234_v46 = vrot.slane %v7908_v7, %v9964_v5  ;;  %v13249_v10 = vrot.slane %v7923_v14, %v9964_v5  ;;  %v8079_v17 = vcombine.high %v13231_v24, %v13226_v54  ;;  %v13262_v20 = vrot.slane %v7924_v32, %v9964_v5 }
 0x81d   : > { %v8210_v58 = vpop.permute.xlu0 %8209  ;;  %v8206_v16 = vpop.permute.xlu1 %8205 }
 0x81e   : > { %v8237_v62 = vcombine.low %v8202_v40, %v8210_v58  ;;  %v8238_v52 = vcombine.high %v8202_v40, %v8210_v58  ;;  %v8221_v22 = vcombine.low %v8198_v44, %v8206_v16  ;;  %v8222_v31 = vcombine.high %v8198_v44, %v8206_v16 }
 0x820   : > { %v13211_v45 = vrot.slane %v8237_v62, %v9952_v0  ;;  %v8252_v59 = vrot.slane %v8238_v52, %v9952_v0  ;;  %v13218_v43 = vrot.slane %v8221_v22, %v9952_v0  ;;  %v8236_v57 = vrot.slane %v8222_v31, %v9952_v0 }
 0x821   : > { %v7681_v49 = vpop.permute.xlu0 %7680  ;;  %v7677_v33 = vpop.permute.xlu1 %7676  ;;  %v8095_v22 = vcombine.high %v8061_v41, %v8077_v9  ;;  %v8139_v41 = vcombine.high %v13165_v6, %v9708_v55 }
 0x822   : > { %v8254_v37 = vcombine.high %v13218_v43, %v13211_v45  ;;  %v8269_v2 = vcombine.low %v8236_v57, %v8252_v59  ;;  %v8270_v27 = vcombine.high %v8236_v57, %v8252_v59  ;;  %v8253_v31 = vcombine.low %v13218_v43, %v13211_v45 }
 0x823   : > { %v8093_v59 = vrot.slane %v8079_v17, %v9964_v5  ;;  %v8109_v14 = vrot.slane %v8095_v22, %v9964_v5 }
 0x824   : > { %v13237_v29 = vrot.slane %v8254_v37, %v9964_v5  ;;  %v13241_v39 = vrot.slane %v8269_v2, %v9964_v5  ;;  %v13257_v11 = vrot.slane %v8270_v27, %v9964_v5  ;;  %v8102_v27 = vrot.slane %v8094_v15, %v9964_v5 }
 0x825   : > { %v7689_v60 = vpop.permute.xlu0 %7688  ;;  %v7685_v23 = vpop.permute.xlu1 %7684 }
 0x826   : > { %v7716_v42 = vcombine.low %v7681_v49, %v7689_v60  ;;  %v7717_v21 = vcombine.high %v7681_v49, %v7689_v60  ;;  %v7700_v56 = vcombine.low %v7677_v33, %v7685_v23  ;;  %v7701_v34 = vcombine.high %v7677_v33, %v7685_v23 }
 0x827   : > { %v9516_v53 = vpack.i.bf16 %v13237_v29, %v13234_v46  ;;  %v9526_v52 = vpack.i.bf16 %v13241_v39, %v13249_v10  ;;  %v9536_v33 = vpack.i.bf16 %v13257_v11, %v13262_v20  ;;  %v7907_v60 = vcombine.low %v13199_v26, %v13202_v61 }
 0x828   : > { %v7724_v36 = vrot.slane %v7716_v42, %v9952_v0  ;;  %v7731_v12 = vrot.slane %v7717_v21, %v9952_v0  ;;  %v7708_v40 = vrot.slane %v7700_v56, %v9952_v0  ;;  %v7715_v25 = vrot.slane %v7701_v34, %v9952_v0 }
 0x829   : > { %9517 = vrot.lane.b32.xlu0 %v9516_v53, %s14119_s28  ;;  %v8377_v44 = vpop.permute.xlu0 %8376  ;;  %v8373_v13 = vpop.permute.xlu1 %8372  ;;  %v7793_v23 = vcombine.high %v13157_v48, %v9708_v55  ;;  %v13290_v42 = vrot.slane %v8253_v31, %v9964_v5  ;;  %v8078_v48 = vcombine.low %v13231_v24, %v13226_v54  ;;  %v13302_v32 = vrot.slane %v7907_v60, %v9964_v5 }
 0x82a   : > { %v7733_v58 = vcombine.high %v7708_v40, %v7724_v36  ;;  %v7748_v16 = vcombine.low %v7715_v25, %v7731_v12  ;;  %v7749_v62 = vcombine.high %v7715_v25, %v7731_v12  ;;  %v7732_v21 = vcombine.low %v7708_v40, %v7724_v36 }
 0x82b   : > { %v9551_v36 = vpack.i.bf16 %v8139_v41, %v7793_v23  ;;  %v8285_v6 = vcombine.high %v13290_v42, %v9708_v55  ;;  %v7939_v54 = vcombine.high %v13302_v32, %v9708_v55  ;;  %v13317_v24 = vrot.slane %v8078_v48, %v9964_v5 }
 0x82c   : > { %v7747_v35 = vrot.slane %v7733_v58, %v9964_v5  ;;  %v13270_v7 = vrot.slane %v7748_v16, %v9964_v5  ;;  %v7763_v57 = vrot.slane %v7749_v62, %v9964_v5  ;;  %v8314_v16 = vcombine.high %v13168_v4, %v9708_v55 }
 0x82d   : > { %9527 = vrot.lane.b32.xlu0 %v9526_v52, %s9711_s30  ;;  %v8385_v50 = vpop.permute.xlu0 %8384  ;;  %v8381_v49 = vpop.permute.xlu1 %8380  ;;  %v8110_v58 = vcombine.high %v13317_v24, %v9708_v55  ;;  %v7968_v31 = vcombine.high %v13176_v38, %v9708_v55  ;;  %v8286_v4 = vcombine.high %v13237_v29, %v9708_v55  ;;  %v7942_v38 = vcombine.high %v13262_v20, %v9708_v55 }
 0x82e   : > { %v8412_v47 = vcombine.low %v8377_v44, %v8385_v50  ;;  %v8396_v37 = vcombine.low %v8373_v13, %v8381_v49  ;;  %v8397_v45 = vcombine.high %v8373_v13, %v8381_v49  ;;  %v8413_v43 = vcombine.high %v8377_v44, %v8385_v50 }
 0x82f   : > { %v9521_v2 = vpack.i.bf16 %v8093_v59, %v7747_v35  ;;  %v9541_v56 = vpack.i.bf16 %v8109_v14, %v7763_v57  ;;  %v9531_v53 = vpack.i.bf16 %v8102_v27, %v13270_v7  ;;  %v9556_v44 = vpack.i.bf16 %v8285_v6, %v7939_v54 }
 0x830   : > { %v13276_v18 = vrot.slane %v8412_v47, %v9952_v0  ;;  %v13282_v9 = vrot.slane %v8396_v37, %v9952_v0  ;;  %v8411_v34 = vrot.slane %v8397_v45, %v9952_v0  ;;  %v8427_v26 = vrot.slane %v8413_v43, %v9952_v0 }
 0x831   : > { %9537 = vrot.lane.b32.xlu0 %v9536_v33, %s9713_s21  ;;  %9522 = vrot.lane.b32.xlu1 %v9521_v2, %s14119_s28  ;;  %v13307_v0 = vrot.slane %v7732_v21, %v9964_v5  ;;  %v7765_v22 = vcombine.high %v7747_v35, %v9708_v55  ;;  %v8111_v50 = vcombine.high %v8093_v59, %v9708_v55 }
 0x832   : > { %v8429_v61 = vcombine.high %v13282_v9, %v13276_v18  ;;  %v8444_v12 = vcombine.low %v8411_v34, %v8427_v26  ;;  %v8445_v25 = vcombine.high %v8411_v34, %v8427_v26  ;;  %v9546_v49 = vpack.i.bf16 %v8314_v16, %v7968_v31 }
 0x833   : > { %v7764_v13 = vcombine.high %v13307_v0, %v9708_v55  ;;  %v9571_v15 = vpack.i.bf16 %v8111_v50, %v7765_v22  ;;  %v8288_v47 = vcombine.high %v13257_v11, %v9708_v55  ;;  %v7940_v35 = vcombine.high %v13234_v46, %v9708_v55 }
 0x834   : > { %v8443_v40 = vrot.slane %v8429_v61, %v9964_v5  ;;  %v8452_v17 = vrot.slane %v8444_v12, %v9964_v5  ;;  %v8459_v52 = vrot.slane %v8445_v25, %v9964_v5  ;;  %v7767_v37 = vcombine.high %v7763_v57, %v9708_v55 }
 0x835   : > { %9542 = vrot.lane.b32.xlu0 %v9541_v56, %s9713_s21  ;;  %9532 = vrot.lane.b32.xlu1 %v9531_v53, %s9711_s30  ;;  %v9561_v62 = vpack.i.bf16 %v8110_v58, %v7764_v13  ;;  %v9586_v33 = vpack.i.bf16 %v8288_v47, %v7942_v38  ;;  %v9566_v59 = vpack.i.bf16 %v8286_v4, %v7940_v35 }
 0x836   : > { %v8287_v11 = vcombine.high %v13241_v39, %v9708_v55  ;;  %v8113_v29 = vcombine.high %v8109_v14, %v9708_v55  ;;  %v7941_v45 = vcombine.high %v13249_v10, %v9708_v55  ;;  %v8428_v20 = vcombine.low %v13282_v9, %v13276_v18 }
 0x837   : > { %v7766_v57 = vcombine.high %v13270_v7, %v9708_v55  ;;  %v8112_v39 = vcombine.high %v8102_v27, %v9708_v55  ;;  %v8461_v10 = vcombine.high %v8443_v40, %v9708_v55  ;;  %v8488_v7 = vrot.slane %v8480_v28, %v9964_v5  ;;  %v8567_v28 = vld [vmem:[%s13628_s9] sm:$0xf] }
 0x838   : > { %v9591_v46 = vpack.i.bf16 %v8113_v29, %v7767_v37  ;;  %v9576_v43 = vpack.i.bf16 %v8287_v11, %v7941_v45  ;;  %v13361_v2 = vrot.slane %v8428_v20, %v9964_v5  ;;  %v8463_v60 = vcombine.high %v8459_v52, %v9708_v55 }
 0x839   : > { %9552 = vrot.lane.b32.xlu1 %v9551_v36, %s9718_s12  ;;  %8502 = vrot.lane.b32.xlu0 %v8443_v40, %s14119_s28  ;;  %v9581_v14 = vpack.i.bf16 %v8112_v39, %v7766_v57  ;;  %v8489_v23 = vcombine.high %v8488_v7, %v9708_v55  ;;  %v8462_v21 = vcombine.high %v8452_v17, %v9708_v55 }
 0x83a   : > { %v8460_v9 = vcombine.high %v13361_v2, %v9708_v55  ;;  %v8496_v26 = vrot.slane %v8481_v1, %v9964_v5 }
 0x83d   : > { %9557 = vrot.lane.b32.xlu1 %v9556_v44, %s9707_s26  ;;  %8510 = vrot.lane.b32.xlu0 %v8452_v17, %s9711_s30 }
 0x841   : > { %9562 = vrot.lane.b32.xlu1 %v9561_v62, %s9707_s26  ;;  %8518 = vrot.lane.b32.xlu0 %v8459_v52, %s9713_s21 }
 0x845   : > { %9572 = vrot.lane.b32.xlu1 %v9571_v15, %s9712_s11  ;;  %9547 = vrot.lane.b32.xlu0 %v9546_v49, %s9718_s12 }
 0x849   : > { %9587 = vrot.lane.b32.xlu1 %v9586_v33, %s9715_s20  ;;  %9567 = vrot.lane.b32.xlu0 %v9566_v59, %s9712_s11 }
 0x84d   : > { %9592 = vrot.lane.b32.xlu1 %v9591_v46, %s9715_s20  ;;  %9577 = vrot.lane.b32.xlu0 %v9576_v43, %s9714_s29 }
 0x851   : > { %9582 = vrot.lane.b32.xlu0 %v9581_v14, %s9714_s29  ;;  %8506 = vrot.lane.b32.xlu1 %v8461_v10, %s9712_s11  ;;  %s365_s11 = sand.u32 1, %s9650_s14  }
 0x852   : > { %s8713_s21 = sshll.u32 %s365_s11, 2 }
 0x853   : > { %v9398_v18 = vpop.permute.xlu0 %9397 }
 0x854   : > { %v9400_v44 = vunpack.i.h.bf16 %v9398_v18  ;;  %v9399_v63 = vunpack.i.l.bf16 %v9398_v18 }
 0x855   : > { %8522 = vrot.lane.b32.xlu1 %v8463_v60, %s9715_s20  ;;  %8498 = vrot.lane.b32.xlu0 %v8460_v9, %s9707_s26  ;;  %s367_s20 = scalar_lea.vmem [#allocation2], %s8713_s21  ;;  %s9720_s26 = smov [#allocation2]  }
 0x856   : > { %s9600_s30 = sshll.u32 %s9720_s26, 4  ;;  %s9601_s30 = int_to_ptr.vmem [resolvable:$false] %s9600_s30 }
 0x857   : > { %v9408_v27 = vpop.permute.xlu0 %9407  ;;  %s9602_s21 = scalar_lea.vmem %s9601_s30, 128 }
 0x858   : > { %v9409_v22 = vunpack.i.l.bf16 %v9408_v27 }
 0x859   : > { %8530 = vrot.lane.b32.xlu1 %v8489_v23, %s9718_s12  ;;  %8514 = vrot.lane.b32.xlu0 %v8462_v21, %s9714_s29  ;;  %s8768_s29 = sshll.u32 %s9797_s17, 6  ;;  %s8625_s17 = scalar_lea.sflag [#allocation3], %s365_s11 }
 0x85a   : > { %v13383_v56 = vpop.permute.xlu1 %9402  ;;  %s13577_s27 = scalar_lea.hbm %s13629_s10, %s8768_s29 }
 0x85b   : > { %v13385_v34 = vpop.permute.xlu0 %9412  ;;  %v9405_v43 = vunpack.i.h.bf16 %v13383_v56  ;;  %v9404_v57 = vunpack.i.l.bf16 %v13383_v56 }
 0x85c   : > { %v9415_v39 = vunpack.i.h.bf16 %v13385_v34  ;;  %v9414_v14 = vunpack.i.l.bf16 %v13385_v34 }
 0x85d   : > { %8570 = vperm.xlu1 %9395, %v8567_v28   ;;  %8526 = vrot.lane.b32.xlu0 %v8488_v7, %s9716_s25  ;;  %s8638_s25 = sshll.u32 %s367_s20, 4  ;;  %s13579_s25 = int_to_ptr.vmem [resolvable:$true] %s8638_s25 }
 0x85e   : > { %v9418_v61 = vpop.permute.xlu1 %9417  ;;  %s9596_s28 = scalar_lea.vmem %s13579_s25, 64  ;;  %p9603_p0 = scmp.lt.s32.totalorder %s13579_s25, %s9601_s30 }
 0x85f   : > { %v9438_v53 = vpop.permute.xlu0 %9437  ;;  %v9420_v35 = vunpack.i.h.bf16 %v9418_v61  ;;  %v9419_v33 = vunpack.i.l.bf16 %v9418_v61  ;;  %p9597_p11 = scmp.ne.s32.totalorder %s13579_s25, %s9596_s28  ;;  %p9604_p1 = scmp.lt.s32.totalorder %s9602_s21, %s9596_s28 }
 0x860   : > { %v9440_v13 = vunpack.i.h.bf16 %v9438_v53  ;;  %v9439_v58 = vunpack.i.l.bf16 %v9438_v53 }
 0x861   : > { %8534 = vrot.lane.b32.xlu0 %v8496_v26, %s9717_s18  ;;  %p9598_p12 = pnand %p9597_p11, %p9814_p5  ;;  %p9605_p2 = por %p9604_p1, %p9603_p0 }
 0x862   : > { %v13393_v41 = vpop.permute.xlu1 %9422 }
 0x863   : > { %v9448_v48 = vpop.permute.xlu0 %9447  ;;  %p9599_p13 = pneg %p9598_p12 }
 0x864   : > { %v9450_v4 = vunpack.i.h.bf16 %v9448_v48  ;;  %v9449_v38 = vunpack.i.l.bf16 %v9448_v48 }
 0x865   : > { %p9606_p3 = pnand %p9605_p2, %p9599_p13 }
 0x866   : > { %v9428_v36 = vpop.permute.xlu1 %9427 }
 0x867   : > { %v9458_v12 = vpop.permute.xlu0 %9457  ;;  %v9430_v40 = vunpack.i.h.bf16 %v9428_v36  ;;  %v9429_v6 = vunpack.i.l.bf16 %v9428_v36 }
 0x868   : > { %v9460_v18 = vunpack.i.h.bf16 %v9458_v12 }
 0x869   : > { %v7666_v54 = vsel %vm6850_vm9, %v13071_v51, %v9430_v40  ;;  %v7320_v25 = vsel %vm6850_vm9, %v13053_v30, %v9429_v6  ;;  %v9410_v51 = vunpack.i.h.bf16 %v9408_v27  ;;  %v9424_v40 = vunpack.i.l.bf16 %v13393_v41 }
 0x86a   : > { %v9433_v5 = vpop.permute.xlu1 %9432  ;;  %v7321_v19 = vsel %vm2053_vm4, %v7320_v25, %v9399_v63  ;;  %v7667_v1 = vsel %vm2053_vm4, %v7666_v54, %v9400_v44 }
 0x86b   : > { %v9463_v17 = vpop.permute.xlu0 %9462  ;;  %v7322_v62 = vsel %vm7131_vm2, %v7321_v19, %v9439_v58  ;;  %v7668_v52 = vsel %vm7131_vm2, %v7667_v1, %v9440_v13  ;;  %v9435_v50 = vunpack.i.h.bf16 %v9433_v5  ;;  %v9434_v15 = vunpack.i.l.bf16 %v9433_v5 }
 0x86c   : > { %v7323_v30 = vsel %vm7133_vm5, %v7322_v62, %v9409_v22  ;;  %v7669_v31 = vsel %vm7133_vm5, %v7668_v52, %v9410_v51  ;;  %v9465_v48 = vunpack.i.h.bf16 %v9463_v17  ;;  %v9464_v36 = vunpack.i.l.bf16 %v9463_v17 }
 0x86d   : > { %v7324_v59 = vsel %vm7135_vm7, %v7323_v30, %v9449_v38  ;;  %v7670_v37 = vsel %vm7135_vm7, %v7669_v31, %v9450_v4  ;;  %v7495_v11 = vsel %vm6850_vm9, %v13074_v3, %v9435_v50  ;;  %v7129_v29 = vsel %vm6850_vm9, %v13085_v8, %v9434_v15 }
 0x86e   : > { %v9443_v16 = vpop.permute.xlu1 %9442  ;;  %v7325_v10 = vsel %vm7137_vm8, %v7324_v59, %v9419_v33  ;;  %v7671_v3 = vsel %vm7137_vm8, %v7670_v37, %v9420_v35  ;;  %v9459_v8 = vunpack.i.l.bf16 %v9458_v12  ;;  %v7130_v60 = vsel %vm2053_vm4, %v7129_v29, %v9404_v57 }
 0x86f   : > { %v9478_v49 = vpop.permute.xlu0 %9477  ;;  %v9445_v45 = vunpack.i.h.bf16 %v9443_v16  ;;  %v9444_v20 = vunpack.i.l.bf16 %v9443_v16  ;;  %v7496_v9 = vsel %vm2053_vm4, %v7495_v11, %v9405_v43  ;;  %v7672_v26 = vsel %vm7139_vm10, %v7671_v3, %v9460_v18 }
 0x870   : > { %v7326_v34 = vsel %vm7139_vm10, %v7325_v10, %v9459_v8  ;;  %v9425_v12 = vunpack.i.h.bf16 %v13393_v41  ;;  %v7673_v44 = vsel %vm7141_vm11, %v7672_v26, %v9465_v48  ;;  %v9480_v41 = vunpack.i.h.bf16 %v9478_v49 }
 0x871   : > { %v7132_v27 = vsel %vm7131_vm2, %v7130_v60, %v9444_v20  ;;  %v7497_v23 = vsel %vm7131_vm2, %v7496_v9, %v9445_v45  ;;  %v7327_v25 = vsel %vm7141_vm11, %v7326_v34, %v9464_v36  ;;  %v9479_v16 = vunpack.i.l.bf16 %v9478_v49 }
 0x872   : > { %v9453_v47 = vpop.permute.xlu1 %9452  ;;  %v7134_v6 = vsel %vm7133_vm5, %v7132_v27, %v9414_v14  ;;  %v7498_v54 = vsel %vm7133_vm5, %v7497_v23, %v9415_v39 }
 0x873   : > { %v9488_v7 = vpop.permute.xlu0 %9487  ;;  %v9455_v21 = vunpack.i.h.bf16 %v9453_v47  ;;  %v9454_v28 = vunpack.i.l.bf16 %v9453_v47 }
 0x874   : > { %v9490_v61 = vunpack.i.h.bf16 %v9488_v7  ;;  %v9489_v53 = vunpack.i.l.bf16 %v9488_v7 }
 0x875   : > { %v7136_v63 = vsel %vm7135_vm7, %v7134_v6, %v9454_v28  ;;  %v7499_v5 = vsel %vm7135_vm7, %v7498_v54, %v9455_v21 }
 0x876   : > { %v9468_v46 = vpop.permute.xlu1 %9467  ;;  %v7328_v1 = vsel %vm7143_vm12, %v7327_v25, %v9489_v53  ;;  %v7674_v17 = vsel %vm7143_vm12, %v7673_v44, %v9490_v61  ;;  %v7138_v30 = vsel %vm7137_vm8, %v7136_v63, %v9424_v40  ;;  %v7500_v31 = vsel %vm7137_vm8, %v7499_v5, %v9425_v12 }
 0x877   : > { %v9470_v13 = vunpack.i.h.bf16 %v9468_v46  ;;  %v9469_v58 = vunpack.i.l.bf16 %v9468_v46  ;;  %v7329_v51 = vsel %vm7145_vm13, %v7328_v1, %v9479_v16  ;;  %v7675_v22 = vsel %vm7145_vm13, %v7674_v17, %v9480_v41 }
 0x878   : > { %v8548_v37 = vrot.slane %v7329_v51, 4  ;;  %v8551_v11 = vrot.slane %v7675_v22, 4 }
 0x879   : > { %v7140_v15 = vsel %vm7139_vm10, %v7138_v30, %v9469_v58  ;;  %v7501_v47 = vsel %vm7139_vm10, %v7500_v31, %v9470_v13 }
 0x87a   : > { %v9473_v56 = vpop.permute.xlu1 %9472 }
 0x87b   : > { %v9475_v62 = vunpack.i.h.bf16 %v9473_v56  ;;  %v9474_v52 = vunpack.i.l.bf16 %v9473_v56 }
 0x87d   : > { %v7142_v35 = vsel %vm7141_vm11, %v7140_v15, %v9474_v52  ;;  %v7502_v49 = vsel %vm7141_vm11, %v7501_v47, %v9475_v62 }
 0x87e   : > { %v9483_v19 = vpop.permute.xlu1 %9482 }
 0x87f   : > { %v9485_v33 = vunpack.i.h.bf16 %v9483_v19  ;;  %v9484_v59 = vunpack.i.l.bf16 %v9483_v19 }
 0x882   : > { %v9493_v50 = vpop.permute.xlu1 %9492  ;;  %v13450_v10 = vpop.permute.xlu0 %9502 }
 0x883   : > { %v9495_v4 = vunpack.i.h.bf16 %v9493_v50  ;;  %v9494_v38 = vunpack.i.l.bf16 %v9493_v50  ;;  %v9505_v53 = vunpack.i.h.bf16 %v13450_v10  ;;  %v9504_v12 = vunpack.i.l.bf16 %v13450_v10 }
 0x885   : > { %v7144_v29 = vsel %vm7143_vm12, %v7142_v35, %v9494_v38  ;;  %v7503_v45 = vsel %vm7143_vm12, %v7502_v49, %v9495_v4 }
 0x886   : > { %v7146_v20 = vsel %vm7145_vm13, %v7144_v29, %v9484_v59  ;;  %v7504_v46 = vsel %vm7145_vm13, %v7503_v45, %v9485_v33  ;;  %v13448_v14 = vpop.permute.xlu1 %9497 }
 0x887   : > { %v8559_v43 = vsel %vm6770_vm6, %v7146_v20, %v8548_v37  ;;  %v8560_v57 = vsel %vm6770_vm6, %v7504_v46, %v8551_v11  ;;  %v9500_v40 = vunpack.i.h.bf16 %v13448_v14  ;;  %v9499_v63 = vunpack.i.l.bf16 %v13448_v14 }
 0x888   : > { %v8563_v39 = vpack.c.bf16 %v8560_v57, %v8559_v43 }
 0x88a   : > { %8905 = vmatpush3.bf16.msra.mxu0 %v8563_v39  ;;  %v13452_v3 = vpop.permute.xlu1 %9507 }
 0x88b   : > { %8906 = vmatprep.subr.bf16.mxu0 %v9708_v55  ;;  %v9510_v5 = vunpack.i.h.bf16 %v13452_v3  ;;  %v9509_v19 = vunpack.i.l.bf16 %v13452_v3 }
 0x88e   : > { %v13454_v18 = vpop.permute.xlu1 %9512 }
 0x88f   : > { %v9515_v1 = vunpack.i.h.bf16 %v13454_v18  ;;  %v9514_v17 = vunpack.i.l.bf16 %v13454_v18 }
 0x89b   : > { %v9518_v7 = vpop.permute.xlu0 %9517 }
 0x89c   : > { %v9520_v13 = vunpack.i.h.bf16 %v9518_v7  ;;  %v9519_v58 = vunpack.i.l.bf16 %v9518_v7 }
 0x89f   : > { %v13456_v8 = vpop.permute.xlu0 %9527 }
 0x8a0   : > { %v9530_v41 = vunpack.i.h.bf16 %v13456_v8  ;;  %v9529_v16 = vunpack.i.l.bf16 %v13456_v8 }
 0x8a3   : > { %v9523_v60 = vpop.permute.xlu1 %9522  ;;  %v13458_v9 = vpop.permute.xlu0 %9537 }
 0x8a4   : > { %v9525_v62 = vunpack.i.h.bf16 %v9523_v60  ;;  %v9524_v22 = vunpack.i.l.bf16 %v9523_v60  ;;  %v9540_v30 = vunpack.i.h.bf16 %v13458_v9 }
 0x8a7   : > { %v13460_v27 = vpop.permute.xlu1 %9532  ;;  %v13462_v23 = vpop.permute.xlu0 %9542 }
 0x8a8   : > { %v9535_v33 = vunpack.i.h.bf16 %v13460_v27  ;;  %v9534_v37 = vunpack.i.l.bf16 %v13460_v27  ;;  %v9544_v29 = vunpack.i.l.bf16 %v13462_v23 }
 0x8ab   : > { %v13464_v21 = vpop.permute.xlu1 %9552  ;;  %v13466_v28 = vpop.permute.xlu0 %8502 }
 0x8ac   : > { %v9555_v45 = vunpack.i.h.bf16 %v13464_v21 }
 0x8af   : > { %v9558_v56 = vpop.permute.xlu1 %9557  ;;  %v13468_v34 = vpop.permute.xlu0 %8510 }
 0x8b0   : > { %v9560_v48 = vunpack.i.h.bf16 %v9558_v56  ;;  %v9559_v36 = vunpack.i.l.bf16 %v9558_v56 }
 0x8b2   : > { %v8362_v52 = vsel %vm6850_vm9, %v13290_v42, %v9560_v48  ;;  %v8016_v51 = vsel %vm6850_vm9, %v13302_v32, %v9559_v36  ;;  %v9539_v42 = vunpack.i.l.bf16 %v13458_v9 }
 0x8b3   : > { %v9563_v26 = vpop.permute.xlu1 %9562  ;;  %v13470_v61 = vpop.permute.xlu0 %8518  ;;  %v8017_v32 = vsel %vm2053_vm4, %v8016_v51, %v9519_v58  ;;  %v8363_v59 = vsel %vm2053_vm4, %v8362_v52, %v9520_v13 }
 0x8b4   : > { %v9565_v6 = vunpack.i.h.bf16 %v9563_v26  ;;  %v9564_v54 = vunpack.i.l.bf16 %v9563_v26 }
 0x8b6   : > { %v8187_v31 = vsel %vm6850_vm9, %v13317_v24, %v9565_v6  ;;  %v7841_v50 = vsel %vm6850_vm9, %v13307_v0, %v9564_v54  ;;  %v9545_v24 = vunpack.i.h.bf16 %v13462_v23 }
 0x8b7   : > { %v9573_v25 = vpop.permute.xlu1 %9572  ;;  %v13475_v44 = vpop.permute.xlu0 %9547  ;;  %v7842_v20 = vsel %vm2053_vm4, %v7841_v50, %v9524_v22  ;;  %v8188_v46 = vsel %vm2053_vm4, %v8187_v31, %v9525_v62 }
 0x8b8   : > { %v9575_v4 = vunpack.i.h.bf16 %v9573_v25  ;;  %v9574_v38 = vunpack.i.l.bf16 %v9573_v25  ;;  %v9550_v9 = vunpack.i.h.bf16 %v13475_v44  ;;  %v9549_v27 = vunpack.i.l.bf16 %v13475_v44 }
 0x8ba   : > { %v7843_v57 = vsel %vm7131_vm2, %v7842_v20, %v9574_v38  ;;  %v8189_v39 = vsel %vm7131_vm2, %v8188_v46, %v9575_v4 }
 0x8bb   : > { %v9588_v15 = vpop.permute.xlu1 %9587  ;;  %v9568_v47 = vpop.permute.xlu0 %9567  ;;  %v7844_v13 = vsel %vm7133_vm5, %v7843_v57, %v9534_v37  ;;  %v8190_v58 = vsel %vm7133_vm5, %v8189_v39, %v9535_v33 }
 0x8bc   : > { %v9570_v35 = vunpack.i.h.bf16 %v9568_v47  ;;  %v9569_v49 = vunpack.i.l.bf16 %v9568_v47  ;;  %v9590_v26 = vunpack.i.h.bf16 %v9588_v15  ;;  %v9589_v48 = vunpack.i.l.bf16 %v9588_v15 }
 0x8be   : > { %v8018_v0 = vsel %vm7131_vm2, %v8017_v32, %v9569_v49  ;;  %v8364_v11 = vsel %vm7131_vm2, %v8363_v59, %v9570_v35 }
 0x8bf   : > { %v9578_v43 = vpop.permute.xlu0 %9577  ;;  %v9593_v7 = vpop.permute.xlu1 %9592  ;;  %v8019_v23 = vsel %vm7133_vm5, %v8018_v0, %v9529_v16  ;;  %v8365_v56 = vsel %vm7133_vm5, %v8364_v11, %v9530_v41 }
 0x8c0   : > { %v9580_v8 = vunpack.i.h.bf16 %v9578_v43  ;;  %v9579_v60 = vunpack.i.l.bf16 %v9578_v43  ;;  %v9595_v51 = vunpack.i.h.bf16 %v9593_v7  ;;  %v9594_v22 = vunpack.i.l.bf16 %v9593_v7 }
 0x8c2   : > { %v8020_v36 = vsel %vm7135_vm7, %v8019_v23, %v9579_v60  ;;  %v8366_v6 = vsel %vm7135_vm7, %v8365_v56, %v9580_v8  ;;  %v8566_v60 = vld [vmem:[%s13627_s8] sm:$0x3] }
 0x8c3   : > { %v8021_v54 = vsel %vm7137_vm8, %v8020_v36, %v9539_v42  ;;  %v8367_v25 = vsel %vm7137_vm8, %v8366_v6, %v9540_v30  ;;  %v9583_v62 = vpop.permute.xlu0 %9582  ;;  %v8507_v47 = vpop.permute.xlu1 %8506 }
 0x8c4   : > { %v8022_v44 = vsel %vm7139_vm10, %v8021_v54, %v9589_v48  ;;  %v8368_v16 = vsel %vm7139_vm10, %v8367_v25, %v9590_v26  ;;  %v9585_v41 = vunpack.i.h.bf16 %v9583_v62  ;;  %v9584_v52 = vunpack.i.l.bf16 %v9583_v62 }
 0x8c5   : > { %v8023_v31 = vsel %vm7141_vm11, %v8022_v44, %v9499_v63  ;;  %v8369_v50 = vsel %vm7141_vm11, %v8368_v16, %v9500_v40  ;;  %v9554_v63 = vunpack.i.l.bf16 %v13464_v21 }
 0x8c6   : > { %v8024_v30 = vsel %vm7143_vm12, %v8023_v31, %v9549_v27  ;;  %v8370_v15 = vsel %vm7143_vm12, %v8369_v50, %v9550_v9  ;;  %v8191_v4 = vsel %vm7135_vm7, %v8190_v58, %v9585_v41  ;;  %v7845_v38 = vsel %vm7135_vm7, %v7844_v13, %v9584_v52 }
 0x8c7   : > { %v7846_v35 = vsel %vm7137_vm8, %v7845_v38, %v9544_v29  ;;  %v8192_v49 = vsel %vm7137_vm8, %v8191_v4, %v9545_v24  ;;  %v8499_v42 = vpop.permute.xlu0 %8498  ;;  %v8025_v14 = vsel %vm7145_vm13, %v8024_v30, %v9509_v19  ;;  %v8371_v40 = vsel %vm7145_vm13, %v8370_v15, %v9510_v5 }
 0x8c8   : > { %v7847_v33 = vsel %vm7139_vm10, %v7846_v35, %v9594_v22  ;;  %v8193_v32 = vsel %vm7139_vm10, %v8192_v49, %v9595_v51  ;;  %v8537_v59 = vsel %vm6850_vm9, %v13361_v2, %v8499_v42  ;;  %v8554_v5 = vrot.slane %v8025_v14, 4 }
 0x8c9   : > { %v7848_v37 = vsel %vm7141_vm11, %v7847_v33, %v9504_v12  ;;  %v8194_v19 = vsel %vm7141_vm11, %v8193_v32, %v9505_v53  ;;  %v8538_v3 = vsel %vm2053_vm4, %v8537_v59, %v13466_v28  ;;  %v8557_v11 = vrot.slane %v8371_v40, 4  ;;  %v8523_v53 = vpop.permute.xlu1 %8522 }
 0x8ca   : > { %v8539_v21 = vsel %vm7131_vm2, %v8538_v3, %v8507_v47  ;;  %v7849_v24 = vsel %vm7143_vm12, %v7848_v37, %v9554_v63  ;;  %v8195_v0 = vsel %vm7143_vm12, %v8194_v19, %v9555_v45  ;;  %vm8577_vm4 = vcmask 1041408  }
 0x8cb   : > { %v8540_v2 = vsel %vm7133_vm5, %v8539_v21, %v13468_v34  ;;  %v8515_v29 = vpop.permute.xlu0 %8514  ;;  %v7850_v10 = vsel %vm7145_vm13, %v7849_v24, %v9514_v17  ;;  %v8196_v28 = vsel %vm7145_vm13, %v8195_v0, %v9515_v1 }
 0x8cc   : > { %v8541_v12 = vsel %vm7135_vm7, %v8540_v2, %v8515_v29  ;;  %v8561_v20 = vsel %vm6770_vm6, %v7850_v10, %v8554_v5  ;;  %v8562_v45 = vsel %vm6770_vm6, %v8196_v28, %v8557_v11 }
 0x8cd   : > { %v8542_v46 = vsel %vm7137_vm8, %v8541_v12, %v13470_v61  ;;  %v8564_v34 = vpack.c.bf16 %v8562_v45, %v8561_v20  ;;  %v8531_v1 = vpop.permute.xlu1 %8530 }
 0x8ce   : > { %v8543_v43 = vsel %vm7139_vm10, %v8542_v46, %v8523_v53 }
 0x8cf   : > { %v8527_v57 = vpop.permute.xlu0 %8526  ;;  %8907 = vmatpush3.bf16.msra.mxu0 %v8564_v34 }
 0x8d0   : > { %v8544_v18 = vsel %vm7141_vm11, %v8543_v43, %v8527_v57  ;;  %8908 = vmatprep.subr.bf16.mxu0 %v9708_v55 }
 0x8d1   : > { %v8545_v17 = vsel %vm7143_vm12, %v8544_v18, %v8531_v1 }
 0x8d3   : > { %v8535_v39 = vpop.permute.xlu0 %8534 }
 0x8d4   : > { %v8546_v7 = vsel %vm7145_vm13, %v8545_v17, %v8535_v39 }
 0x8d5   : > { %v8565_v8 = vpack.c.bf16 %v8546_v7, %v8546_v7 }
 0x8d7   : > { %v8579_v61 = vsel %vm8577_vm4, %v8565_v8, 0 }
 0x8d8   : > { %8909 = vmatpush3.bf16.msra.mxu0 %v8579_v61 }
 0x8db   : > { %8911 = vmatmul.mubr.msk.bf16.vlgmr.msra.gmra.mrb[20].mxu0 %vm8573_vm14, %v8566_v60 }
 0x8dc   : > { %v8571_v55 = vpop.permute.xlu1 %8570 }
 0x9ae   : > { %v8615_v9 = vpop.f32.mrb[20].mxu0 }
 0x9af   : > { %v8616_v27 = vadd.f32 %v8615_v9, %v8571_v55  ;;  %v8912_v23 = vpop.f32.mrb[21].mxu0 }
 0x9b0   : > { %v8618_v56 = vpop.f32.mrb[22].mxu0 }
 0x9b1   : > { %v8621_v26 = vmax.f32 %v8616_v27, 0.0  ;;  %v8913_v48 = vpop.f32.mrb[23].mxu0 }
 0x9b3   : > { %8623 = vst.msk [vmem:[%s367_s20] sm:$0xf] %vm8622_vm15, %v8621_v26 }
 0x9b4   : > { %9609 = shalt.err (!%p9606_p3)
}
 0x9b5   : > { %s9610_s11 = scalar_lea.hbm %s13577_s27, 64  ;;  %s9614_s18 = scalar_lea.hbm %s13629_s10, 128 }
 0x9b6   : > { %p9611_p4 = scmp.ne.s32.totalorder %s13577_s27, %s9610_s11  ;;  %p9615_p9 = scmp.lt.u32.totalorder %s13577_s27, %s13629_s10 }
 0x9b7   : > { %p9616_p10 = scmp.lt.u32.totalorder %s9614_s18, %s9610_s11  ;;  %p9618_p12 = scmp.lt.u32.totalorder %s9610_s11, %s13577_s27 }
 0x9b8   : > { %p9612_p7 = pnand %p9611_p4, %p9814_p5 }
 0x9b9   : > { %p9617_p11 = por %p9616_p10, %p9615_p9 }
 0x9ba   : > { %p9613_p8 = pneg %p9612_p7 }
 0x9bb   : > { %p9619_p13 = por %p9618_p12, %p9617_p11 }
 0x9bd   : > { %p9620_p0 = pnand %p9619_p13, %p9613_p8 }
 0x9bf   : > { %9623 = shalt.err (!%p9620_p0)
}
 0x9c0   : > { %8915 = dma.vmem_to_hbm [thread:$0]  (%p9814_p5), %s13579_s25, 64, %s13577_s27, %s8625_s17  }
 0x9c1 PF: > { %p8921_p1 = scmp.ge.s32.totalorder %s9658_s16, 2  ;;  %s8650_s28 = sand.u32 1, %s9646_s13  }
 0x9c2   : > { %s8651_s30 = scalar_lea.sflag [#allocation3], %s8650_s28 }
 0x9c3   : > { %p8918_p2 = pnand %p8921_p1, %p9818_p6 }
 0x9c5   : > { %9641 = dma.done.wait (!%p8918_p2), %s8651_s30, 64  }
 0x9c6   : > { %9643 = vsyncadd (!%p8918_p2), %s8651_s30, 4294967232  ;;  %p20_p3 = scmp.ge.s32.totalorder %s9801_s19, 4   ;;  %s14120_s13 = smov %s9650_s14 }
 0x9c7   : > { %s14121_s14 = smov %s9654_s15  ;;  %s14122_s15 = smov %s9812_s22 }
 0x9c8   : > { %s14123_s16 = smov %s9801_s19  ;;  %22 = sbr.rel (!%p20_p3) target bundleno = 3 (0x3), region = 98 }
 0x9cf   :  { %8656 = vsyncpa [#allocation3], 1 }
 0x9d0   :  { %8658 = vsyncpa [#allocation3 + $0x1], 1 }

</bundles_post_ra>
